<compile_context>
chip_gen: v6e
topology: v6e:2x2x1
jax: 0.10.0
libtpu: 0.0.40
codegen_flags: <defaults>
</compile_context>

<pallas_src>
import functools

import jax
import jax.numpy as jnp
from jax.experimental import pallas as pl
from jax.experimental.pallas import tpu as pltpu


# ----------------------------------------------------------------------------
# Kernel 1: fused x2-nearest-upsample + 3x3 "same" conv via the 4-phase
# (sub-pixel) decomposition -> one K=4*Cin / N=4*Cout MXU matmul per tile,
# plus per-tile BatchNorm partial statistics.
# ----------------------------------------------------------------------------
def upconv_phase_kernel(xt_ref, w_ref, y_ref, st_ref):
    # xt: (1, 1, TO+2, W+2, Cin) bf16 halo'd row tile of the zero-padded,
    #     ORIGINAL-resolution input (TO original rows -> TH = 2*TO output rows).
    xt = xt_ref[0, 0]                         # stays bf16 (no f32 upcast)
    tp2, wp2, cin = xt.shape
    to, wo = tp2 - 2, wp2 - 2                 # original-res rows / cols
    tp1, wp1 = to + 1, wo + 1                 # phase-position grid extents
    th, w2 = 2 * to, 2 * wo                   # output rows / cols of this tile
    cout = w_ref.shape[1] // 4

    # 2x2 im2col over the (TO+1) x (W+1) position grid, K = 4*Cin (bf16).
    cols = []
    for u in range(2):
        rows = xt[u:u + tp1]
        for v in range(2):
            cols.append(rows[:, v:v + wp1, :])
    patches = jnp.concatenate(cols, axis=-1).reshape(tp1 * wp1, 4 * cin)

    # One MXU matmul, all four phases packed on the N axis (N = 4*Cout).
    # TODO(synk): on v7x, benchmark 4 accumulated K=Cin matmuls (MRB in-place
    # accumulate) against this single lane-concat im2col matmul.
    acc = jnp.dot(patches, w_ref[...], preferred_element_type=jnp.float32)
    acc3 = acc.reshape(tp1, wp1, 4 * cout)    # (TO+1, W+1, 4*Cout) f32

    # Phase slab (a, b) holds output pixels (2p+a, 2q+b):
    #   y[2p+a, 2q+b, :] = acc3[p+a, q+b, (2a+b)*Cout : (2a+b+1)*Cout]
    slabs = []
    for a in range(2):
        for b in range(2):
            ph = 2 * a + b
            slabs.append(acc3[a:a + to, b:b + wo, ph * cout:(ph + 1) * cout])

    # Column (b) interleave: repeat-by-2 along the width axis + parity select.
    col_par = jax.lax.broadcasted_iota(jnp.int32, (to, w2, cout), 1) % 2

    def col_interleave(sb0, sb1):
        return jnp.where(col_par == 0,
                         jnp.repeat(sb0, 2, axis=1),
                         jnp.repeat(sb1, 2, axis=1))

    row0 = col_interleave(slabs[0], slabs[1])          # output rows 2p
    row1 = col_interleave(slabs[2], slabs[3])          # output rows 2p + 1
    # Row (a) interleave: leading-dim stack + merge (no lane/sublane shuffle).
    y = jnp.stack([row0, row1], axis=1).reshape(th, w2, cout)

    # bf16 conv intermediate (halves inter-pass HBM traffic).
    y_ref[0] = y.astype(y_ref.dtype)

    # Per-(image, tile) BN partial stats from the f32 values; keeps both grid
    # axes "parallel" (no resident accumulator); folded in the wrapper.
    yf = y.reshape(th * w2, cout)
    s = jnp.sum(yf, axis=0, keepdims=True)
    sq = jnp.sum(yf * yf, axis=0, keepdims=True)
    st_ref[0, 0] = jnp.concatenate([s, sq], axis=0)    # (2, Cout)


# ----------------------------------------------------------------------------
# Kernel 2: fused BatchNorm (precomputed per-channel scale/shift) + ReLU.
# ----------------------------------------------------------------------------
def bn_relu_kernel(y_ref, scale_ref, shift_ref, o_ref):
    y = y_ref[...].astype(jnp.float32)        # (1, TH2, W2, Cout)
    o_ref[...] = jnp.maximum(
        y * scale_ref[...] + shift_ref[...], 0.0).astype(o_ref.dtype)


# ----------------------------------------------------------------------------
# Generation-aware VMEM budgets and row-tile pickers.
# ----------------------------------------------------------------------------
def _vmem_budgets():
    """Returns (vmem_limit_bytes, per-step tile working-set budget)."""
    cap = None
    try:
        cap = int(pltpu.get_tpu_info().vmem_capacity_bytes)
    except Exception:                       # older jaxlib / query unavailable
        cap = None
    if cap is None:
        cap = 64 * 1024 * 1024              # conservative (v7x per-core size)
    if cap >= 100 * 1024 * 1024:            # v5e / v6e: 128 MiB physical
        return 48 * 1024 * 1024, 22 * 1024 * 1024
    return 40 * 1024 * 1024, 13 * 1024 * 1024   # v7x: 64 MiB per TensorCore


def _pick_row_tile_k1(h2, w, cin, cout, budget_bytes):
    """Largest even divisor of H2 whose kernel-1 working set fits the budget.

    Note: falls back to th=2 even if that does not fit (known limitation for
    extremely large W*Cin).
    """
    w2 = 2 * w
    best = 2
    for th in range(2, h2 + 1, 2):
        if h2 % th:
            continue
        to = th // 2
        inp = (to + 2) * (w + 2) * cin * 2             # bf16 halo'd input tile
        wgt = (4 * cin) * (4 * cout) * 2               # bf16 packed weights
        patch = (to + 1) * (w + 1) * (4 * cin) * 2     # bf16 2x2 im2col
        acc = (to + 1) * (w + 1) * (4 * cout) * 4      # f32 matmul result
        deint = 3 * th * w2 * cout * 4                 # f32 de-interleave temps
        outt = th * w2 * cout * 2                      # bf16 conv_out tile
        if 2 * (inp + outt) + 2 * wgt + patch + acc + deint <= budget_bytes:
            best = th
    return best


def _pick_row_tile_k2(h2, w2, cout, budget_bytes):
    """Largest even divisor of H2 for the elementwise BN+ReLU pass."""
    best = 2
    for th in range(2, h2 + 1, 2):
        if h2 % th:
            continue
        if th * w2 * cout * (2 * 2 + 2 * 4) <= budget_bytes:
            best = th
    return best


# ----------------------------------------------------------------------------
# 4-phase weight packing.
# ----------------------------------------------------------------------------
def _pack_phase_weights(w_oihw):
    """Torch OIHW 3x3 conv weight -> (4*Cin, 4*Cout) bf16 phase matrix.

    Phase (a, b) of the fused upsample+conv is a 2x2 conv whose tap (u, v) is
    the sum of the 3x3 taps it covers after nearest-x2 upsampling.  K rows are
    ordered (u, v, cin); N columns are ordered (phase = 2a+b, cout).
    """
    cout, cin = w_oihw.shape[0], w_oihw.shape[1]
    w_hwio = jnp.transpose(w_oihw, (2, 3, 1, 0)).astype(jnp.float32)
    taps = [[(0,), (1, 2)], [(0, 1), (2,)]]    # taps[phase][u] -> covered dy/dx
    k_blocks = []
    for u in range(2):
        for v in range(2):
            phase_cols = []
            for a in range(2):
                for b in range(2):
                    wsum = jnp.zeros((cin, cout), jnp.float32)
                    for dy in taps[a][u]:
                        for dx in taps[b][v]:
                            wsum = wsum + w_hwio[dy, dx]
                    phase_cols.append(wsum)
            k_blocks.append(jnp.concatenate(phase_cols, axis=1))
    return jnp.concatenate(k_blocks, axis=0).astype(jnp.bfloat16)


# ----------------------------------------------------------------------------
# Wrapper: NCHW in / NCHW out, matches torch up_conv(in_ch, out_ch).forward
# (training-mode BatchNorm: batch statistics, biased variance).
# ----------------------------------------------------------------------------
@functools.partial(jax.jit, static_argnames=("eps", "row_tile"))
def up_conv_forward(x_nchw, w_oihw, bias, gamma, beta, eps=1e-5, row_tile=None):
    # `bias` is accepted for API parity but unused: a per-channel constant
    # added before training-mode BatchNorm cancels exactly in (y - mean) and
    # leaves the variance unchanged, so the output is identical without it.
    del bias
    N, Cin, H, W = x_nchw.shape
    Cout = w_oihw.shape[0]
    H2, W2 = 2 * H, 2 * W

    vmem_limit, tile_budget = _vmem_budgets()
    if row_tile is None:
        row_tile = _pick_row_tile_k1(H2, W, Cin, Cout, tile_budget)
    assert row_tile % 2 == 0 and H2 % row_tile == 0, \
        "row_tile must be an even divisor of 2*H"
    th = row_tile
    to = th // 2                                  # original-res rows per tile
    n_tiles = H2 // th

    # --- cheap glue at ORIGINAL resolution, all bf16 (no upsampled copy) ---
    x_nhwc = jnp.transpose(x_nchw.astype(jnp.bfloat16), (0, 2, 3, 1))
    x_pad = jnp.pad(x_nhwc, ((0, 0), (1, 1), (1, 1), (0, 0)))  # (N,H+2,W+2,Cin)
    # Halo'd row tiles: tile r covers padded rows [r*to, r*to + to + 2).
    row_idx = jnp.arange(n_tiles)[:, None] * to + jnp.arange(to + 2)[None, :]
    x_tiles = jnp.take(x_pad, row_idx, axis=1)    # (N, n_tiles, to+2, W+2, Cin)
    # TODO(synk): DMA overlapping row windows of x_pad directly from kernel 1
    # (memory_space=pl.ANY + manual async copy) to avoid materializing this
    # duplicated-halo gather in HBM.

    w_packed = _pack_phase_weights(w_oihw)        # (4*Cin, 4*Cout) bf16

    # --- Pallas kernel 1: fused upsample + conv + partial BN stats ---
    conv_out, part_stats = pl.pallas_call(
        upconv_phase_kernel,
        out_shape=(
            jax.ShapeDtypeStruct((N, H2, W2, Cout), jnp.bfloat16),
            jax.ShapeDtypeStruct((N, n_tiles, 2, Cout), jnp.float32),
        ),
        grid_spec=pltpu.PrefetchScalarGridSpec(
            num_scalar_prefetch=0,
            grid=(N, n_tiles),
            in_specs=[
                pl.BlockSpec((1, 1, to + 2, W + 2, Cin),
                             lambda n, r: (n, r, 0, 0, 0)),
                # TODO(synk): single-buffer this constant-index weight block
                # (pipeline_mode=pl.Buffered(1)) to reclaim one weight copy.
                pl.BlockSpec((4 * Cin, 4 * Cout), lambda n, r: (0, 0)),
            ],
            out_specs=[
                pl.BlockSpec((1, th, W2, Cout), lambda n, r: (n, r, 0, 0)),
                pl.BlockSpec((1, 1, 2, Cout), lambda n, r: (n, r, 0, 0)),
            ],
        ),
        compiler_params=pltpu.CompilerParams(
            dimension_semantics=("parallel", "parallel"),
            vmem_limit_bytes=vmem_limit),
    )(x_tiles, w_packed)

    # --- fold partial statistics into per-channel BN scale/shift ---
    stats = jnp.sum(part_stats, axis=(0, 1))                   # (2, Cout)
    count = jnp.float32(N * H2 * W2)
    mean = stats[0] / count
    var = jnp.maximum(stats[1] / count - mean * mean, 0.0)     # biased variance
    inv_std = jax.lax.rsqrt(var + eps)
    scale = (gamma * inv_std).reshape(1, 1, 1, Cout).astype(jnp.float32)
    shift = (beta - mean * gamma * inv_std).reshape(1, 1, 1, Cout).astype(
        jnp.float32)

    # --- Pallas kernel 2: fused BN + ReLU, independently (larger) tiled ---
    th2 = _pick_row_tile_k2(H2, W2, Cout, tile_budget)
    n_tiles2 = H2 // th2
    out_nhwc = pl.pallas_call(
        bn_relu_kernel,
        out_shape=jax.ShapeDtypeStruct((N, H2, W2, Cout), jnp.float32),
        grid_spec=pltpu.PrefetchScalarGridSpec(
            num_scalar_prefetch=0,
            grid=(N, n_tiles2),
            in_specs=[
                pl.BlockSpec((1, th2, W2, Cout), lambda n, r: (n, r, 0, 0)),
                pl.BlockSpec((1, 1, 1, Cout), lambda n, r: (0, 0, 0, 0)),
                pl.BlockSpec((1, 1, 1, Cout), lambda n, r: (0, 0, 0, 0)),
            ],
            out_specs=pl.BlockSpec((1, th2, W2, Cout),
                                   lambda n, r: (n, r, 0, 0)),
        ),
        compiler_params=pltpu.CompilerParams(
            dimension_semantics=("parallel", "parallel"),
            vmem_limit_bytes=vmem_limit),
    )(conv_out, scale, shift)

    # TODO(synk): this final NHWC->NCHW pass disappears if the surrounding
    # model is kept NHWC (or by fusing a per-tile transpose into kernel 2).
    return jnp.transpose(out_nhwc, (0, 3, 1, 2))


# ----------------------------------------------------------------------------
# Pure-JAX reference.  conv_dtype=bfloat16 mimics the kernel's precision
# (bf16 MXU operands + bf16 conv intermediate, f32 statistics).  The conv bias
# is omitted: it cancels exactly under training-mode BatchNorm, so for
# conv_dtype=float32 this is still the exact PyTorch forward.
# ----------------------------------------------------------------------------
def up_conv_reference(x_nchw, w_oihw, bias, gamma, beta, eps=1e-5,
                      conv_dtype=jnp.float32):
    del bias
    xu = jnp.repeat(jnp.repeat(x_nchw, 2, axis=2), 2, axis=3)
    y = jax.lax.conv_general_dilated(
        xu.astype(conv_dtype), w_oihw.astype(conv_dtype),
        window_strides=(1, 1), padding=((1, 1), (1, 1)),
        dimension_numbers=("NCHW", "OIHW", "NCHW"),
        preferred_element_type=jnp.float32)
    mean = y.mean(axis=(0, 2, 3))
    var = y.var(axis=(0, 2, 3))                     # biased (training-mode BN)
    yq = y.astype(conv_dtype).astype(jnp.float32)   # conv intermediate rounding
    yn = (yq - mean[None, :, None, None]) * jax.lax.rsqrt(
        var[None, :, None, None] + eps)
    return jnp.maximum(yn * gamma[None, :, None, None]
                       + beta[None, :, None, None], 0.0)


if __name__ == "__main__":
    key = jax.random.PRNGKey(0)
    k_x, k_w, k_b, k_g, k_be = jax.random.split(key, 5)

    N, Cin, H, W = 2, 4, 16, 16
    Cout = 8

    x = jax.random.normal(k_x, (N, Cin, H, W), dtype=jnp.float32)
    # deterministic synthetic parameters (Conv2d weight OIHW, bias, BN affine)
    w = jax.random.normal(k_w, (Cout, Cin, 3, 3), dtype=jnp.float32) * 0.1
    b = jax.random.normal(k_b, (Cout,), dtype=jnp.float32) * 0.1
    gamma = 1.0 + 0.1 * jax.random.normal(k_g, (Cout,), dtype=jnp.float32)
    beta = 0.1 * jax.random.normal(k_be, (Cout,), dtype=jnp.float32)

    # row_tile=16 -> 2 spatial row tiles per image (exercises the halo logic).
    out = up_conv_forward(x, w, b, gamma, beta, row_tile=16)
    out = jax.block_until_ready(out)
    assert out.shape == (N, Cout, 2 * H, 2 * W)

    # Check vs a reference that mimics the kernel's bf16 precision choices
    # (the kernel rounds phase-SUMMED weights to bf16, the reference rounds
    # per-tap weights, hence the slightly looser tolerance than pure-f32 vs
    # itself would need).
    ref_bf16 = up_conv_reference(x, w, b, gamma, beta, conv_dtype=jnp.bfloat16)
    err_bf16 = float(jnp.max(jnp.abs(out - ref_bf16)))
    assert err_bf16 < 4e-2, f"mismatch vs bf16-precision reference: {err_bf16}"

    # Sanity check vs the full-f32 reference (difference = bf16 rounding only).
    ref_f32 = up_conv_reference(x, w, b, gamma, beta)
    err_f32 = float(jnp.max(jnp.abs(out - ref_f32)))
    assert err_f32 < 1e-1, f"mismatch vs f32 reference: {err_f32}"

    print("KERNEL_OK")
</pallas_src>

<mosaic_0001>
module attributes {stable_mosaic.version = 11 : i64} {
  func.func @upconv_phase_kernel(%arg0: i32, %arg1: i32, %arg2: memref<1x1x10x18x4xbf16, #tpu.memory_space<vmem>>, %arg3: memref<16x32xbf16, #tpu.memory_space<vmem>>, %arg4: memref<1x16x32x8xbf16, #tpu.memory_space<vmem>>, %arg5: memref<1x1x2x8xf32, #tpu.memory_space<vmem>>) attributes {dimension_semantics = [#tpu.dimension_semantics<parallel>, #tpu.dimension_semantics<parallel>], iteration_bounds = array<i64: 2, 2>, scalar_prefetch = 0 : i64, scratch_operands = 0 : i64, tpu.core_type = #tpu.core_type<tc>, window_params = [{transform_indices = @transform_0, window_bounds = array<i64: 1, 1, 10, 18, 4>}, {pipeline_mode = #tpu.pipeline_mode<synchronous>, transform_indices = @transform_1, window_bounds = array<i64: 16, 32>}, {transform_indices = @transform_2, window_bounds = array<i64: 1, 16, 32, 8>}, {transform_indices = @transform_3, window_bounds = array<i64: 1, 1, 2, 8>}]} {
    %c0 = arith.constant 0 : index
    %c0_0 = arith.constant 0 : index
    %c0_1 = arith.constant 0 : index
    %c0_2 = arith.constant 0 : index
    %c0_3 = arith.constant 0 : index
    %0 = vector.load %arg2[%c0, %c0_0, %c0_1, %c0_2, %c0_3] : memref<1x1x10x18x4xbf16, #tpu.memory_space<vmem>>, vector<1x1x10x18x4xbf16>
    %1 = vector.shape_cast %0 : vector<1x1x10x18x4xbf16> to vector<10x18x4xbf16>
    %2 = vector.extract_strided_slice %1 {offsets = [0, 0, 0], sizes = [9, 18, 4], strides = [1, 1, 1]} : vector<10x18x4xbf16> to vector<9x18x4xbf16>
    %3 = vector.extract_strided_slice %2 {offsets = [0, 0, 0], sizes = [9, 17, 4], strides = [1, 1, 1]} : vector<9x18x4xbf16> to vector<9x17x4xbf16>
    %4 = vector.extract_strided_slice %2 {offsets = [0, 1, 0], sizes = [9, 17, 4], strides = [1, 1, 1]} : vector<9x18x4xbf16> to vector<9x17x4xbf16>
    %5 = vector.extract_strided_slice %1 {offsets = [1, 0, 0], sizes = [9, 18, 4], strides = [1, 1, 1]} : vector<10x18x4xbf16> to vector<9x18x4xbf16>
    %6 = vector.extract_strided_slice %5 {offsets = [0, 0, 0], sizes = [9, 17, 4], strides = [1, 1, 1]} : vector<9x18x4xbf16> to vector<9x17x4xbf16>
    %7 = vector.extract_strided_slice %5 {offsets = [0, 1, 0], sizes = [9, 17, 4], strides = [1, 1, 1]} : vector<9x18x4xbf16> to vector<9x17x4xbf16>
    %8 = tpu.concatenate %3, %4, %6, %7 in 2 : vector<9x17x4xbf16>, vector<9x17x4xbf16>, vector<9x17x4xbf16>, vector<9x17x4xbf16> -> vector<9x17x16xbf16>
    %9 = vector.shape_cast %8 : vector<9x17x16xbf16> to vector<153x16xbf16>
    %c0_4 = arith.constant 0 : index
    %c0_5 = arith.constant 0 : index
    %10 = vector.load %arg3[%c0_4, %c0_5] : memref<16x32xbf16, #tpu.memory_space<vmem>>, vector<16x32xbf16>
    %cst = arith.constant dense<0.000000e+00> : vector<153x32xf32>
    %11 = tpu.matmul %9, %10, %cst {dimension_numbers = #tpu.dot_dimension_numbers<[1], [0], [0], [1], [0, 0, 1, 1], [], []>} : vector<153x16xbf16>, vector<16x32xbf16>, vector<153x32xf32> -> vector<153x32xf32>
    %12 = vector.shape_cast %11 : vector<153x32xf32> to vector<9x17x32xf32>
    %13 = vector.extract_strided_slice %12 {offsets = [0, 0, 0], sizes = [8, 16, 8], strides = [1, 1, 1]} : vector<9x17x32xf32> to vector<8x16x8xf32>
    %14 = vector.extract_strided_slice %12 {offsets = [0, 1, 8], sizes = [8, 16, 8], strides = [1, 1, 1]} : vector<9x17x32xf32> to vector<8x16x8xf32>
    %15 = vector.extract_strided_slice %12 {offsets = [1, 0, 16], sizes = [8, 16, 8], strides = [1, 1, 1]} : vector<9x17x32xf32> to vector<8x16x8xf32>
    %16 = vector.extract_strided_slice %12 {offsets = [1, 1, 24], sizes = [8, 16, 8], strides = [1, 1, 1]} : vector<9x17x32xf32> to vector<8x16x8xf32>
    %17 = tpu.iota {dimensions = array<i32: 1>} : vector<8x32x8xi32>
    %c2_i32 = arith.constant 2 : i32
    %c0_i32 = arith.constant 0 : i32
    %18 = arith.cmpi eq, %c2_i32, %c0_i32 : i32
    %c1_i32 = arith.constant 1 : i32
    %19 = arith.select %18, %c1_i32, %c2_i32 : i32
    %20 = vector.broadcast %19 : i32 to vector<8x32x8xi32>
    %21 = arith.remsi %17, %20 : vector<8x32x8xi32>
    %c0_i32_6 = arith.constant 0 : i32
    %22 = vector.broadcast %c0_i32_6 : i32 to vector<8x32x8xi32>
    %23 = arith.cmpi ne, %21, %22 : vector<8x32x8xi32>
    %c0_i32_7 = arith.constant 0 : i32
    %24 = vector.broadcast %c0_i32_7 : i32 to vector<8x32x8xi32>
    %25 = arith.cmpi slt, %21, %24 : vector<8x32x8xi32>
    %c0_i32_8 = arith.constant 0 : i32
    %26 = arith.cmpi slt, %19, %c0_i32_8 : i32
    %27 = vector.broadcast %26 : i1 to vector<8x32x8xi1>
    %28 = vector.broadcast %27 : vector<8x32x8xi1> to vector<8x32x8xi1>
    %29 = arith.xori %25, %28 : vector<8x32x8xi1>
    %30 = arith.andi %29, %23 : vector<8x32x8xi1>
    %31 = vector.broadcast %19 : i32 to vector<8x32x8xi32>
    %32 = arith.addi %21, %31 : vector<8x32x8xi32>
    %33 = arith.select %30, %32, %21 : vector<8x32x8xi1>, vector<8x32x8xi32>
    %c0_i32_9 = arith.constant 0 : i32
    %34 = vector.broadcast %c0_i32_9 : i32 to vector<8x32x8xi32>
    %35 = arith.cmpi eq, %33, %34 : vector<8x32x8xi32>
    %36 = vector.shape_cast %13 : vector<8x16x8xf32> to vector<8x16x1x8xf32>
    %37 = vector.broadcast %36 : vector<8x16x1x8xf32> to vector<8x16x2x8xf32>
    %38 = vector.shape_cast %37 : vector<8x16x2x8xf32> to vector<8x32x8xf32>
    %39 = vector.shape_cast %14 : vector<8x16x8xf32> to vector<8x16x1x8xf32>
    %40 = vector.broadcast %39 : vector<8x16x1x8xf32> to vector<8x16x2x8xf32>
    %41 = vector.shape_cast %40 : vector<8x16x2x8xf32> to vector<8x32x8xf32>
    %42 = arith.select %35, %38, %41 : vector<8x32x8xi1>, vector<8x32x8xf32>
    %c0_i32_10 = arith.constant 0 : i32
    %43 = vector.broadcast %c0_i32_10 : i32 to vector<8x32x8xi32>
    %44 = arith.cmpi eq, %33, %43 : vector<8x32x8xi32>
    %45 = vector.shape_cast %15 : vector<8x16x8xf32> to vector<8x16x1x8xf32>
    %46 = vector.broadcast %45 : vector<8x16x1x8xf32> to vector<8x16x2x8xf32>
    %47 = vector.shape_cast %46 : vector<8x16x2x8xf32> to vector<8x32x8xf32>
    %48 = vector.shape_cast %16 : vector<8x16x8xf32> to vector<8x16x1x8xf32>
    %49 = vector.broadcast %48 : vector<8x16x1x8xf32> to vector<8x16x2x8xf32>
    %50 = vector.shape_cast %49 : vector<8x16x2x8xf32> to vector<8x32x8xf32>
    %51 = arith.select %44, %47, %50 : vector<8x32x8xi1>, vector<8x32x8xf32>
    %52 = vector.shape_cast %42 : vector<8x32x8xf32> to vector<8x1x32x8xf32>
    %53 = vector.shape_cast %51 : vector<8x32x8xf32> to vector<8x1x32x8xf32>
    %54 = tpu.concatenate %52, %53 in 1 : vector<8x1x32x8xf32>, vector<8x1x32x8xf32> -> vector<8x2x32x8xf32>
    %55 = vector.shape_cast %54 : vector<8x2x32x8xf32> to vector<16x32x8xf32>
    %56 = arith.truncf %55 : vector<16x32x8xf32> to vector<16x32x8xbf16>
    %c0_11 = arith.constant 0 : index
    %c0_12 = arith.constant 0 : index
    %c0_13 = arith.constant 0 : index
    %c0_14 = arith.constant 0 : index
    %57 = vector.load %arg4[%c0_11, %c0_12, %c0_13, %c0_14] : memref<1x16x32x8xbf16, #tpu.memory_space<vmem>>, vector<1x16x32x8xbf16>
    %58 = vector.shape_cast %57 : vector<1x16x32x8xbf16> to vector<16x32x8xbf16>
    %59 = vector.shape_cast %56 : vector<16x32x8xbf16> to vector<1x16x32x8xbf16>
    tpu.vector_store %arg4[%c0_11, %c0_12, %c0_13, %c0_14], %59 {strides = array<i32>} : memref<1x16x32x8xbf16, #tpu.memory_space<vmem>>, vector<1x16x32x8xbf16>,
    %60 = vector.shape_cast %55 : vector<16x32x8xf32> to vector<512x8xf32>
    %cst_15 = arith.constant dense<0.000000e+00> : vector<8xf32>
    %61 = vector.multi_reduction <add>, %60, %cst_15 [0] : vector<512x8xf32> to vector<8xf32>
    %62 = vector.shape_cast %61 : vector<8xf32> to vector<1x8xf32>
    %63 = arith.mulf %60, %60 : vector<512x8xf32>
    %cst_16 = arith.constant dense<0.000000e+00> : vector<8xf32>
    %64 = vector.multi_reduction <add>, %63, %cst_16 [0] : vector<512x8xf32> to vector<8xf32>
    %65 = vector.shape_cast %64 : vector<8xf32> to vector<1x8xf32>
    %66 = tpu.concatenate %62, %65 in 0 : vector<1x8xf32>, vector<1x8xf32> -> vector<2x8xf32>
    %c0_17 = arith.constant 0 : index
    %c0_18 = arith.constant 0 : index
    %c0_19 = arith.constant 0 : index
    %c0_20 = arith.constant 0 : index
    %67 = vector.load %arg5[%c0_17, %c0_18, %c0_19, %c0_20] : memref<1x1x2x8xf32, #tpu.memory_space<vmem>>, vector<1x1x2x8xf32>
    %68 = vector.shape_cast %67 : vector<1x1x2x8xf32> to vector<2x8xf32>
    %69 = vector.shape_cast %66 : vector<2x8xf32> to vector<1x1x2x8xf32>
    tpu.vector_store %arg5[%c0_17, %c0_18, %c0_19, %c0_20], %69 {strides = array<i32>} : memref<1x1x2x8xf32, #tpu.memory_space<vmem>>, vector<1x1x2x8xf32>,
    return
  }
  func.func @transform_0(%arg0: i32, %arg1: i32) -> (i32, i32, i32, i32, i32) {
    %c0_i32 = arith.constant 0 : i32
    %c0_i32_0 = arith.constant 0 : i32
    %c0_i32_1 = arith.constant 0 : i32
    %c0_i32_2 = arith.constant 0 : i32
    return %arg0, %arg1, %c0_i32, %c0_i32_0, %c0_i32_1 : i32, i32, i32, i32, i32
  }
  func.func @transform_1(%arg0: i32, %arg1: i32) -> (i32, i32) {
    %c0_i32 = arith.constant 0 : i32
    %c0_i32_0 = arith.constant 0 : i32
    %c0_i32_1 = arith.constant 0 : i32
    return %c0_i32, %c0_i32_0 : i32, i32
  }
  func.func @transform_2(%arg0: i32, %arg1: i32) -> (i32, i32, i32, i32) {
    %c0_i32 = arith.constant 0 : i32
    %c0_i32_0 = arith.constant 0 : i32
    %c0_i32_1 = arith.constant 0 : i32
    return %arg0, %arg1, %c0_i32, %c0_i32_0 : i32, i32, i32, i32
  }
  func.func @transform_3(%arg0: i32, %arg1: i32) -> (i32, i32, i32, i32) {
    %c0_i32 = arith.constant 0 : i32
    %c0_i32_0 = arith.constant 0 : i32
    %c0_i32_1 = arith.constant 0 : i32
    return %arg0, %arg1, %c0_i32, %c0_i32_0 : i32, i32, i32, i32
  }
}

module attributes {stable_mosaic.version = 11 : i64} {
  func.func @bn_relu_kernel(%arg0: i32, %arg1: i32, %arg2: memref<1x32x32x8xbf16, #tpu.memory_space<vmem>>, %arg3: memref<1x1x1x8xf32, #tpu.memory_space<vmem>>, %arg4: memref<1x1x1x8xf32, #tpu.memory_space<vmem>>, %arg5: memref<1x32x32x8xf32, #tpu.memory_space<vmem>>) attributes {dimension_semantics = [#tpu.dimension_semantics<parallel>, #tpu.dimension_semantics<parallel>], iteration_bounds = array<i64: 2, 1>, scalar_prefetch = 0 : i64, scratch_operands = 0 : i64, tpu.core_type = #tpu.core_type<tc>, window_params = [{transform_indices = @transform_0, window_bounds = array<i64: 1, 32, 32, 8>}, {pipeline_mode = #tpu.pipeline_mode<synchronous>, transform_indices = @transform_1, window_bounds = array<i64: 1, 1, 1, 8>}, {pipeline_mode = #tpu.pipeline_mode<synchronous>, transform_indices = @transform_2, window_bounds = array<i64: 1, 1, 1, 8>}, {transform_indices = @transform_3, window_bounds = array<i64: 1, 32, 32, 8>}]} {
    %c0 = arith.constant 0 : index
    %c0_0 = arith.constant 0 : index
    %c0_1 = arith.constant 0 : index
    %c0_2 = arith.constant 0 : index
    %0 = vector.load %arg2[%c0, %c0_0, %c0_1, %c0_2] : memref<1x32x32x8xbf16, #tpu.memory_space<vmem>>, vector<1x32x32x8xbf16>
    %1 = arith.extf %0 : vector<1x32x32x8xbf16> to vector<1x32x32x8xf32>
    %c0_3 = arith.constant 0 : index
    %c0_4 = arith.constant 0 : index
    %c0_5 = arith.constant 0 : index
    %c0_6 = arith.constant 0 : index
    %2 = vector.load %arg3[%c0_3, %c0_4, %c0_5, %c0_6] : memref<1x1x1x8xf32, #tpu.memory_space<vmem>>, vector<1x1x1x8xf32>
    %3 = vector.broadcast %2 : vector<1x1x1x8xf32> to vector<1x32x32x8xf32>
    %4 = arith.mulf %1, %3 : vector<1x32x32x8xf32>
    %c0_7 = arith.constant 0 : index
    %c0_8 = arith.constant 0 : index
    %c0_9 = arith.constant 0 : index
    %c0_10 = arith.constant 0 : index
    %5 = vector.load %arg4[%c0_7, %c0_8, %c0_9, %c0_10] : memref<1x1x1x8xf32, #tpu.memory_space<vmem>>, vector<1x1x1x8xf32>
    %6 = vector.broadcast %5 : vector<1x1x1x8xf32> to vector<1x32x32x8xf32>
    %7 = arith.addf %4, %6 : vector<1x32x32x8xf32>
    %cst = arith.constant 0.000000e+00 : f32
    %8 = vector.broadcast %cst : f32 to vector<1x32x32x8xf32>
    %9 = arith.maximumf %7, %8 : vector<1x32x32x8xf32>
    %c0_11 = arith.constant 0 : index
    %c0_12 = arith.constant 0 : index
    %c0_13 = arith.constant 0 : index
    %c0_14 = arith.constant 0 : index
    %10 = vector.load %arg5[%c0_11, %c0_12, %c0_13, %c0_14] : memref<1x32x32x8xf32, #tpu.memory_space<vmem>>, vector<1x32x32x8xf32>
    tpu.vector_store %arg5[%c0_11, %c0_12, %c0_13, %c0_14], %9 {strides = array<i32>} : memref<1x32x32x8xf32, #tpu.memory_space<vmem>>, vector<1x32x32x8xf32>,
    return
  }
  func.func @transform_0(%arg0: i32, %arg1: i32) -> (i32, i32, i32, i32) {
    %c0_i32 = arith.constant 0 : i32
    %c0_i32_0 = arith.constant 0 : i32
    %c0_i32_1 = arith.constant 0 : i32
    return %arg0, %arg1, %c0_i32, %c0_i32_0 : i32, i32, i32, i32
  }
  func.func @transform_1(%arg0: i32, %arg1: i32) -> (i32, i32, i32, i32) {
    %c0_i32 = arith.constant 0 : i32
    %c0_i32_0 = arith.constant 0 : i32
    %c0_i32_1 = arith.constant 0 : i32
    %c0_i32_2 = arith.constant 0 : i32
    %c0_i32_3 = arith.constant 0 : i32
    return %c0_i32, %c0_i32_0, %c0_i32_1, %c0_i32_2 : i32, i32, i32, i32
  }
  func.func @transform_2(%arg0: i32, %arg1: i32) -> (i32, i32, i32, i32) {
    %c0_i32 = arith.constant 0 : i32
    %c0_i32_0 = arith.constant 0 : i32
    %c0_i32_1 = arith.constant 0 : i32
    %c0_i32_2 = arith.constant 0 : i32
    %c0_i32_3 = arith.constant 0 : i32
    return %c0_i32, %c0_i32_0, %c0_i32_1, %c0_i32_2 : i32, i32, i32, i32
  }
  func.func @transform_3(%arg0: i32, %arg1: i32) -> (i32, i32, i32, i32) {
    %c0_i32 = arith.constant 0 : i32
    %c0_i32_0 = arith.constant 0 : i32
    %c0_i32_1 = arith.constant 0 : i32
    return %arg0, %arg1, %c0_i32, %c0_i32_0 : i32, i32, i32, i32
  }
}

</mosaic_0001>

<bundles_post_ra>
// kernel: up_conv_forward.3
= control target key start
LH: loop header
LB: loop body
LE: loop exit
PB: predicated region body
PF: predicated region fallthrough
CT: control target
= control target key end

     0   :  { %s1498_s12 = smov 0   ;;  %s1500_s13 = smov 0   ;;  %s2135_s0 = inlined_call_operand.vmem [shape: bf16[2,32,32,8], index: 0, kind: input, shape index: {}]   ;;  %s2136_s1 = inlined_call_operand.vmem [shape: f32[1,1,1,8], index: 1, kind: input, shape index: {}]   ;;  %s2137_s2 = inlined_call_operand.vmem [shape: f32[1,1,1,8], index: 2, kind: input, shape index: {}]   ;;  %s2138_s3 = inlined_call_operand.vmem [shape: f32[2,32,32,8], index: 3, kind: output, shape index: {}]  }
   0x1   :  { %s1502_s14 = smov 0  }
   0x2 LB: > { %s25_s15 = sadd.s32 1, %s1472_s13  ;;  %p1098_p0 = scmp.ge.s32.totalorder %s1476_s14, 1  ;;  %s1476_s14 = sphi %s1502_s14, %s13_s14   ;;  %s1472_s13 = sphi %s1500_s13, %s2140_s13   ;;  %s1468_s12 = sphi %s1498_s12, %s2139_s12  }
   0x3   : > { %p27_p1 = scmp.ge.s32.totalorder %s25_s15, 2  ;;  %p159_p2 = scmp.lt.s32.totalorder %s1476_s14, 3 }
   0x5   : > { %s2142_s15 = smov (%p27_p1, %s25_s15), 0  ;;  %p160_p3 = pnand %p1098_p0, %p159_p2 }
   0x6   : > { %p194_p4 = scmp.lt.s32.totalorder (!%p160_p3), %s1468_s12, 1 }
   0x7   : > { %163 = sbr.rel (%p160_p3) target bundleno = 148 (0x94), region = 32 }
   0xc   : > { %s2144_s12 = smov (!%p194_p4, %s1468_s12), 1  ;;  %v1527_v0 = vld [vmem:[%s2136_s1] ss:$0 sm:$0xff]  ;;  %vm869_vm0 = vcmask 64512  }
   0xd   : > { %s1107_s16 = sshll.u32 %s2144_s12, 9  ;;  %v1536_v9 = vld [vmem:[%s2137_s2] ss:$0 sm:$0xff]  ;;  %s1108_s24 = sshll.u32 %s2144_s12, 10 }
   0xe   : > { %s1522_s19 = scalar_lea.vmem %s2135_s0, %s1107_s16  ;;  %s1554_s27 = scalar_lea.vmem %s2138_s3, %s1108_s24 }
   0xf   : > { %v1110_v1 = vld [vmem:[%s1522_s19] sm:$0xff]   ;;  %v1365_v2 = vld [vmem:[%s1522_s19 + $0x8] sm:$0xff]   ;;  %v1366_v3 = vld [vmem:[%s1522_s19 + $0x10] sm:$0xff]  }
  0x10   : > { %v1111_v4 = vunpack.c.l.bf16 %v1110_v1  ;;  %v1112_v5 = vunpack.c.h.bf16 %v1110_v1  ;;  %v1115_v6 = vunpack.c.l.bf16 %v1365_v2  ;;  %v1116_v7 = vunpack.c.h.bf16 %v1365_v2  ;;  %v1367_v8 = vld [vmem:[%s1522_s19 + $0x18] sm:$0xff]   ;;  %v1368_v30 = vld [vmem:[%s1522_s19 + $0x20] sm:$0xff]   ;;  %v1369_v31 = vld [vmem:[%s1522_s19 + $0x28] sm:$0xff]  }
  0x11   : > { %v1119_v10 = vunpack.c.l.bf16 %v1366_v3  ;;  %v1120_v11 = vunpack.c.h.bf16 %v1366_v3  ;;  %v1123_v12 = vunpack.c.l.bf16 %v1367_v8  ;;  %v1124_v13 = vunpack.c.h.bf16 %v1367_v8  ;;  %v1370_v36 = vld [vmem:[%s1522_s19 + $0x30] sm:$0xff]   ;;  %v1371_v37 = vld [vmem:[%s1522_s19 + $0x38] sm:$0xff]   ;;  %v1372_v3 = vld [vmem:[%s1522_s19 + $0x40] sm:$0xff]  }
  0x12   : > { %v478_v14 = vmul.f32 %v1111_v4, %v1527_v0  ;;  %v479_v15 = vmul.f32 %v1112_v5, %v1527_v0  ;;  %v480_v16 = vmul.f32 %v1115_v6, %v1527_v0  ;;  %v481_v17 = vmul.f32 %v1116_v7, %v1527_v0  ;;  %v1373_v4 = vld [vmem:[%s1522_s19 + $0x48] sm:$0xff]  }
  0x13   : > { %v482_v18 = vmul.f32 %v1119_v10, %v1527_v0  ;;  %v483_v19 = vmul.f32 %v1120_v11, %v1527_v0  ;;  %v484_v20 = vmul.f32 %v1123_v12, %v1527_v0  ;;  %v485_v21 = vmul.f32 %v1124_v13, %v1527_v0  ;;  %v1374_v10 = vld [vmem:[%s1522_s19 + $0x50] sm:$0xff]   ;;  %v1375_v11 = vld [vmem:[%s1522_s19 + $0x58] sm:$0xff]  }
  0x14   : > { %v613_v22 = vadd.f32 %v1536_v9, %v478_v14  ;;  %v614_v23 = vadd.f32 %v1536_v9, %v479_v15  ;;  %v615_v24 = vadd.f32 %v1536_v9, %v480_v16  ;;  %v616_v25 = vadd.f32 %v1536_v9, %v481_v17 }
  0x15   : > { %v617_v26 = vadd.f32 %v1536_v9, %v482_v18  ;;  %v618_v27 = vadd.f32 %v1536_v9, %v483_v19  ;;  %v619_v28 = vadd.f32 %v1536_v9, %v484_v20  ;;  %v620_v29 = vadd.f32 %v1536_v9, %v485_v21 }
  0x16   : > { %v741_v32 = vmax.f32 %v613_v22, 0.0  ;;  %v742_v33 = vmax.f32 %v614_v23, 0.0  ;;  %v743_v34 = vmax.f32 %v615_v24, 0.0  ;;  %v744_v35 = vmax.f32 %v616_v25, 0.0 }
  0x17   : > { %v745_v38 = vmax.f32 %v617_v26, 0.0  ;;  %v746_v39 = vmax.f32 %v618_v27, 0.0  ;;  %v747_v40 = vmax.f32 %v619_v28, 0.0  ;;  %v748_v41 = vmax.f32 %v620_v29, 0.0 }
  0x18   : > { %870 = vst.msk [vmem:[%s1554_s27] sm:$0xff] %vm869_vm0, %v741_v32  ;;  %871 = vst.msk [vmem:[%s1554_s27 + $0x8] sm:$0xff] %vm869_vm0, %v742_v33  ;;  %v1127_v42 = vunpack.c.l.bf16 %v1368_v30  ;;  %v1128_v43 = vunpack.c.h.bf16 %v1368_v30  ;;  %v1131_v44 = vunpack.c.l.bf16 %v1369_v31  ;;  %v1132_v45 = vunpack.c.h.bf16 %v1369_v31 }
  0x19   : > { %872 = vst.msk [vmem:[%s1554_s27 + $0x10] sm:$0xff] %vm869_vm0, %v743_v34  ;;  %873 = vst.msk [vmem:[%s1554_s27 + $0x18] sm:$0xff] %vm869_vm0, %v744_v35  ;;  %v1135_v46 = vunpack.c.l.bf16 %v1370_v36  ;;  %v1136_v47 = vunpack.c.h.bf16 %v1370_v36  ;;  %v1139_v48 = vunpack.c.l.bf16 %v1371_v37  ;;  %v1140_v49 = vunpack.c.h.bf16 %v1371_v37 }
  0x1a   : > { %874 = vst.msk [vmem:[%s1554_s27 + $0x20] sm:$0xff] %vm869_vm0, %v745_v38  ;;  %875 = vst.msk [vmem:[%s1554_s27 + $0x28] sm:$0xff] %vm869_vm0, %v746_v39  ;;  %v486_v50 = vmul.f32 %v1127_v42, %v1527_v0  ;;  %v487_v51 = vmul.f32 %v1128_v43, %v1527_v0  ;;  %v488_v52 = vmul.f32 %v1131_v44, %v1527_v0  ;;  %v1143_v16 = vunpack.c.l.bf16 %v1372_v3 }
  0x1b   : > { %876 = vst.msk [vmem:[%s1554_s27 + $0x30] sm:$0xff] %vm869_vm0, %v747_v40  ;;  %877 = vst.msk [vmem:[%s1554_s27 + $0x38] sm:$0xff] %vm869_vm0, %v748_v41  ;;  %v489_v53 = vmul.f32 %v1132_v45, %v1527_v0  ;;  %v490_v54 = vmul.f32 %v1135_v46, %v1527_v0  ;;  %v491_v55 = vmul.f32 %v1136_v47, %v1527_v0  ;;  %v1144_v17 = vunpack.c.h.bf16 %v1372_v3  ;;  %v1376_v40 = vld [vmem:[%s1522_s19 + $0x60] sm:$0xff]   ;;  %v1377_v41 = vld [vmem:[%s1522_s19 + $0x68] sm:$0xff]  }
  0x1c   : > { %v492_v56 = vmul.f32 %v1139_v48, %v1527_v0  ;;  %v493_v57 = vmul.f32 %v1140_v49, %v1527_v0  ;;  %v621_v58 = vadd.f32 %v1536_v9, %v486_v50  ;;  %v622_v59 = vadd.f32 %v1536_v9, %v487_v51  ;;  %v1378_v46 = vld [vmem:[%s1522_s19 + $0x70] sm:$0xff]   ;;  %v1379_v47 = vld [vmem:[%s1522_s19 + $0x78] sm:$0xff]  }
  0x1d   : > { %v623_v60 = vadd.f32 %v1536_v9, %v488_v52  ;;  %v624_v61 = vadd.f32 %v1536_v9, %v489_v53  ;;  %v625_v62 = vadd.f32 %v1536_v9, %v490_v54  ;;  %v626_v63 = vadd.f32 %v1536_v9, %v491_v55 }
  0x1e   : > { %v627_v1 = vadd.f32 %v1536_v9, %v492_v56  ;;  %v628_v2 = vadd.f32 %v1536_v9, %v493_v57  ;;  %v749_v5 = vmax.f32 %v621_v58, 0.0  ;;  %v750_v6 = vmax.f32 %v622_v59, 0.0 }
  0x1f   : > { %v751_v7 = vmax.f32 %v623_v60, 0.0  ;;  %v752_v8 = vmax.f32 %v624_v61, 0.0  ;;  %v753_v12 = vmax.f32 %v625_v62, 0.0  ;;  %v754_v13 = vmax.f32 %v626_v63, 0.0 }
  0x20   : > { %v755_v14 = vmax.f32 %v627_v1, 0.0  ;;  %v756_v15 = vmax.f32 %v628_v2, 0.0  ;;  %878 = vst.msk [vmem:[%s1554_s27 + $0x40] sm:$0xff] %vm869_vm0, %v749_v5  ;;  %879 = vst.msk [vmem:[%s1554_s27 + $0x48] sm:$0xff] %vm869_vm0, %v750_v6  ;;  %v1147_v18 = vunpack.c.l.bf16 %v1373_v4  ;;  %v1148_v19 = vunpack.c.h.bf16 %v1373_v4 }
  0x21   : > { %880 = vst.msk [vmem:[%s1554_s27 + $0x50] sm:$0xff] %vm869_vm0, %v751_v7  ;;  %881 = vst.msk [vmem:[%s1554_s27 + $0x58] sm:$0xff] %vm869_vm0, %v752_v8  ;;  %v1151_v20 = vunpack.c.l.bf16 %v1374_v10  ;;  %v1152_v21 = vunpack.c.h.bf16 %v1374_v10  ;;  %v1155_v22 = vunpack.c.l.bf16 %v1375_v11  ;;  %v1156_v23 = vunpack.c.h.bf16 %v1375_v11 }
  0x22   : > { %882 = vst.msk [vmem:[%s1554_s27 + $0x60] sm:$0xff] %vm869_vm0, %v753_v12  ;;  %883 = vst.msk [vmem:[%s1554_s27 + $0x68] sm:$0xff] %vm869_vm0, %v754_v13  ;;  %v494_v24 = vmul.f32 %v1143_v16, %v1527_v0  ;;  %v495_v25 = vmul.f32 %v1144_v17, %v1527_v0  ;;  %v496_v26 = vmul.f32 %v1147_v18, %v1527_v0  ;;  %v1159_v52 = vunpack.c.l.bf16 %v1376_v40 }
  0x23   : > { %884 = vst.msk [vmem:[%s1554_s27 + $0x70] sm:$0xff] %vm869_vm0, %v755_v14  ;;  %885 = vst.msk [vmem:[%s1554_s27 + $0x78] sm:$0xff] %vm869_vm0, %v756_v15  ;;  %v497_v27 = vmul.f32 %v1148_v19, %v1527_v0  ;;  %v498_v28 = vmul.f32 %v1151_v20, %v1527_v0  ;;  %v499_v29 = vmul.f32 %v1152_v21, %v1527_v0  ;;  %v1160_v53 = vunpack.c.h.bf16 %v1376_v40  ;;  %v1380_v14 = vld [vmem:[%s1522_s19 + $0x80] sm:$0xff]   ;;  %v1381_v15 = vld [vmem:[%s1522_s19 + $0x88] sm:$0xff]  }
  0x24   : > { %v500_v30 = vmul.f32 %v1155_v22, %v1527_v0  ;;  %v501_v31 = vmul.f32 %v1156_v23, %v1527_v0  ;;  %v629_v32 = vadd.f32 %v1536_v9, %v494_v24  ;;  %v630_v33 = vadd.f32 %v1536_v9, %v495_v25  ;;  %v1382_v20 = vld [vmem:[%s1522_s19 + $0x90] sm:$0xff]   ;;  %v1383_v21 = vld [vmem:[%s1522_s19 + $0x98] sm:$0xff]  }
  0x25   : > { %v631_v34 = vadd.f32 %v1536_v9, %v496_v26  ;;  %v632_v35 = vadd.f32 %v1536_v9, %v497_v27  ;;  %v633_v36 = vadd.f32 %v1536_v9, %v498_v28  ;;  %v634_v37 = vadd.f32 %v1536_v9, %v499_v29 }
  0x26   : > { %v635_v38 = vadd.f32 %v1536_v9, %v500_v30  ;;  %v636_v39 = vadd.f32 %v1536_v9, %v501_v31  ;;  %v757_v42 = vmax.f32 %v629_v32, 0.0  ;;  %v758_v43 = vmax.f32 %v630_v33, 0.0 }
  0x27   : > { %v759_v44 = vmax.f32 %v631_v34, 0.0  ;;  %v760_v45 = vmax.f32 %v632_v35, 0.0  ;;  %v761_v48 = vmax.f32 %v633_v36, 0.0  ;;  %v762_v49 = vmax.f32 %v634_v37, 0.0 }
  0x28   : > { %v763_v50 = vmax.f32 %v635_v38, 0.0  ;;  %v764_v51 = vmax.f32 %v636_v39, 0.0  ;;  %886 = vst.msk [vmem:[%s1554_s27 + $0x80] sm:$0xff] %vm869_vm0, %v757_v42  ;;  %887 = vst.msk [vmem:[%s1554_s27 + $0x88] sm:$0xff] %vm869_vm0, %v758_v43  ;;  %v1163_v54 = vunpack.c.l.bf16 %v1377_v41  ;;  %v1164_v55 = vunpack.c.h.bf16 %v1377_v41 }
  0x29   : > { %888 = vst.msk [vmem:[%s1554_s27 + $0x90] sm:$0xff] %vm869_vm0, %v759_v44  ;;  %889 = vst.msk [vmem:[%s1554_s27 + $0x98] sm:$0xff] %vm869_vm0, %v760_v45  ;;  %v1167_v56 = vunpack.c.l.bf16 %v1378_v46  ;;  %v1168_v57 = vunpack.c.h.bf16 %v1378_v46  ;;  %v1171_v58 = vunpack.c.l.bf16 %v1379_v47  ;;  %v1172_v59 = vunpack.c.h.bf16 %v1379_v47 }
  0x2a   : > { %890 = vst.msk [vmem:[%s1554_s27 + $0xa0] sm:$0xff] %vm869_vm0, %v761_v48  ;;  %891 = vst.msk [vmem:[%s1554_s27 + $0xa8] sm:$0xff] %vm869_vm0, %v762_v49  ;;  %v502_v60 = vmul.f32 %v1159_v52, %v1527_v0  ;;  %v503_v61 = vmul.f32 %v1160_v53, %v1527_v0  ;;  %v504_v62 = vmul.f32 %v1163_v54, %v1527_v0  ;;  %v1175_v26 = vunpack.c.l.bf16 %v1380_v14 }
  0x2b   : > { %892 = vst.msk [vmem:[%s1554_s27 + $0xb0] sm:$0xff] %vm869_vm0, %v763_v50  ;;  %893 = vst.msk [vmem:[%s1554_s27 + $0xb8] sm:$0xff] %vm869_vm0, %v764_v51  ;;  %v505_v63 = vmul.f32 %v1164_v55, %v1527_v0  ;;  %v506_v1 = vmul.f32 %v1167_v56, %v1527_v0  ;;  %v507_v2 = vmul.f32 %v1168_v57, %v1527_v0  ;;  %v1176_v27 = vunpack.c.h.bf16 %v1380_v14  ;;  %v1384_v50 = vld [vmem:[%s1522_s19 + $0xa0] sm:$0xff]   ;;  %v1385_v51 = vld [vmem:[%s1522_s19 + $0xa8] sm:$0xff]  }
  0x2c   : > { %v508_v3 = vmul.f32 %v1171_v58, %v1527_v0  ;;  %v509_v4 = vmul.f32 %v1172_v59, %v1527_v0  ;;  %v637_v5 = vadd.f32 %v1536_v9, %v502_v60  ;;  %v638_v6 = vadd.f32 %v1536_v9, %v503_v61  ;;  %v1386_v56 = vld [vmem:[%s1522_s19 + $0xb0] sm:$0xff]   ;;  %v1387_v57 = vld [vmem:[%s1522_s19 + $0xb8] sm:$0xff]  }
  0x2d   : > { %v639_v7 = vadd.f32 %v1536_v9, %v504_v62  ;;  %v640_v8 = vadd.f32 %v1536_v9, %v505_v63  ;;  %v641_v10 = vadd.f32 %v1536_v9, %v506_v1  ;;  %v642_v11 = vadd.f32 %v1536_v9, %v507_v2 }
  0x2e   : > { %v643_v12 = vadd.f32 %v1536_v9, %v508_v3  ;;  %v644_v13 = vadd.f32 %v1536_v9, %v509_v4  ;;  %v765_v16 = vmax.f32 %v637_v5, 0.0  ;;  %v766_v17 = vmax.f32 %v638_v6, 0.0 }
  0x2f   : > { %v767_v18 = vmax.f32 %v639_v7, 0.0  ;;  %v768_v19 = vmax.f32 %v640_v8, 0.0  ;;  %v769_v22 = vmax.f32 %v641_v10, 0.0  ;;  %v770_v23 = vmax.f32 %v642_v11, 0.0 }
  0x30   : > { %v771_v24 = vmax.f32 %v643_v12, 0.0  ;;  %v772_v25 = vmax.f32 %v644_v13, 0.0  ;;  %894 = vst.msk [vmem:[%s1554_s27 + $0xc0] sm:$0xff] %vm869_vm0, %v765_v16  ;;  %895 = vst.msk [vmem:[%s1554_s27 + $0xc8] sm:$0xff] %vm869_vm0, %v766_v17  ;;  %v1179_v28 = vunpack.c.l.bf16 %v1381_v15  ;;  %v1180_v29 = vunpack.c.h.bf16 %v1381_v15 }
  0x31   : > { %896 = vst.msk [vmem:[%s1554_s27 + $0xd0] sm:$0xff] %vm869_vm0, %v767_v18  ;;  %897 = vst.msk [vmem:[%s1554_s27 + $0xd8] sm:$0xff] %vm869_vm0, %v768_v19  ;;  %v1183_v30 = vunpack.c.l.bf16 %v1382_v20  ;;  %v1184_v31 = vunpack.c.h.bf16 %v1382_v20  ;;  %v1187_v32 = vunpack.c.l.bf16 %v1383_v21  ;;  %v1188_v33 = vunpack.c.h.bf16 %v1383_v21 }
  0x32   : > { %898 = vst.msk [vmem:[%s1554_s27 + $0xe0] sm:$0xff] %vm869_vm0, %v769_v22  ;;  %899 = vst.msk [vmem:[%s1554_s27 + $0xe8] sm:$0xff] %vm869_vm0, %v770_v23  ;;  %v510_v34 = vmul.f32 %v1175_v26, %v1527_v0  ;;  %v511_v35 = vmul.f32 %v1176_v27, %v1527_v0  ;;  %v512_v36 = vmul.f32 %v1179_v28, %v1527_v0  ;;  %v1191_v62 = vunpack.c.l.bf16 %v1384_v50 }
  0x33   : > { %900 = vst.msk [vmem:[%s1554_s27 + $0xf0] sm:$0xff] %vm869_vm0, %v771_v24  ;;  %901 = vst.msk [vmem:[%s1554_s27 + $0xf8] sm:$0xff] %vm869_vm0, %v772_v25  ;;  %v513_v37 = vmul.f32 %v1180_v29, %v1527_v0  ;;  %v514_v38 = vmul.f32 %v1183_v30, %v1527_v0  ;;  %v515_v39 = vmul.f32 %v1184_v31, %v1527_v0  ;;  %v1192_v63 = vunpack.c.h.bf16 %v1384_v50  ;;  %v1388_v24 = vld [vmem:[%s1522_s19 + $0xc0] sm:$0xff]   ;;  %v1389_v25 = vld [vmem:[%s1522_s19 + $0xc8] sm:$0xff]  }
  0x34   : > { %v516_v40 = vmul.f32 %v1187_v32, %v1527_v0  ;;  %v517_v41 = vmul.f32 %v1188_v33, %v1527_v0  ;;  %v645_v42 = vadd.f32 %v1536_v9, %v510_v34  ;;  %v646_v43 = vadd.f32 %v1536_v9, %v511_v35  ;;  %v1390_v30 = vld [vmem:[%s1522_s19 + $0xd0] sm:$0xff]   ;;  %v1391_v31 = vld [vmem:[%s1522_s19 + $0xd8] sm:$0xff]  }
  0x35   : > { %v647_v44 = vadd.f32 %v1536_v9, %v512_v36  ;;  %v648_v45 = vadd.f32 %v1536_v9, %v513_v37  ;;  %v649_v46 = vadd.f32 %v1536_v9, %v514_v38  ;;  %v650_v47 = vadd.f32 %v1536_v9, %v515_v39 }
  0x36   : > { %v651_v48 = vadd.f32 %v1536_v9, %v516_v40  ;;  %v652_v49 = vadd.f32 %v1536_v9, %v517_v41  ;;  %v773_v52 = vmax.f32 %v645_v42, 0.0  ;;  %v774_v53 = vmax.f32 %v646_v43, 0.0 }
  0x37   : > { %v775_v54 = vmax.f32 %v647_v44, 0.0  ;;  %v776_v55 = vmax.f32 %v648_v45, 0.0  ;;  %v777_v58 = vmax.f32 %v649_v46, 0.0  ;;  %v778_v59 = vmax.f32 %v650_v47, 0.0 }
  0x38   : > { %v779_v60 = vmax.f32 %v651_v48, 0.0  ;;  %v780_v61 = vmax.f32 %v652_v49, 0.0  ;;  %902 = vst.msk [vmem:[%s1554_s27 + $0x100] sm:$0xff] %vm869_vm0, %v773_v52  ;;  %903 = vst.msk [vmem:[%s1554_s27 + $0x108] sm:$0xff] %vm869_vm0, %v774_v53  ;;  %v1195_v1 = vunpack.c.l.bf16 %v1385_v51  ;;  %v1196_v2 = vunpack.c.h.bf16 %v1385_v51 }
  0x39   : > { %904 = vst.msk [vmem:[%s1554_s27 + $0x110] sm:$0xff] %vm869_vm0, %v775_v54  ;;  %905 = vst.msk [vmem:[%s1554_s27 + $0x118] sm:$0xff] %vm869_vm0, %v776_v55  ;;  %v1199_v3 = vunpack.c.l.bf16 %v1386_v56  ;;  %v1200_v4 = vunpack.c.h.bf16 %v1386_v56  ;;  %v1203_v5 = vunpack.c.l.bf16 %v1387_v57  ;;  %v1204_v6 = vunpack.c.h.bf16 %v1387_v57 }
  0x3a   : > { %906 = vst.msk [vmem:[%s1554_s27 + $0x120] sm:$0xff] %vm869_vm0, %v777_v58  ;;  %907 = vst.msk [vmem:[%s1554_s27 + $0x128] sm:$0xff] %vm869_vm0, %v778_v59  ;;  %v518_v7 = vmul.f32 %v1191_v62, %v1527_v0  ;;  %v519_v8 = vmul.f32 %v1192_v63, %v1527_v0  ;;  %v520_v10 = vmul.f32 %v1195_v1, %v1527_v0  ;;  %v1207_v36 = vunpack.c.l.bf16 %v1388_v24 }
  0x3b   : > { %908 = vst.msk [vmem:[%s1554_s27 + $0x130] sm:$0xff] %vm869_vm0, %v779_v60  ;;  %909 = vst.msk [vmem:[%s1554_s27 + $0x138] sm:$0xff] %vm869_vm0, %v780_v61  ;;  %v521_v11 = vmul.f32 %v1196_v2, %v1527_v0  ;;  %v522_v12 = vmul.f32 %v1199_v3, %v1527_v0  ;;  %v523_v13 = vmul.f32 %v1200_v4, %v1527_v0  ;;  %v1208_v37 = vunpack.c.h.bf16 %v1388_v24  ;;  %v1392_v60 = vld [vmem:[%s1522_s19 + $0xe0] sm:$0xff]   ;;  %v1393_v61 = vld [vmem:[%s1522_s19 + $0xe8] sm:$0xff]  }
  0x3c   : > { %v524_v14 = vmul.f32 %v1203_v5, %v1527_v0  ;;  %v525_v15 = vmul.f32 %v1204_v6, %v1527_v0  ;;  %v653_v16 = vadd.f32 %v1536_v9, %v518_v7  ;;  %v654_v17 = vadd.f32 %v1536_v9, %v519_v8  ;;  %v1394_v3 = vld [vmem:[%s1522_s19 + $0xf0] sm:$0xff]   ;;  %v1395_v4 = vld [vmem:[%s1522_s19 + $0xf8] sm:$0xff]  }
  0x3d   : > { %v655_v18 = vadd.f32 %v1536_v9, %v520_v10  ;;  %v656_v19 = vadd.f32 %v1536_v9, %v521_v11  ;;  %v657_v20 = vadd.f32 %v1536_v9, %v522_v12  ;;  %v658_v21 = vadd.f32 %v1536_v9, %v523_v13 }
  0x3e   : > { %v659_v22 = vadd.f32 %v1536_v9, %v524_v14  ;;  %v660_v23 = vadd.f32 %v1536_v9, %v525_v15  ;;  %v781_v26 = vmax.f32 %v653_v16, 0.0  ;;  %v782_v27 = vmax.f32 %v654_v17, 0.0 }
  0x3f   : > { %v783_v28 = vmax.f32 %v655_v18, 0.0  ;;  %v784_v29 = vmax.f32 %v656_v19, 0.0  ;;  %v785_v32 = vmax.f32 %v657_v20, 0.0  ;;  %v786_v33 = vmax.f32 %v658_v21, 0.0 }
  0x40   : > { %v787_v34 = vmax.f32 %v659_v22, 0.0  ;;  %v788_v35 = vmax.f32 %v660_v23, 0.0  ;;  %910 = vst.msk [vmem:[%s1554_s27 + $0x140] sm:$0xff] %vm869_vm0, %v781_v26  ;;  %911 = vst.msk [vmem:[%s1554_s27 + $0x148] sm:$0xff] %vm869_vm0, %v782_v27  ;;  %v1211_v38 = vunpack.c.l.bf16 %v1389_v25  ;;  %v1212_v39 = vunpack.c.h.bf16 %v1389_v25 }
  0x41   : > { %912 = vst.msk [vmem:[%s1554_s27 + $0x150] sm:$0xff] %vm869_vm0, %v783_v28  ;;  %913 = vst.msk [vmem:[%s1554_s27 + $0x158] sm:$0xff] %vm869_vm0, %v784_v29  ;;  %v1215_v40 = vunpack.c.l.bf16 %v1390_v30  ;;  %v1216_v41 = vunpack.c.h.bf16 %v1390_v30  ;;  %v1219_v42 = vunpack.c.l.bf16 %v1391_v31  ;;  %v1220_v43 = vunpack.c.h.bf16 %v1391_v31 }
  0x42   : > { %914 = vst.msk [vmem:[%s1554_s27 + $0x160] sm:$0xff] %vm869_vm0, %v785_v32  ;;  %915 = vst.msk [vmem:[%s1554_s27 + $0x168] sm:$0xff] %vm869_vm0, %v786_v33  ;;  %v526_v44 = vmul.f32 %v1207_v36, %v1527_v0  ;;  %v527_v45 = vmul.f32 %v1208_v37, %v1527_v0  ;;  %v528_v46 = vmul.f32 %v1211_v38, %v1527_v0  ;;  %v1223_v10 = vunpack.c.l.bf16 %v1392_v60 }
  0x43   : > { %916 = vst.msk [vmem:[%s1554_s27 + $0x170] sm:$0xff] %vm869_vm0, %v787_v34  ;;  %917 = vst.msk [vmem:[%s1554_s27 + $0x178] sm:$0xff] %vm869_vm0, %v788_v35  ;;  %v529_v47 = vmul.f32 %v1212_v39, %v1527_v0  ;;  %v530_v48 = vmul.f32 %v1215_v40, %v1527_v0  ;;  %v531_v49 = vmul.f32 %v1216_v41, %v1527_v0  ;;  %v1224_v11 = vunpack.c.h.bf16 %v1392_v60  ;;  %v1396_v34 = vld [vmem:[%s1522_s19 + $0x100] sm:$0xff]   ;;  %v1397_v35 = vld [vmem:[%s1522_s19 + $0x108] sm:$0xff]  }
  0x44   : > { %v532_v50 = vmul.f32 %v1219_v42, %v1527_v0  ;;  %v533_v51 = vmul.f32 %v1220_v43, %v1527_v0  ;;  %v661_v52 = vadd.f32 %v1536_v9, %v526_v44  ;;  %v662_v53 = vadd.f32 %v1536_v9, %v527_v45  ;;  %v1398_v40 = vld [vmem:[%s1522_s19 + $0x110] sm:$0xff]   ;;  %v1399_v41 = vld [vmem:[%s1522_s19 + $0x118] sm:$0xff]  }
  0x45   : > { %v663_v54 = vadd.f32 %v1536_v9, %v528_v46  ;;  %v664_v55 = vadd.f32 %v1536_v9, %v529_v47  ;;  %v665_v56 = vadd.f32 %v1536_v9, %v530_v48  ;;  %v666_v57 = vadd.f32 %v1536_v9, %v531_v49 }
  0x46   : > { %v667_v58 = vadd.f32 %v1536_v9, %v532_v50  ;;  %v668_v59 = vadd.f32 %v1536_v9, %v533_v51  ;;  %v789_v62 = vmax.f32 %v661_v52, 0.0  ;;  %v790_v63 = vmax.f32 %v662_v53, 0.0 }
  0x47   : > { %v791_v1 = vmax.f32 %v663_v54, 0.0  ;;  %v792_v2 = vmax.f32 %v664_v55, 0.0  ;;  %v793_v5 = vmax.f32 %v665_v56, 0.0  ;;  %v794_v6 = vmax.f32 %v666_v57, 0.0 }
  0x48   : > { %v795_v7 = vmax.f32 %v667_v58, 0.0  ;;  %v796_v8 = vmax.f32 %v668_v59, 0.0  ;;  %918 = vst.msk [vmem:[%s1554_s27 + $0x180] sm:$0xff] %vm869_vm0, %v789_v62  ;;  %919 = vst.msk [vmem:[%s1554_s27 + $0x188] sm:$0xff] %vm869_vm0, %v790_v63  ;;  %v1227_v12 = vunpack.c.l.bf16 %v1393_v61  ;;  %v1228_v13 = vunpack.c.h.bf16 %v1393_v61 }
  0x49   : > { %920 = vst.msk [vmem:[%s1554_s27 + $0x190] sm:$0xff] %vm869_vm0, %v791_v1  ;;  %921 = vst.msk [vmem:[%s1554_s27 + $0x198] sm:$0xff] %vm869_vm0, %v792_v2  ;;  %v1231_v14 = vunpack.c.l.bf16 %v1394_v3  ;;  %v1232_v15 = vunpack.c.h.bf16 %v1394_v3  ;;  %v1235_v16 = vunpack.c.l.bf16 %v1395_v4  ;;  %v1236_v17 = vunpack.c.h.bf16 %v1395_v4 }
  0x4a   : > { %922 = vst.msk [vmem:[%s1554_s27 + $0x1a0] sm:$0xff] %vm869_vm0, %v793_v5  ;;  %923 = vst.msk [vmem:[%s1554_s27 + $0x1a8] sm:$0xff] %vm869_vm0, %v794_v6  ;;  %v534_v18 = vmul.f32 %v1223_v10, %v1527_v0  ;;  %v535_v19 = vmul.f32 %v1224_v11, %v1527_v0  ;;  %v536_v20 = vmul.f32 %v1227_v12, %v1527_v0  ;;  %v1239_v46 = vunpack.c.l.bf16 %v1396_v34 }
  0x4b   : > { %924 = vst.msk [vmem:[%s1554_s27 + $0x1b0] sm:$0xff] %vm869_vm0, %v795_v7  ;;  %925 = vst.msk [vmem:[%s1554_s27 + $0x1b8] sm:$0xff] %vm869_vm0, %v796_v8  ;;  %v537_v21 = vmul.f32 %v1228_v13, %v1527_v0  ;;  %v538_v22 = vmul.f32 %v1231_v14, %v1527_v0  ;;  %v539_v23 = vmul.f32 %v1232_v15, %v1527_v0  ;;  %v1240_v47 = vunpack.c.h.bf16 %v1396_v34  ;;  %v1400_v7 = vld [vmem:[%s1522_s19 + $0x120] sm:$0xff]   ;;  %v1401_v8 = vld [vmem:[%s1522_s19 + $0x128] sm:$0xff]  }
  0x4c   : > { %v540_v24 = vmul.f32 %v1235_v16, %v1527_v0  ;;  %v541_v25 = vmul.f32 %v1236_v17, %v1527_v0  ;;  %v669_v26 = vadd.f32 %v1536_v9, %v534_v18  ;;  %v670_v27 = vadd.f32 %v1536_v9, %v535_v19  ;;  %v1402_v14 = vld [vmem:[%s1522_s19 + $0x130] sm:$0xff]   ;;  %v1403_v15 = vld [vmem:[%s1522_s19 + $0x138] sm:$0xff]  }
  0x4d   : > { %v671_v28 = vadd.f32 %v1536_v9, %v536_v20  ;;  %v672_v29 = vadd.f32 %v1536_v9, %v537_v21  ;;  %v673_v30 = vadd.f32 %v1536_v9, %v538_v22  ;;  %v674_v31 = vadd.f32 %v1536_v9, %v539_v23 }
  0x4e   : > { %v675_v32 = vadd.f32 %v1536_v9, %v540_v24  ;;  %v676_v33 = vadd.f32 %v1536_v9, %v541_v25  ;;  %v797_v36 = vmax.f32 %v669_v26, 0.0  ;;  %v798_v37 = vmax.f32 %v670_v27, 0.0 }
  0x4f   : > { %v799_v38 = vmax.f32 %v671_v28, 0.0  ;;  %v800_v39 = vmax.f32 %v672_v29, 0.0  ;;  %v801_v42 = vmax.f32 %v673_v30, 0.0  ;;  %v802_v43 = vmax.f32 %v674_v31, 0.0 }
  0x50   : > { %v803_v44 = vmax.f32 %v675_v32, 0.0  ;;  %v804_v45 = vmax.f32 %v676_v33, 0.0  ;;  %926 = vst.msk [vmem:[%s1554_s27 + $0x1c0] sm:$0xff] %vm869_vm0, %v797_v36  ;;  %927 = vst.msk [vmem:[%s1554_s27 + $0x1c8] sm:$0xff] %vm869_vm0, %v798_v37  ;;  %v1243_v48 = vunpack.c.l.bf16 %v1397_v35  ;;  %v1244_v49 = vunpack.c.h.bf16 %v1397_v35 }
  0x51   : > { %928 = vst.msk [vmem:[%s1554_s27 + $0x1d0] sm:$0xff] %vm869_vm0, %v799_v38  ;;  %929 = vst.msk [vmem:[%s1554_s27 + $0x1d8] sm:$0xff] %vm869_vm0, %v800_v39  ;;  %v1247_v50 = vunpack.c.l.bf16 %v1398_v40  ;;  %v1248_v51 = vunpack.c.h.bf16 %v1398_v40  ;;  %v1251_v52 = vunpack.c.l.bf16 %v1399_v41  ;;  %v1252_v53 = vunpack.c.h.bf16 %v1399_v41 }
  0x52   : > { %930 = vst.msk [vmem:[%s1554_s27 + $0x1e0] sm:$0xff] %vm869_vm0, %v801_v42  ;;  %931 = vst.msk [vmem:[%s1554_s27 + $0x1e8] sm:$0xff] %vm869_vm0, %v802_v43  ;;  %v542_v54 = vmul.f32 %v1239_v46, %v1527_v0  ;;  %v543_v55 = vmul.f32 %v1240_v47, %v1527_v0  ;;  %v544_v56 = vmul.f32 %v1243_v48, %v1527_v0  ;;  %v1255_v20 = vunpack.c.l.bf16 %v1400_v7 }
  0x53   : > { %932 = vst.msk [vmem:[%s1554_s27 + $0x1f0] sm:$0xff] %vm869_vm0, %v803_v44  ;;  %933 = vst.msk [vmem:[%s1554_s27 + $0x1f8] sm:$0xff] %vm869_vm0, %v804_v45  ;;  %v545_v57 = vmul.f32 %v1244_v49, %v1527_v0  ;;  %v546_v58 = vmul.f32 %v1247_v50, %v1527_v0  ;;  %v547_v59 = vmul.f32 %v1248_v51, %v1527_v0  ;;  %v1256_v21 = vunpack.c.h.bf16 %v1400_v7  ;;  %v1404_v44 = vld [vmem:[%s1522_s19 + $0x140] sm:$0xff]   ;;  %v1405_v45 = vld [vmem:[%s1522_s19 + $0x148] sm:$0xff]  }
  0x54   : > { %v548_v60 = vmul.f32 %v1251_v52, %v1527_v0  ;;  %v549_v61 = vmul.f32 %v1252_v53, %v1527_v0  ;;  %v677_v62 = vadd.f32 %v1536_v9, %v542_v54  ;;  %v678_v63 = vadd.f32 %v1536_v9, %v543_v55  ;;  %v1406_v50 = vld [vmem:[%s1522_s19 + $0x150] sm:$0xff]   ;;  %v1407_v51 = vld [vmem:[%s1522_s19 + $0x158] sm:$0xff]  }
  0x55   : > { %v679_v1 = vadd.f32 %v1536_v9, %v544_v56  ;;  %v680_v2 = vadd.f32 %v1536_v9, %v545_v57  ;;  %v681_v3 = vadd.f32 %v1536_v9, %v546_v58  ;;  %v682_v4 = vadd.f32 %v1536_v9, %v547_v59 }
  0x56   : > { %v683_v5 = vadd.f32 %v1536_v9, %v548_v60  ;;  %v684_v6 = vadd.f32 %v1536_v9, %v549_v61  ;;  %v805_v10 = vmax.f32 %v677_v62, 0.0  ;;  %v806_v11 = vmax.f32 %v678_v63, 0.0 }
  0x57   : > { %v807_v12 = vmax.f32 %v679_v1, 0.0  ;;  %v808_v13 = vmax.f32 %v680_v2, 0.0  ;;  %v809_v16 = vmax.f32 %v681_v3, 0.0  ;;  %v810_v17 = vmax.f32 %v682_v4, 0.0 }
  0x58   : > { %v811_v18 = vmax.f32 %v683_v5, 0.0  ;;  %v812_v19 = vmax.f32 %v684_v6, 0.0  ;;  %934 = vst.msk [vmem:[%s1554_s27 + $0x200] sm:$0xff] %vm869_vm0, %v805_v10  ;;  %935 = vst.msk [vmem:[%s1554_s27 + $0x208] sm:$0xff] %vm869_vm0, %v806_v11  ;;  %v1259_v22 = vunpack.c.l.bf16 %v1401_v8  ;;  %v1260_v23 = vunpack.c.h.bf16 %v1401_v8 }
  0x59   : > { %936 = vst.msk [vmem:[%s1554_s27 + $0x210] sm:$0xff] %vm869_vm0, %v807_v12  ;;  %937 = vst.msk [vmem:[%s1554_s27 + $0x218] sm:$0xff] %vm869_vm0, %v808_v13  ;;  %v1263_v24 = vunpack.c.l.bf16 %v1402_v14  ;;  %v1264_v25 = vunpack.c.h.bf16 %v1402_v14  ;;  %v1267_v26 = vunpack.c.l.bf16 %v1403_v15  ;;  %v1268_v27 = vunpack.c.h.bf16 %v1403_v15 }
  0x5a   : > { %938 = vst.msk [vmem:[%s1554_s27 + $0x220] sm:$0xff] %vm869_vm0, %v809_v16  ;;  %939 = vst.msk [vmem:[%s1554_s27 + $0x228] sm:$0xff] %vm869_vm0, %v810_v17  ;;  %v550_v28 = vmul.f32 %v1255_v20, %v1527_v0  ;;  %v551_v29 = vmul.f32 %v1256_v21, %v1527_v0  ;;  %v552_v30 = vmul.f32 %v1259_v22, %v1527_v0  ;;  %v1271_v56 = vunpack.c.l.bf16 %v1404_v44 }
  0x5b   : > { %940 = vst.msk [vmem:[%s1554_s27 + $0x230] sm:$0xff] %vm869_vm0, %v811_v18  ;;  %941 = vst.msk [vmem:[%s1554_s27 + $0x238] sm:$0xff] %vm869_vm0, %v812_v19  ;;  %v553_v31 = vmul.f32 %v1260_v23, %v1527_v0  ;;  %v554_v32 = vmul.f32 %v1263_v24, %v1527_v0  ;;  %v555_v33 = vmul.f32 %v1264_v25, %v1527_v0  ;;  %v1272_v57 = vunpack.c.h.bf16 %v1404_v44  ;;  %v1408_v18 = vld [vmem:[%s1522_s19 + $0x160] sm:$0xff]   ;;  %v1409_v19 = vld [vmem:[%s1522_s19 + $0x168] sm:$0xff]  }
  0x5c   : > { %v556_v34 = vmul.f32 %v1267_v26, %v1527_v0  ;;  %v557_v35 = vmul.f32 %v1268_v27, %v1527_v0  ;;  %v685_v36 = vadd.f32 %v1536_v9, %v550_v28  ;;  %v686_v37 = vadd.f32 %v1536_v9, %v551_v29  ;;  %v1410_v24 = vld [vmem:[%s1522_s19 + $0x170] sm:$0xff]   ;;  %v1411_v25 = vld [vmem:[%s1522_s19 + $0x178] sm:$0xff]  }
  0x5d   : > { %v687_v38 = vadd.f32 %v1536_v9, %v552_v30  ;;  %v688_v39 = vadd.f32 %v1536_v9, %v553_v31  ;;  %v689_v40 = vadd.f32 %v1536_v9, %v554_v32  ;;  %v690_v41 = vadd.f32 %v1536_v9, %v555_v33 }
  0x5e   : > { %v691_v42 = vadd.f32 %v1536_v9, %v556_v34  ;;  %v692_v43 = vadd.f32 %v1536_v9, %v557_v35  ;;  %v813_v46 = vmax.f32 %v685_v36, 0.0  ;;  %v814_v47 = vmax.f32 %v686_v37, 0.0 }
  0x5f   : > { %v815_v48 = vmax.f32 %v687_v38, 0.0  ;;  %v816_v49 = vmax.f32 %v688_v39, 0.0  ;;  %v817_v52 = vmax.f32 %v689_v40, 0.0  ;;  %v818_v53 = vmax.f32 %v690_v41, 0.0 }
  0x60   : > { %v819_v54 = vmax.f32 %v691_v42, 0.0  ;;  %v820_v55 = vmax.f32 %v692_v43, 0.0  ;;  %942 = vst.msk [vmem:[%s1554_s27 + $0x240] sm:$0xff] %vm869_vm0, %v813_v46  ;;  %943 = vst.msk [vmem:[%s1554_s27 + $0x248] sm:$0xff] %vm869_vm0, %v814_v47  ;;  %v1275_v58 = vunpack.c.l.bf16 %v1405_v45  ;;  %v1276_v59 = vunpack.c.h.bf16 %v1405_v45 }
  0x61   : > { %944 = vst.msk [vmem:[%s1554_s27 + $0x250] sm:$0xff] %vm869_vm0, %v815_v48  ;;  %945 = vst.msk [vmem:[%s1554_s27 + $0x258] sm:$0xff] %vm869_vm0, %v816_v49  ;;  %v1279_v60 = vunpack.c.l.bf16 %v1406_v50  ;;  %v1280_v61 = vunpack.c.h.bf16 %v1406_v50  ;;  %v1283_v62 = vunpack.c.l.bf16 %v1407_v51  ;;  %v1284_v63 = vunpack.c.h.bf16 %v1407_v51 }
  0x62   : > { %946 = vst.msk [vmem:[%s1554_s27 + $0x260] sm:$0xff] %vm869_vm0, %v817_v52  ;;  %947 = vst.msk [vmem:[%s1554_s27 + $0x268] sm:$0xff] %vm869_vm0, %v818_v53  ;;  %v558_v1 = vmul.f32 %v1271_v56, %v1527_v0  ;;  %v559_v2 = vmul.f32 %v1272_v57, %v1527_v0  ;;  %v560_v3 = vmul.f32 %v1275_v58, %v1527_v0  ;;  %v1287_v30 = vunpack.c.l.bf16 %v1408_v18  ;;  %v1412_v53 = vld [vmem:[%s1522_s19 + $0x180] sm:$0xff]  }
  0x63   : > { %948 = vst.msk [vmem:[%s1554_s27 + $0x270] sm:$0xff] %vm869_vm0, %v819_v54  ;;  %949 = vst.msk [vmem:[%s1554_s27 + $0x278] sm:$0xff] %vm869_vm0, %v820_v55  ;;  %v561_v4 = vmul.f32 %v1276_v59, %v1527_v0  ;;  %v562_v5 = vmul.f32 %v1279_v60, %v1527_v0  ;;  %v563_v6 = vmul.f32 %v1280_v61, %v1527_v0  ;;  %v1288_v31 = vunpack.c.h.bf16 %v1408_v18  ;;  %v1413_v54 = vld [vmem:[%s1522_s19 + $0x188] sm:$0xff]   ;;  %v1414_v59 = vld [vmem:[%s1522_s19 + $0x190] sm:$0xff]  }
  0x64   : > { %v564_v7 = vmul.f32 %v1283_v62, %v1527_v0  ;;  %v565_v8 = vmul.f32 %v1284_v63, %v1527_v0  ;;  %v693_v10 = vadd.f32 %v1536_v9, %v558_v1  ;;  %v694_v11 = vadd.f32 %v1536_v9, %v559_v2  ;;  %v1415_v60 = vld [vmem:[%s1522_s19 + $0x198] sm:$0xff]  }
  0x65   : > { %v695_v12 = vadd.f32 %v1536_v9, %v560_v3  ;;  %v696_v13 = vadd.f32 %v1536_v9, %v561_v4  ;;  %v697_v14 = vadd.f32 %v1536_v9, %v562_v5  ;;  %v698_v15 = vadd.f32 %v1536_v9, %v563_v6 }
  0x66   : > { %v699_v16 = vadd.f32 %v1536_v9, %v564_v7  ;;  %v700_v17 = vadd.f32 %v1536_v9, %v565_v8  ;;  %v821_v20 = vmax.f32 %v693_v10, 0.0  ;;  %v822_v21 = vmax.f32 %v694_v11, 0.0  ;;  %v1979_v10 = vld [vmem:[%s2136_s1] ss:$0 sm:$0xff] }
  0x67   : > { %v823_v22 = vmax.f32 %v695_v12, 0.0  ;;  %v824_v23 = vmax.f32 %v696_v13, 0.0  ;;  %v825_v26 = vmax.f32 %v697_v14, 0.0  ;;  %v826_v27 = vmax.f32 %v698_v15, 0.0 }
  0x68   : > { %v827_v28 = vmax.f32 %v699_v16, 0.0  ;;  %v828_v29 = vmax.f32 %v700_v17, 0.0  ;;  %950 = vst.msk [vmem:[%s1554_s27 + $0x280] sm:$0xff] %vm869_vm0, %v821_v20  ;;  %951 = vst.msk [vmem:[%s1554_s27 + $0x288] sm:$0xff] %vm869_vm0, %v822_v21  ;;  %v1291_v32 = vunpack.c.l.bf16 %v1409_v19  ;;  %v1292_v33 = vunpack.c.h.bf16 %v1409_v19  ;;  %v1992_v19 = vld [vmem:[%s2137_s2] ss:$0 sm:$0xff] }
  0x69   : > { %952 = vst.msk [vmem:[%s1554_s27 + $0x290] sm:$0xff] %vm869_vm0, %v823_v22  ;;  %953 = vst.msk [vmem:[%s1554_s27 + $0x298] sm:$0xff] %vm869_vm0, %v824_v23  ;;  %v1295_v34 = vunpack.c.l.bf16 %v1410_v24  ;;  %v1296_v35 = vunpack.c.h.bf16 %v1410_v24  ;;  %v1299_v36 = vunpack.c.l.bf16 %v1411_v25  ;;  %v1300_v37 = vunpack.c.h.bf16 %v1411_v25 }
  0x6a   : > { %954 = vst.msk [vmem:[%s1554_s27 + $0x2a0] sm:$0xff] %vm869_vm0, %v825_v26  ;;  %955 = vst.msk [vmem:[%s1554_s27 + $0x2a8] sm:$0xff] %vm869_vm0, %v826_v27  ;;  %v566_v38 = vmul.f32 %v1287_v30, %v1527_v0  ;;  %v567_v39 = vmul.f32 %v1288_v31, %v1527_v0  ;;  %v568_v40 = vmul.f32 %v1291_v32, %v1527_v0  ;;  %v1304_v2 = vunpack.c.h.bf16 %v1412_v53 }
  0x6b   : > { %956 = vst.msk [vmem:[%s1554_s27 + $0x2b0] sm:$0xff] %vm869_vm0, %v827_v28  ;;  %957 = vst.msk [vmem:[%s1554_s27 + $0x2b8] sm:$0xff] %vm869_vm0, %v828_v29  ;;  %v569_v41 = vmul.f32 %v1292_v33, %v1527_v0  ;;  %v570_v42 = vmul.f32 %v1295_v34, %v1527_v0  ;;  %v571_v43 = vmul.f32 %v1296_v35, %v1527_v0  ;;  %v1307_v3 = vunpack.c.l.bf16 %v1413_v54  ;;  %v1416_v28 = vld [vmem:[%s1522_s19 + $0x1a0] sm:$0xff]   ;;  %v1417_v29 = vld [vmem:[%s1522_s19 + $0x1a8] sm:$0xff]  }
  0x6c   : > { %v572_v44 = vmul.f32 %v1299_v36, %v1527_v0  ;;  %v573_v45 = vmul.f32 %v1300_v37, %v1527_v0  ;;  %v701_v46 = vadd.f32 %v1536_v9, %v566_v38  ;;  %v702_v47 = vadd.f32 %v1536_v9, %v567_v39  ;;  %v1418_v34 = vld [vmem:[%s1522_s19 + $0x1b0] sm:$0xff]   ;;  %v1419_v35 = vld [vmem:[%s1522_s19 + $0x1b8] sm:$0xff]  }
  0x6d   : > { %v703_v48 = vadd.f32 %v1536_v9, %v568_v40  ;;  %v704_v49 = vadd.f32 %v1536_v9, %v569_v41  ;;  %v705_v50 = vadd.f32 %v1536_v9, %v570_v42  ;;  %v706_v51 = vadd.f32 %v1536_v9, %v571_v43 }
  0x6e   : > { %v707_v52 = vadd.f32 %v1536_v9, %v572_v44  ;;  %v708_v0 = vadd.f32 %v1536_v9, %v573_v45  ;;  %v829_v55 = vmax.f32 %v701_v46, 0.0  ;;  %v830_v56 = vmax.f32 %v702_v47, 0.0 }
  0x6f   : > { %v831_v57 = vmax.f32 %v703_v48, 0.0  ;;  %v832_v58 = vmax.f32 %v704_v49, 0.0  ;;  %v833_v61 = vmax.f32 %v705_v50, 0.0  ;;  %v834_v62 = vmax.f32 %v706_v51, 0.0 }
  0x70   : > { %v835_v63 = vmax.f32 %v707_v52, 0.0  ;;  %v836_v1 = vmax.f32 %v708_v0, 0.0  ;;  %958 = vst.msk [vmem:[%s1554_s27 + $0x2c0] sm:$0xff] %vm869_vm0, %v829_v55  ;;  %959 = vst.msk [vmem:[%s1554_s27 + $0x2c8] sm:$0xff] %vm869_vm0, %v830_v56  ;;  %v1303_v9 = vunpack.c.l.bf16 %v1412_v53  ;;  %v1308_v4 = vunpack.c.h.bf16 %v1413_v54 }
  0x71   : > { %960 = vst.msk [vmem:[%s1554_s27 + $0x2d0] sm:$0xff] %vm869_vm0, %v831_v57  ;;  %961 = vst.msk [vmem:[%s1554_s27 + $0x2d8] sm:$0xff] %vm869_vm0, %v832_v58  ;;  %v1311_v5 = vunpack.c.l.bf16 %v1414_v59  ;;  %v1312_v6 = vunpack.c.h.bf16 %v1414_v59  ;;  %v1315_v7 = vunpack.c.l.bf16 %v1415_v60  ;;  %v1316_v8 = vunpack.c.h.bf16 %v1415_v60 }
  0x72   : > { %962 = vst.msk [vmem:[%s1554_s27 + $0x2e0] sm:$0xff] %vm869_vm0, %v833_v61  ;;  %963 = vst.msk [vmem:[%s1554_s27 + $0x2e8] sm:$0xff] %vm869_vm0, %v834_v62  ;;  %v574_v11 = vmul.f32 %v1979_v10, %v1303_v9  ;;  %v575_v12 = vmul.f32 %v1979_v10, %v1304_v2  ;;  %v576_v13 = vmul.f32 %v1979_v10, %v1307_v3  ;;  %v1319_v40 = vunpack.c.l.bf16 %v1416_v28 }
  0x73   : > { %964 = vst.msk [vmem:[%s1554_s27 + $0x2f0] sm:$0xff] %vm869_vm0, %v835_v63  ;;  %965 = vst.msk [vmem:[%s1554_s27 + $0x2f8] sm:$0xff] %vm869_vm0, %v836_v1  ;;  %v577_v14 = vmul.f32 %v1979_v10, %v1308_v4  ;;  %v578_v15 = vmul.f32 %v1979_v10, %v1311_v5  ;;  %v579_v16 = vmul.f32 %v1979_v10, %v1312_v6  ;;  %v1320_v41 = vunpack.c.h.bf16 %v1416_v28  ;;  %v1420_v63 = vld [vmem:[%s1522_s19 + $0x1c0] sm:$0xff]   ;;  %v1421_v1 = vld [vmem:[%s1522_s19 + $0x1c8] sm:$0xff]  }
  0x74   : > { %v580_v17 = vmul.f32 %v1979_v10, %v1315_v7  ;;  %v581_v18 = vmul.f32 %v1979_v10, %v1316_v8  ;;  %v709_v20 = vadd.f32 %v1992_v19, %v574_v11  ;;  %v710_v21 = vadd.f32 %v1992_v19, %v575_v12  ;;  %v1422_v5 = vld [vmem:[%s1522_s19 + $0x1d0] sm:$0xff]   ;;  %v1423_v6 = vld [vmem:[%s1522_s19 + $0x1d8] sm:$0xff]  }
  0x75   : > { %v711_v22 = vadd.f32 %v1992_v19, %v576_v13  ;;  %v712_v23 = vadd.f32 %v1992_v19, %v577_v14  ;;  %v713_v24 = vadd.f32 %v1992_v19, %v578_v15  ;;  %v714_v25 = vadd.f32 %v1992_v19, %v579_v16 }
  0x76   : > { %v715_v26 = vadd.f32 %v1992_v19, %v580_v17  ;;  %v716_v27 = vadd.f32 %v1992_v19, %v581_v18  ;;  %v837_v30 = vmax.f32 %v709_v20, 0.0  ;;  %v838_v31 = vmax.f32 %v710_v21, 0.0 }
  0x77   : > { %v839_v32 = vmax.f32 %v711_v22, 0.0  ;;  %v840_v33 = vmax.f32 %v712_v23, 0.0  ;;  %v841_v36 = vmax.f32 %v713_v24, 0.0  ;;  %v842_v37 = vmax.f32 %v714_v25, 0.0 }
  0x78   : > { %v843_v38 = vmax.f32 %v715_v26, 0.0  ;;  %v844_v39 = vmax.f32 %v716_v27, 0.0  ;;  %966 = vst.msk [vmem:[%s1554_s27 + $0x300] sm:$0xff] %vm869_vm0, %v837_v30  ;;  %967 = vst.msk [vmem:[%s1554_s27 + $0x308] sm:$0xff] %vm869_vm0, %v838_v31  ;;  %v1323_v42 = vunpack.c.l.bf16 %v1417_v29  ;;  %v1324_v43 = vunpack.c.h.bf16 %v1417_v29 }
  0x79   : > { %968 = vst.msk [vmem:[%s1554_s27 + $0x310] sm:$0xff] %vm869_vm0, %v839_v32  ;;  %969 = vst.msk [vmem:[%s1554_s27 + $0x318] sm:$0xff] %vm869_vm0, %v840_v33  ;;  %v1327_v44 = vunpack.c.l.bf16 %v1418_v34  ;;  %v1328_v45 = vunpack.c.h.bf16 %v1418_v34  ;;  %v1331_v46 = vunpack.c.l.bf16 %v1419_v35  ;;  %v1332_v47 = vunpack.c.h.bf16 %v1419_v35 }
  0x7a   : > { %970 = vst.msk [vmem:[%s1554_s27 + $0x320] sm:$0xff] %vm869_vm0, %v841_v36  ;;  %971 = vst.msk [vmem:[%s1554_s27 + $0x328] sm:$0xff] %vm869_vm0, %v842_v37  ;;  %v582_v48 = vmul.f32 %v1979_v10, %v1319_v40  ;;  %v583_v49 = vmul.f32 %v1979_v10, %v1320_v41  ;;  %v584_v50 = vmul.f32 %v1979_v10, %v1323_v42  ;;  %v1335_v13 = vunpack.c.l.bf16 %v1420_v63 }
  0x7b   : > { %972 = vst.msk [vmem:[%s1554_s27 + $0x330] sm:$0xff] %vm869_vm0, %v843_v38  ;;  %973 = vst.msk [vmem:[%s1554_s27 + $0x338] sm:$0xff] %vm869_vm0, %v844_v39  ;;  %v585_v51 = vmul.f32 %v1979_v10, %v1324_v43  ;;  %v586_v52 = vmul.f32 %v1979_v10, %v1327_v44  ;;  %v587_v0 = vmul.f32 %v1979_v10, %v1328_v45  ;;  %v1336_v14 = vunpack.c.h.bf16 %v1420_v63  ;;  %v1424_v38 = vld [vmem:[%s1522_s19 + $0x1e0] sm:$0xff]   ;;  %v1425_v39 = vld [vmem:[%s1522_s19 + $0x1e8] sm:$0xff]  }
  0x7c   : > { %v588_v53 = vmul.f32 %v1979_v10, %v1331_v46  ;;  %v589_v54 = vmul.f32 %v1979_v10, %v1332_v47  ;;  %v717_v55 = vadd.f32 %v1992_v19, %v582_v48  ;;  %v718_v56 = vadd.f32 %v1992_v19, %v583_v49  ;;  %v1426_v44 = vld [vmem:[%s1522_s19 + $0x1f0] sm:$0xff]   ;;  %v1427_v45 = vld [vmem:[%s1522_s19 + $0x1f8] sm:$0xff]  }
  0x7d   : > { %v719_v57 = vadd.f32 %v1992_v19, %v584_v50  ;;  %v720_v58 = vadd.f32 %v1992_v19, %v585_v51  ;;  %v721_v59 = vadd.f32 %v1992_v19, %v586_v52  ;;  %v722_v60 = vadd.f32 %v1992_v19, %v587_v0 }
  0x7e   : > { %v723_v61 = vadd.f32 %v1992_v19, %v588_v53  ;;  %v724_v62 = vadd.f32 %v1992_v19, %v589_v54  ;;  %v845_v9 = vmax.f32 %v717_v55, 0.0  ;;  %v846_v2 = vmax.f32 %v718_v56, 0.0 }
  0x7f   : > { %v847_v3 = vmax.f32 %v719_v57, 0.0  ;;  %v848_v4 = vmax.f32 %v720_v58, 0.0  ;;  %v849_v7 = vmax.f32 %v721_v59, 0.0  ;;  %v850_v8 = vmax.f32 %v722_v60, 0.0 }
  0x80   : > { %v851_v11 = vmax.f32 %v723_v61, 0.0  ;;  %v852_v12 = vmax.f32 %v724_v62, 0.0  ;;  %974 = vst.msk [vmem:[%s1554_s27 + $0x340] sm:$0xff] %vm869_vm0, %v845_v9  ;;  %975 = vst.msk [vmem:[%s1554_s27 + $0x348] sm:$0xff] %vm869_vm0, %v846_v2  ;;  %v1339_v15 = vunpack.c.l.bf16 %v1421_v1  ;;  %v1340_v16 = vunpack.c.h.bf16 %v1421_v1 }
  0x81   : > { %976 = vst.msk [vmem:[%s1554_s27 + $0x350] sm:$0xff] %vm869_vm0, %v847_v3  ;;  %977 = vst.msk [vmem:[%s1554_s27 + $0x358] sm:$0xff] %vm869_vm0, %v848_v4  ;;  %v1343_v17 = vunpack.c.l.bf16 %v1422_v5  ;;  %v1344_v18 = vunpack.c.h.bf16 %v1422_v5  ;;  %v1347_v20 = vunpack.c.l.bf16 %v1423_v6  ;;  %v1348_v21 = vunpack.c.h.bf16 %v1423_v6 }
  0x82   : > { %978 = vst.msk [vmem:[%s1554_s27 + $0x360] sm:$0xff] %vm869_vm0, %v849_v7  ;;  %979 = vst.msk [vmem:[%s1554_s27 + $0x368] sm:$0xff] %vm869_vm0, %v850_v8  ;;  %v590_v22 = vmul.f32 %v1979_v10, %v1335_v13  ;;  %v591_v23 = vmul.f32 %v1979_v10, %v1336_v14  ;;  %v592_v24 = vmul.f32 %v1979_v10, %v1339_v15  ;;  %v1351_v50 = vunpack.c.l.bf16 %v1424_v38 }
  0x83   : > { %980 = vst.msk [vmem:[%s1554_s27 + $0x370] sm:$0xff] %vm869_vm0, %v851_v11  ;;  %981 = vst.msk [vmem:[%s1554_s27 + $0x378] sm:$0xff] %vm869_vm0, %v852_v12  ;;  %v593_v25 = vmul.f32 %v1979_v10, %v1340_v16  ;;  %v594_v26 = vmul.f32 %v1979_v10, %v1343_v17  ;;  %v595_v27 = vmul.f32 %v1979_v10, %v1344_v18  ;;  %v1352_v51 = vunpack.c.h.bf16 %v1424_v38 }
  0x84   : > { %v596_v28 = vmul.f32 %v1979_v10, %v1347_v20  ;;  %v597_v29 = vmul.f32 %v1979_v10, %v1348_v21  ;;  %v725_v30 = vadd.f32 %v1992_v19, %v590_v22  ;;  %v726_v31 = vadd.f32 %v1992_v19, %v591_v23 }
  0x85   : > { %v727_v32 = vadd.f32 %v1992_v19, %v592_v24  ;;  %v728_v33 = vadd.f32 %v1992_v19, %v593_v25  ;;  %v729_v34 = vadd.f32 %v1992_v19, %v594_v26  ;;  %v730_v35 = vadd.f32 %v1992_v19, %v595_v27 }
  0x86   : > { %v731_v36 = vadd.f32 %v1992_v19, %v596_v28  ;;  %v732_v37 = vadd.f32 %v1992_v19, %v597_v29  ;;  %v853_v40 = vmax.f32 %v725_v30, 0.0  ;;  %v854_v41 = vmax.f32 %v726_v31, 0.0 }
  0x87   : > { %v855_v42 = vmax.f32 %v727_v32, 0.0  ;;  %v856_v43 = vmax.f32 %v728_v33, 0.0  ;;  %v857_v46 = vmax.f32 %v729_v34, 0.0  ;;  %v858_v47 = vmax.f32 %v730_v35, 0.0 }
  0x88   : > { %v859_v48 = vmax.f32 %v731_v36, 0.0  ;;  %v860_v49 = vmax.f32 %v732_v37, 0.0  ;;  %982 = vst.msk [vmem:[%s1554_s27 + $0x380] sm:$0xff] %vm869_vm0, %v853_v40  ;;  %983 = vst.msk [vmem:[%s1554_s27 + $0x388] sm:$0xff] %vm869_vm0, %v854_v41  ;;  %v1355_v52 = vunpack.c.l.bf16 %v1425_v39  ;;  %v1356_v0 = vunpack.c.h.bf16 %v1425_v39 }
  0x89   : > { %984 = vst.msk [vmem:[%s1554_s27 + $0x390] sm:$0xff] %vm869_vm0, %v855_v42  ;;  %985 = vst.msk [vmem:[%s1554_s27 + $0x398] sm:$0xff] %vm869_vm0, %v856_v43  ;;  %v1359_v53 = vunpack.c.l.bf16 %v1426_v44  ;;  %v1360_v54 = vunpack.c.h.bf16 %v1426_v44  ;;  %v1363_v55 = vunpack.c.l.bf16 %v1427_v45  ;;  %v1364_v56 = vunpack.c.h.bf16 %v1427_v45 }
  0x8a   : > { %986 = vst.msk [vmem:[%s1554_s27 + $0x3a0] sm:$0xff] %vm869_vm0, %v857_v46  ;;  %987 = vst.msk [vmem:[%s1554_s27 + $0x3a8] sm:$0xff] %vm869_vm0, %v858_v47  ;;  %v598_v57 = vmul.f32 %v1979_v10, %v1351_v50  ;;  %v599_v58 = vmul.f32 %v1979_v10, %v1352_v51  ;;  %v600_v59 = vmul.f32 %v1979_v10, %v1355_v52 }
  0x8b   : > { %988 = vst.msk [vmem:[%s1554_s27 + $0x3b0] sm:$0xff] %vm869_vm0, %v859_v48  ;;  %989 = vst.msk [vmem:[%s1554_s27 + $0x3b8] sm:$0xff] %vm869_vm0, %v860_v49  ;;  %v601_v60 = vmul.f32 %v1979_v10, %v1356_v0  ;;  %v602_v61 = vmul.f32 %v1979_v10, %v1359_v53  ;;  %v603_v62 = vmul.f32 %v1979_v10, %v1360_v54 }
  0x8c   : > { %v604_v63 = vmul.f32 %v1979_v10, %v1363_v55  ;;  %v605_v1 = vmul.f32 %v1979_v10, %v1364_v56  ;;  %v733_v9 = vadd.f32 %v1992_v19, %v598_v57  ;;  %v734_v2 = vadd.f32 %v1992_v19, %v599_v58 }
  0x8d   : > { %v735_v3 = vadd.f32 %v1992_v19, %v600_v59  ;;  %v736_v4 = vadd.f32 %v1992_v19, %v601_v60  ;;  %v737_v5 = vadd.f32 %v1992_v19, %v602_v61  ;;  %v738_v6 = vadd.f32 %v1992_v19, %v603_v62 }
  0x8e   : > { %v739_v10 = vadd.f32 %v1992_v19, %v604_v63  ;;  %v740_v7 = vadd.f32 %v1992_v19, %v605_v1  ;;  %v861_v8 = vmax.f32 %v733_v9, 0.0  ;;  %v862_v11 = vmax.f32 %v734_v2, 0.0 }
  0x8f   : > { %v863_v12 = vmax.f32 %v735_v3, 0.0  ;;  %v864_v13 = vmax.f32 %v736_v4, 0.0  ;;  %v865_v14 = vmax.f32 %v737_v5, 0.0  ;;  %v866_v15 = vmax.f32 %v738_v6, 0.0 }
  0x90   : > { %v867_v16 = vmax.f32 %v739_v10, 0.0  ;;  %v868_v17 = vmax.f32 %v740_v7, 0.0  ;;  %990 = vst.msk [vmem:[%s1554_s27 + $0x3c0] sm:$0xff] %vm869_vm0, %v861_v8  ;;  %991 = vst.msk [vmem:[%s1554_s27 + $0x3c8] sm:$0xff] %vm869_vm0, %v862_v11 }
  0x91   : > { %992 = vst.msk [vmem:[%s1554_s27 + $0x3d0] sm:$0xff] %vm869_vm0, %v863_v12  ;;  %993 = vst.msk [vmem:[%s1554_s27 + $0x3d8] sm:$0xff] %vm869_vm0, %v864_v13 }
  0x92   : > { %994 = vst.msk [vmem:[%s1554_s27 + $0x3e0] sm:$0xff] %vm869_vm0, %v865_v14  ;;  %995 = vst.msk [vmem:[%s1554_s27 + $0x3e8] sm:$0xff] %vm869_vm0, %v866_v15 }
  0x93   : > { %996 = vst.msk [vmem:[%s1554_s27 + $0x3f0] sm:$0xff] %vm869_vm0, %v867_v16  ;;  %997 = vst.msk [vmem:[%s1554_s27 + $0x3f8] sm:$0xff] %vm869_vm0, %v868_v17 }
  0x94 PF: > { %s13_s14 = sadd.s32 1, %s1476_s14   ;;  %s2139_s12 = smov %s1472_s13 }
  0x95   : > { %p10_p5 = scmp.ge.s32.totalorder %s13_s14, 4   ;;  %s2140_s13 = smov %s2142_s15 }
  0x97   :  { %12 = sbr.rel (!%p10_p5) target bundleno = 2 (0x2), region = 62 }

// kernel: up_conv_forward.2
= control target key start
LH: loop header
LB: loop body
LE: loop exit
PB: predicated region body
PF: predicated region fallthrough
CT: control target
= control target key end

     0   :  { %s6581_s12 = smov 0   ;;  %s6583_s13 = smov 0   ;;  %s9404_s0 = inlined_call_operand.vmem [shape: bf16[2,2,10,18,4], index: 0, kind: input, shape index: {}]   ;;  %s9405_s1 = inlined_call_operand.vmem [shape: bf16[16,32], index: 1, kind: input, shape index: {}]   ;;  %s9406_s2 = inlined_call_operand.vmem [shape: bf16[2,32,32,8], index: 2, kind: output, shape index: {0}]   ;;  %s9407_s3 = inlined_call_operand.vmem [shape: f32[2,2,2,8], index: 3, kind: output, shape index: {1}]  }
   0x1   :  { %s6585_s14 = smov 0   ;;  %s6587_s15 = smov 0  }
   0x2   :  { %s6589_s16 = smov 0  }
   0x3 LB: > { %s23_s17 = sadd.s32 1, %s6543_s14  ;;  %s26_s18 = sadd.s32 1, %s6547_s15  ;;  %s6551_s16 = sphi %s6589_s16, %s14_s16   ;;  %s6547_s15 = sphi %s6587_s15, %s9578_s15   ;;  %s6543_s14 = sphi %s6585_s14, %s9577_s14   ;;  %s6539_s13 = sphi %s6583_s13, %s9576_s13   ;;  %s6535_s12 = sphi %s6581_s12, %s9575_s12  }
   0x4   : > { %p24_p0 = scmp.ge.s32.totalorder %s23_s17, 2  ;;  %p6196_p1 = scmp.ge.s32.totalorder %s6551_s16, 1 }
   0x5   : > { %p162_p2 = scmp.lt.s32.totalorder %s6551_s16, 5 }
   0x6   : > { %s9580_s17 = smov (%p24_p0, %s23_s17), 0  ;;  %s9582_s18 = smov (!%p24_p0, %s26_s18), %s6547_s15 }
   0x7   : > { %p163_p3 = pnand %p6196_p1, %p162_p2  ;;  %p28_p4 = scmp.ge.s32.totalorder %s9582_s18, 2 }
   0x9   : > { %s9584_s18 = smov (%p28_p4, %s9582_s18), 0  ;;  %166 = sbr.rel (%p163_p3) target bundleno = 803 (0x323), region = 28 }
   0xe   : > { %p203_p5 = scmp.lt.s32.totalorder %s6539_s13, 1  ;;  %p205_p6 = scmp.lt.s32.totalorder %s6535_s12, 1  ;;  %vm334_vm0 = vsmask.f32 7424  ;;  %vm591_vm1 = vcmask 31744   ;;  %vm628_vm2 = vcmask 64512  }
   0xf   : > { %s6553_s27 = smov 8   ;;  %s6554_s28 = smov 12   ;;  %vm665_vm3 = vcmask 97280   ;;  %vm2005_vm4 = vcmask 130048   ;;  %vm5647_vm6 = vcmask 60416   ;;  %vm6042_vm10 = vcmask 1040384  }
  0x10   : > { %s9586_s13 = smov (!%p203_p5, %s6539_s13), 1  ;;  %s6555_s29 = smov 4   ;;  %vm6044_vm11 = vcmask 58368  }
  0x11   : > { %s6617_s19 = scalar_select %p205_p6, %s6535_s12, 1 }
  0x12   : > { %s6443_s20 = smul.u32 60, %s9586_s13  ;;  %s6558_s5 = smov 112  }
  0x13   : > { %s6442_s21 = smul.u32 30, %s6617_s19  ;;  %s6559_s6 = smov 104  }
  0x14   : > { %s6560_s7 = smov 120   ;;  %s6198_s8 = sshll.u32 %s6535_s12, 4 }
  0x15   : > { %s209_s22 = sadd.s32 %s6443_s20, %s6442_s21  ;;  %p7622_p7 = scmp.lt.s32.totalorder %s6198_s8, 31 }
  0x16   : > { %s6197_s23 = sshll.u32 %s209_s22, 2  ;;  %s6200_s11 = sshll.u32 %s9586_s13, 7 }
  0x17   : > { %s6624_s26 = scalar_lea.vmem %s9404_s0, %s6197_s23  ;;  %s9588_s8 = smov (!%p7622_p7, %s6198_s8), 31 }
  0x18   : > { %v6627_v0 = vld [vmem:[%s6624_s26 + $0x18] sm:$0xff]   ;;  %v6630_v1 = vld [vmem:[%s6624_s26 + $0x14] ss:$0 sps:$4 sm:$0x11]   ;;  %v6633_v2 = vld [vmem:[%s6624_s26 + $0xc] sm:$0xff]   ;;  %s6199_s10 = sshll.u32 %s9588_s8, 2 }
  0x19   : > { %509 = vrot.lane.b32.xlu0 %v6627_v0, %s6553_s27  ;;  %507 = vrot.lane.b32.xlu1 %v6630_v1, %s6553_s27  ;;  %v6640_v3 = vld [vmem:[%s6624_s26 + $0x20] ss:$0 sps:$4 sm:$0x11]   ;;  %v364_v4 = vshrl.u32 %v6627_v0, 16  ;;  %v366_v5 = vshll.u32 %v6627_v0, 16  ;;  %v350_v16 = vshrl.u32 %v6633_v2, 16  ;;  %s7716_s12 = sadd.s32 %s6200_s11, %s6199_s10 }
  0x1a   : > { %v6645_v6 = vld [vmem:[%s6624_s26 + $0x8] ss:$0 sps:$4 sm:$0x11]   ;;  %v6648_v7 = vld [vmem:[%s6624_s26] sm:$0xff]   ;;  %v371_v9 = vshll.u32 %v6640_v3, 16  ;;  %v352_v20 = vshll.u32 %v6633_v2, 16 }
  0x1b   : > { %v368_v8 = vrot.slane %v366_v5, 1  ;;  %v347_v10 = vshrl.u32 %v6645_v6, 16  ;;  %v336_v11 = vshrl.u32 %v6648_v7, 16  ;;  %v338_v12 = vshll.u32 %v6648_v7, 16  ;;  %v6659_v17 = vld [vmem:[%s6624_s26 + $0x24] sm:$0xff]   ;;  %v6670_v26 = vld [vmem:[%s6624_s26 + $0x30] sm:$0xff]  }
  0x1c   : > { %v343_v13 = vshll.u32 %v6645_v6, 16  ;;  %v373_v15 = vrot.slane %v371_v9, 1  ;;  %v357_v21 = vshll.u32 %v6630_v1, 16  ;;  %v361_v23 = vshrl.u32 %v6630_v1, 16  ;;  %v6693_v46 = vld [vmem:[%s6624_s26 + $0x6c] sm:$0xff]   ;;  %v6704_v52 = vld [vmem:[%s6624_s26 + $0x3c] sm:$0xff]  }
  0x1d   : > { %505 = vrot.lane.b32.xlu0 %v6633_v2, %s6553_s27  ;;  %v369_v14 = vor.u32 %v368_v8, %v364_v4  ;;  %v340_v18 = vrot.slane %v338_v12, 1  ;;  %v6666_v24 = vld [vmem:[%s6624_s26 + $0x2c] ss:$0 sps:$4 sm:$0x11]   ;;  %v380_v25 = vshll.u32 %v6659_v17, 16  ;;  %v354_v28 = vrot.slane %v352_v20, 1 }
  0x1e   : > { %v345_v19 = vrot.slane %v343_v13, 1  ;;  %v378_v29 = vshrl.u32 %v6659_v17, 16  ;;  %v359_v30 = vrot.slane %v357_v21, 1  ;;  %v385_v32 = vshll.u32 %v6666_v24, 16  ;;  %v6716_v59 = vld [vmem:[%s6624_s26 + $0x48] sm:$0xff]   ;;  %v6512_v8 = vld [vmem:[%s9405_s1] sm:$0xff]  }
  0x1f   : > { %v374_v22 = vsel %vm334_vm0, %v369_v14, %v373_v15  ;;  %v341_v27 = vor.u32 %v340_v18, %v336_v11  ;;  %v382_v31 = vrot.slane %v380_v25, 1  ;;  %v394_v33 = vshll.u32 %v6670_v26, 16  ;;  %v6679_v36 = vld [vmem:[%s6624_s26 + $0x38] ss:$0 sps:$4 sm:$0x11]   ;;  %6418 = vmatprep.subr.bf16.mxu0 %v6512_v8  ;;  %6440 = vmatprep.subr.bf16.mxu1 %v6512_v8  ;;  %v6760_v25 = vld [vmem:[%s6624_s26 + $0x60] sm:$0xff]  }
  0x20   : > { %559 = vrot.lane.b32.xlu1 %v374_v22, %s6554_s28  ;;  %v355_v35 = vor.u32 %v354_v28, %v350_v16  ;;  %v387_v37 = vrot.slane %v385_v32, 1  ;;  %v392_v38 = vshrl.u32 %v6670_v26, 16  ;;  %v399_v42 = vshll.u32 %v6679_v36, 16  ;;  %v6698_v49 = vld [vmem:[%s6624_s26 + $0x74] ss:$0 sps:$4 sm:$0x11]   ;;  %6419 = vmatpush3.bf16.msra.mxu0 %v6512_v8 }
  0x21   : > { %463 = vrot.lane.b32.xlu0 %v347_v10, %s6555_s29  ;;  %v346_v34 = vsel %vm334_vm0, %v341_v27, %v345_v19  ;;  %v383_v40 = vor.u32 %v382_v31, %v378_v29  ;;  %v396_v41 = vrot.slane %v394_v33, 1  ;;  %v544_v48 = vshll.u32 %v6693_v46, 16  ;;  %v6712_v57 = vld [vmem:[%s6624_s26 + $0x44] ss:$0 sps:$4 sm:$0x11]   ;;  %6441 = vmatpush3.bf16.msra.mxu1 %v6512_v8  ;;  %v6749_v20 = vld [vmem:[%s6624_s26 + $0x54] sm:$0xff]  }
  0x22   : > { %v360_v39 = vsel %vm334_vm0, %v355_v35, %v359_v30  ;;  %v401_v45 = vrot.slane %v399_v42, 1  ;;  %v542_v50 = vshrl.u32 %v6693_v46, 16  ;;  %v549_v53 = vshll.u32 %v6698_v49, 16  ;;  %v6726_v4 = vld [vmem:[%s6624_s26 + $0x50] ss:$0 sps:$4 sm:$0x11]  }
  0x23   : > { %v388_v43 = vsel %vm334_vm0, %v383_v40, %v387_v37  ;;  %v397_v44 = vor.u32 %v396_v41, %v392_v38  ;;  %v546_v51 = vrot.slane %v544_v48, 1  ;;  %v375_v56 = vshrl.u32 %v6640_v3, 16  ;;  %v6767_v30 = vld [vmem:[%s6624_s26 + $0x68] ss:$0 sps:$4 sm:$0x11]   ;;  %s6201_s20 = sshll.u32 %s7716_s12, 2 }
  0x24   : > { %461 = vrot.lane.b32.xlu1 %v346_v34, %s6555_s29  ;;  %v551_v55 = vrot.slane %v549_v53, 1  ;;  %v408_v58 = vshll.u32 %v6704_v52, 16  ;;  %v413_v61 = vshll.u32 %v6712_v57, 16  ;;  %v406_v62 = vshrl.u32 %v6704_v52, 16  ;;  %s7772_s23 = scalar_lea.vmem %s9406_s2, %s6201_s20  ;;  %s6202_s24 = sshll.u32 %s9586_s13, 1 }
  0x25   : > { %557 = vrot.lane.b32.xlu0 %v361_v23, %s6554_s28  ;;  %v402_v47 = vsel %vm334_vm0, %v397_v44, %v401_v45  ;;  %v547_v54 = vor.u32 %v546_v51, %v542_v50  ;;  %v422_v5 = vshll.u32 %v6716_v59, 16  ;;  %v389_v9 = vshrl.u32 %v6666_v24, 16  ;;  %s228_s25 = sadd.s32 %s6202_s24, %s6617_s19 }
  0x26   : > { %v410_v63 = vrot.slane %v408_v58, 1  ;;  %v415_v10 = vrot.slane %v413_v61, 1  ;;  %v420_v12 = vshrl.u32 %v6716_v59, 16  ;;  %v427_v14 = vshll.u32 %v6726_v4, 16 }
  0x27   : > { %v6719_v60 = vsel %vm334_vm0, %v547_v54, %v551_v55  ;;  %v424_v13 = vrot.slane %v422_v5, 1  ;;  %v403_v21 = vshrl.u32 %v6679_v36, 16  ;;  %v434_v27 = vshrl.u32 %v6749_v20, 16 }
  0x28   : > { %555 = vrot.lane.b32.xlu1 %v360_v39, %s6554_s28  ;;  %v411_v11 = vor.u32 %v410_v63, %v406_v62  ;;  %v429_v18 = vrot.slane %v427_v14, 1  ;;  %v450_v31 = vshll.u32 %v6760_v25, 16  ;;  %v417_v32 = vshrl.u32 %v6712_v57, 16 }
  0x29   : > { %465 = vrot.lane.b32.xlu0 %v360_v39, %s6555_s29  ;;  %v425_v16 = vor.u32 %v424_v13, %v420_v12  ;;  %v448_v33 = vshrl.u32 %v6760_v25, 16  ;;  %v455_v38 = vshll.u32 %v6767_v30, 16  ;;  %v459_v45 = vshrl.u32 %v6767_v30, 16 }
  0x2a   : > { %v416_v15 = vsel %vm334_vm0, %v411_v11, %v415_v10  ;;  %v452_v37 = vrot.slane %v450_v31, 1  ;;  %v6556_v54 = vmov 1966171168  }
  0x2b   : > { %v430_v19 = vsel %vm334_vm0, %v425_v16, %v429_v18  ;;  %v457_v41 = vrot.slane %v455_v38, 1  ;;  %v722_v55 = vunpack.c.l.s4 %v6556_v54 }
  0x2c   : > { %473 = vrot.lane.b32.xlu1 %v388_v43, %s6555_s29  ;;  %v453_v40 = vor.u32 %v452_v37, %v448_v33 }
  0x2d   : > { %517 = vrot.lane.b32.xlu0 %v6670_v26, %s6553_s27 }
  0x2e   : > { %v458_v42 = vsel %vm334_vm0, %v453_v40, %v457_v41 }
  0x30   : > { %469 = vrot.lane.b32.xlu1 %v374_v22, %s6555_s29  ;;  %v6756_v22 = vld [vmem:[%s6624_s26 + $0x5c] ss:$0 sps:$4 sm:$0x11]   ;;  %s6203_s26 = sshll.u32 %s228_s25, 1 }
  0x31   : > { %567 = vrot.lane.b32.xlu0 %v402_v47, %s6554_s28  ;;  %v441_v29 = vshll.u32 %v6756_v22, 16  ;;  %v445_v44 = vshrl.u32 %v6756_v22, 16 }
  0x33   : > { %v443_v35 = vrot.slane %v441_v29, 1 }
  0x34   : > { %513 = vrot.lane.b32.xlu1 %v6659_v17, %s6553_s27 }
  0x35   : > { %563 = vrot.lane.b32.xlu0 %v388_v43, %s6554_s28  ;;  %v431_v43 = vshrl.u32 %v6726_v4, 16 }
  0x38   : > { %467 = vrot.lane.b32.xlu1 %v361_v23, %s6555_s29  ;;  %v436_v23 = vshll.u32 %v6749_v20, 16 }
  0x39   : > { %471 = vrot.lane.b32.xlu0 %v375_v56, %s6555_s29 }
  0x3a   : > { %v438_v28 = vrot.slane %v436_v23, 1 }
  0x3c   : > { %511 = vrot.lane.b32.xlu1 %v6640_v3, %s6553_s27  ;;  %v439_v34 = vor.u32 %v438_v28, %v434_v27 }
  0x3d   : > { %515 = vrot.lane.b32.xlu0 %v6666_v24, %s6553_s27 }
  0x3e   : > { %v444_v39 = vsel %vm334_vm0, %v439_v34, %v443_v35 }
  0x40   : > { %561 = vrot.lane.b32.xlu1 %v375_v56, %s6554_s28  ;;  %v724_v56 = vlaneseq }
  0x41   : > { %565 = vrot.lane.b32.xlu0 %v389_v9, %s6554_s28 }
  0x42   : > { %v6814_v61 = vshrl.u32 %v724_v56, 7 }
  0x44   : > { %481 = vrot.lane.b32.xlu1 %v416_v15, %s6555_s29 }
  0x45   : > { %525 = vrot.lane.b32.xlu0 %v6716_v59, %s6553_s27 }
  0x48   : > { %575 = vrot.lane.b32.xlu1 %v430_v19, %s6554_s28 }
  0x49   : > { %477 = vrot.lane.b32.xlu0 %v402_v47, %s6555_s29  ;;  %v553_v47 = vshrl.u32 %v6698_v49, 16 }
  0x4c   : > { %521 = vrot.lane.b32.xlu1 %v6704_v52, %s6553_s27 }
  0x4d   : > { %475 = vrot.lane.b32.xlu0 %v389_v9, %s6555_s29 }
  0x50   : > { %571 = vrot.lane.b32.xlu1 %v416_v15, %s6554_s28 }
  0x51   : > { %479 = vrot.lane.b32.xlu0 %v403_v21, %s6555_s29 }
  0x54   : > { %519 = vrot.lane.b32.xlu1 %v6679_v36, %s6553_s27 }
  0x55   : > { %523 = vrot.lane.b32.xlu0 %v6712_v57, %s6553_s27 }
  0x58   : > { %569 = vrot.lane.b32.xlu1 %v403_v21, %s6554_s28 }
  0x59   : > { %573 = vrot.lane.b32.xlu0 %v417_v32, %s6554_s28 }
  0x5c   : > { %489 = vrot.lane.b32.xlu1 %v444_v39, %s6555_s29 }
  0x5d   : > { %533 = vrot.lane.b32.xlu0 %v6760_v25, %s6553_s27 }
  0x60   : > { %485 = vrot.lane.b32.xlu1 %v430_v19, %s6555_s29 }
  0x61   : > { %583 = vrot.lane.b32.xlu0 %v458_v42, %s6554_s28 }
  0x64   : > { %529 = vrot.lane.b32.xlu1 %v6749_v20, %s6553_s27 }
  0x65   : > { %579 = vrot.lane.b32.xlu0 %v444_v39, %s6554_s28 }
  0x68   : > { %483 = vrot.lane.b32.xlu1 %v417_v32, %s6555_s29 }
  0x69   : > { %487 = vrot.lane.b32.xlu0 %v431_v43, %s6555_s29 }
  0x6c   : > { %527 = vrot.lane.b32.xlu1 %v6726_v4, %s6553_s27 }
  0x6d   : > { %531 = vrot.lane.b32.xlu0 %v6756_v22, %s6553_s27 }
  0x70   : > { %577 = vrot.lane.b32.xlu1 %v431_v43, %s6554_s28 }
  0x71   : > { %581 = vrot.lane.b32.xlu0 %v445_v44, %s6554_s28 }
  0x74   : > { %493 = vrot.lane.b32.xlu1 %v458_v42, %s6555_s29 }
  0x75   : > { %491 = vrot.lane.b32.xlu0 %v445_v44, %s6555_s29 }
  0x78   : > { %537 = vrot.lane.b32.xlu1 %v6693_v46, %s6553_s27 }
  0x79   : > { %535 = vrot.lane.b32.xlu0 %v6767_v30, %s6553_s27 }
  0x7c   : > { %587 = vrot.lane.b32.xlu1 %v6719_v60, %s6554_s28  ;;  %v723_v60 = vunpack.c.0.s8 %v722_v55 }
  0x7d   : > { %585 = vrot.lane.b32.xlu0 %v459_v45, %s6554_s28 }
  0x7e   : > { %v6821_v5 = vsub.s32 %v723_v60, %v6814_v61 }
  0x80   : > { %495 = vrot.lane.b32.xlu1 %v459_v45, %s6555_s29  ;;  %s230_s29 = scalar_lea.vmem %s9407_s3, %s6203_s26 }
  0x81   : > { %539 = vrot.lane.b32.xlu0 %v6698_v49, %s6553_s27 }
  0x84   : > { %589 = vrot.lane.b32.xlu1 %v553_v47, %s6554_s28 }
  0x8b   : > { %v510_v46 = vpop.permute.xlu0 %509  ;;  %v508_v48 = vpop.permute.xlu1 %507 }
  0x8f   : > { %v506_v50 = vpop.permute.xlu0 %505 }
  0x92   : > { %v560_v51 = vpop.permute.xlu1 %559 }
  0x93   : > { %v464_v53 = vpop.permute.xlu0 %463 }
  0x94   : > { %v595_v49 = vsel %vm591_vm1, %v6645_v6, %v464_v53 }
  0x95   : > { %v632_v6 = vsel %vm628_vm2, %v595_v49, %v508_v48 }
  0x96   : > { %v462_v58 = vpop.permute.xlu1 %461 }
  0x97   : > { %v558_v62 = vpop.permute.xlu0 %557  ;;  %v593_v63 = vsel %vm591_vm1, %v6648_v7, %v462_v58 }
  0x98   : > { %v630_v8 = vsel %vm628_vm2, %v593_v63, %v506_v50  ;;  %v669_v16 = vsel %vm665_vm3, %v632_v6, %v558_v62 }
  0x9a   : > { %v556_v9 = vpop.permute.xlu1 %555 }
  0x9b   : > { %v466_v10 = vpop.permute.xlu0 %465  ;;  %v667_v11 = vsel %vm665_vm3, %v630_v8, %v556_v9 }
  0x9c   : > { %v597_v12 = vsel %vm591_vm1, %v6633_v2, %v466_v10  ;;  %v720_v13 = vcombine.high %v667_v11, %v667_v11  ;;  %v727_v7 = vrot.slane %v667_v11, %v6821_v5  ;;  %v775_v2 = vrot.slane %v669_v16, %v6821_v5 }
  0x9d   : > { %v634_v14 = vsel %vm628_vm2, %v597_v12, %v510_v46 }
  0x9e   : > { %v671_v15 = vsel %vm665_vm3, %v634_v14, %v560_v51  ;;  %v734_v18 = vrot.slane %v720_v13, %v6821_v5  ;;  %v735_v19 = vcombine.high %v727_v7, %v727_v7  ;;  %v474_v23 = vpop.permute.xlu1 %473  ;;  %v743_v38 = vrot.slane %v727_v7, %v6821_v5 }
  0x9f   : > { %v783_v21 = vcombine.high %v671_v15, %v671_v15  ;;  %v518_v27 = vpop.permute.xlu0 %517  ;;  %v790_v28 = vrot.slane %v671_v15, %v6821_v5  ;;  %v605_v37 = vsel %vm591_vm1, %v6659_v17, %v474_v23  ;;  %v6844_v40 = vrot.slane %v775_v2, %v6821_v5 }
  0xa0   : > { %v736_v32 = vcombine.high %v734_v18, %v734_v18  ;;  %v757_v33 = vrot.slane %v735_v19, %v6821_v5  ;;  %v6847_v41 = vrot.slane %v734_v18, %v6821_v5  ;;  %v642_v17 = vsel %vm628_vm2, %v605_v37, %v518_v27 }
  0xa1   : > { %v797_v29 = vrot.slane %v783_v21, %v6821_v5  ;;  %v798_v31 = vcombine.high %v790_v28, %v790_v28  ;;  %v6841_v39 = vrot.slane %v790_v28, %v6821_v5 }
  0xa2   : > { %v470_v34 = vpop.permute.xlu1 %469  ;;  %v6851_v44 = vrot.slane %v736_v32, %v6821_v5  ;;  %v1519_v45 = vcombine.low %v743_v38, %v757_v33  ;;  %v6260_v50 = vcombine.high %v743_v38, %v757_v33 }
  0xa3   : > { %v568_v35 = vpop.permute.xlu0 %567  ;;  %v799_v42 = vcombine.high %v797_v29, %v797_v29  ;;  %v820_v43 = vrot.slane %v798_v31, %v6821_v5  ;;  %v601_v47 = vsel %vm591_vm1, %v6627_v0, %v470_v34  ;;  %v6857_v51 = vrot.slane %v797_v29, %v6821_v5 }
  0xa4   : > { %v679_v53 = vsel %vm665_vm3, %v642_v17, %v568_v35  ;;  %v6863_v55 = vcombine.high %v6841_v39, %v6841_v39  ;;  %v1305_v63 = vunpack.i.h.s16 %v6841_v39  ;;  %v1521_v7 = vcombine.low %v6847_v41, %v6851_v44 }
  0xa5   : > { %v909_v56 = vcombine.high %v679_v53, %v679_v53  ;;  %v916_v58 = vrot.slane %v679_v53, %v6821_v5  ;;  %v6868_v0 = vrot.slane %v799_v42, %v6821_v5  ;;  %v6870_v62 = vcombine.high %v820_v43, %v820_v43 }
  0xa6   : > { %v514_v46 = vpop.permute.xlu1 %513  ;;  %v6261_v14 = vcombine.high %v6847_v41, %v6851_v44  ;;  %v1307_v6 = vunpack.i.h.s16 %v820_v43  ;;  %v829_v16 = vcombine.high %v6857_v51, %v6857_v51  ;;  %v6224_v18 = vpack.i.b16 %v6841_v39, %v6844_v40 }
  0xa7   : > { %v564_v48 = vpop.permute.xlu0 %563  ;;  %v638_v54 = vsel %vm628_vm2, %v601_v47, %v514_v46  ;;  %v923_v8 = vrot.slane %v909_v56, %v6821_v5  ;;  %v924_v9 = vcombine.high %v916_v58, %v916_v58  ;;  %v6875_v10 = vrot.slane %v916_v58, %v6821_v5 }
  0xa8   : > { %v675_v60 = vsel %vm665_vm3, %v638_v54, %v564_v48  ;;  %v1309_v23 = vunpack.i.h.s16 %v6863_v55  ;;  %v1311_v27 = vunpack.i.h.s16 %v6870_v62  ;;  %v1313_v28 = vunpack.i.h.s16 %v6857_v51 }
  0xa9   : > { %v846_v49 = vcombine.high %v675_v60, %v675_v60  ;;  %v853_v11 = vrot.slane %v675_v60, %v6821_v5  ;;  %v925_v19 = vcombine.high %v923_v8, %v923_v8  ;;  %v946_v21 = vrot.slane %v924_v9, %v6821_v5 }
  0xaa   : > { %v468_v12 = vpop.permute.xlu1 %467  ;;  %v1315_v2 = vunpack.i.h.s16 %v6868_v0  ;;  %v6225_v29 = vpack.i.b16 %v820_v43, %v1305_v63  ;;  %v6893_v31 = vrot.slane %v923_v8, %v6821_v5  ;;  %v6897_v32 = vcombine.high %v6875_v10, %v6875_v10 }
  0xab   : > { %v472_v13 = vpop.permute.xlu0 %471  ;;  %v860_v15 = vrot.slane %v846_v49, %v6821_v5  ;;  %v861_v33 = vcombine.high %v853_v11, %v853_v11  ;;  %v6900_v37 = vpack.i.b16 %v6863_v55, %v1307_v6  ;;  %v1339_v38 = vunpack.i.h.s16 %v6875_v10 }
  0xac   : > { %v1529_v42 = vrot.slane %v1519_v45, %v6821_v5  ;;  %v6905_v43 = vrot.slane %v925_v19, %v6821_v5  ;;  %v6907_v44 = vcombine.high %v946_v21, %v946_v21  ;;  %v1341_v17 = vunpack.i.h.s16 %v946_v21 }
  0xad   : > { %v862_v41 = vcombine.high %v860_v15, %v860_v15  ;;  %v1536_v47 = vrot.slane %v6260_v50, %v6821_v5  ;;  %v6228_v46 = vpack.i.b16 %v6857_v51, %v1311_v27  ;;  %v6912_v48 = vrot.slane %v853_v11, %v6821_v5 }
  0xae   : > { %v512_v34 = vpop.permute.xlu1 %511  ;;  %v876_v53 = vrot.slane %v860_v15, %v6821_v5  ;;  %v1543_v54 = vrot.slane %v1521_v7, %v6821_v5  ;;  %v6918_v45 = vcombine.high %v6893_v31, %v6893_v31  ;;  %v1343_v55 = vunpack.i.h.s16 %v6897_v32 }
  0xaf   : > { %v516_v35 = vpop.permute.xlu0 %515  ;;  %v6922_v56 = vrot.slane %v861_v33, %v6821_v5  ;;  %v599_v50 = vsel %vm591_vm1, %v6630_v1, %v468_v12  ;;  %v1347_v60 = vunpack.i.h.s16 %v6893_v31  ;;  %v6927_v63 = vpack.i.b16 %v946_v21, %v1339_v38 }
  0xb0   : > { %v6930_v49 = vrot.slane %v862_v41, %v6821_v5  ;;  %v1550_v8 = vrot.slane %v6261_v14, %v6821_v5  ;;  %v1345_v9 = vunpack.i.h.s16 %v6907_v44  ;;  %v1349_v11 = vunpack.i.h.s16 %v6905_v43 }
  0xb1   : > { %v6936_v7 = vpack.i.b16 %v6897_v32, %v1341_v17  ;;  %v1551_v6 = vcombine.low %v1529_v42, %v1536_v47  ;;  %v892_v1 = vcombine.high %v876_v53, %v876_v53  ;;  %v603_v12 = vsel %vm591_vm1, %v6640_v3, %v472_v13 }
  0xb2   : > { %v562_v51 = vpop.permute.xlu1 %561  ;;  %v1552_v15 = vcombine.low %v1543_v54, %v1550_v8  ;;  %v636_v19 = vsel %vm628_vm2, %v599_v50, %v512_v34  ;;  %v640_v27 = vsel %vm628_vm2, %v603_v12, %v516_v35  ;;  %v831_v14 = vcombine.high %v6868_v0, %v6868_v0 }
  0xb3   : > { %v566_v58 = vpop.permute.xlu0 %565  ;;  %v1559_v21 = vrot.slane %v1551_v6, %v6821_v5  ;;  %v1317_v33 = vunpack.i.h.s16 %v829_v16  ;;  %v6230_v42 = vpack.i.b16 %v829_v16, %v1315_v2  ;;  %v673_v47 = vsel %vm665_vm3, %v636_v19, %v562_v51 }
  0xb4   : > { %v1566_v17 = vrot.slane %v1552_v15, %v6821_v5  ;;  %v677_v3 = vsel %vm665_vm3, %v640_v27, %v566_v58  ;;  %v893_v13 = vcombine.high %v6922_v56, %v6922_v56  ;;  %v1319_v34 = vunpack.i.h.s16 %v831_v14 }
  0xb5   : > { %v6231_v54 = vpack.i.b16 %v831_v14, %v1317_v33  ;;  %v838_v35 = vrot.slane %v673_v47, %v6821_v5  ;;  %v901_v8 = vrot.slane %v677_v3, %v6821_v5  ;;  %v6227_v6 = vpack.i.b16 %v6870_v62, %v1309_v23 }
  0xb6   : > { %v482_v38 = vpop.permute.xlu1 %481  ;;  %v1567_v50 = vcombine.low %v1559_v21, %v1566_v17  ;;  %v6229_v12 = vpack.i.b16 %v6868_v0, %v1313_v28  ;;  %v1568_v2 = vcombine.low %v6224_v18, %v6225_v29  ;;  %v891_v28 = vcombine.high %v6912_v48, %v6912_v48 }
  0xb7   : > { %v526_v41 = vpop.permute.xlu0 %525  ;;  %v1571_v15 = vcombine.low %v6230_v42, %v6231_v54  ;;  %v845_v16 = vrot.slane %v838_v35, %v6821_v5  ;;  %v613_v51 = vsel %vm591_vm1, %v6704_v52, %v482_v38  ;;  %v908_v21 = vrot.slane %v901_v8, %v6821_v5 }
  0xb8   : > { %6420 = vmatprep.mubr.msk.bf16.mxu0 %vm2005_vm4, %v1567_v50  ;;  %v1569_v62 = vcombine.low %v6900_v37, %v6227_v6  ;;  %v1570_v23 = vcombine.low %v6228_v46, %v6229_v12  ;;  %v650_v0 = vsel %vm628_vm2, %v613_v51, %v526_v41  ;;  %v1578_v52 = vrot.slane %v1568_v2, %v6821_v5 }
  0xb9   : > { %v6232_v27 = vpack.i.b16 %v845_v16, %v1319_v34  ;;  %v1599_v39 = vrot.slane %v1571_v15, %v6821_v5  ;;  %v1619_v33 = vcombine.low %v893_v13, %v876_v53  ;;  %v1620_v37 = vcombine.low %v6930_v49, %v892_v1 }
  0xba   : > { %v576_v58 = vpop.permute.xlu1 %575  ;;  %v1585_v18 = vrot.slane %v1569_v62, %v6821_v5  ;;  %v1592_v29 = vrot.slane %v1570_v23, %v6821_v5  ;;  %v6233_v46 = vpack.i.b16 %v6875_v10, %v908_v21  ;;  %v6237_v42 = vpack.i.b16 %v6893_v31, %v1345_v9 }
  0xbb   : > { %v478_v19 = vpop.permute.xlu0 %477  ;;  %v687_v40 = vsel %vm665_vm3, %v650_v0, %v576_v58  ;;  %v6239_v47 = vpack.i.b16 %v6918_v45, %v1349_v11  ;;  %v1617_v54 = vcombine.low %v6232_v27, %v6912_v48  ;;  %v894_v35 = vcombine.high %v6930_v49, %v6930_v49 }
  0xbc   : > { %v1035_v14 = vcombine.high %v687_v40, %v687_v40  ;;  %v1042_v38 = vrot.slane %v687_v40, %v6821_v5  ;;  %v1600_v3 = vcombine.low %v1578_v52, %v1585_v18  ;;  %v1601_v34 = vcombine.low %v1592_v29, %v1599_v39 }
  0xbd   : > { %v1618_v10 = vcombine.low %v6922_v56, %v891_v28  ;;  %v609_v9 = vsel %vm591_vm1, %v6670_v26, %v478_v19  ;;  %v1641_v11 = vrot.slane %v1619_v33, %v6821_v5  ;;  %v1648_v8 = vrot.slane %v1620_v37, %v6821_v5 }
  0xbe   : > { %v522_v41 = vpop.permute.xlu1 %521  ;;  %v1049_v53 = vrot.slane %v1035_v14, %v6821_v5  ;;  %v1050_v1 = vcombine.high %v1042_v38, %v1042_v38  ;;  %v1608_v13 = vrot.slane %v1600_v3, %v6821_v5  ;;  %v1615_v50 = vrot.slane %v1601_v34, %v6821_v5 }
  0xbf   : > { %v476_v17 = vpop.permute.xlu0 %475  ;;  %v1666_v48 = vcombine.low %v894_v35, %v6233_v46  ;;  %v646_v6 = vsel %vm628_vm2, %v609_v9, %v522_v41  ;;  %v6989_v16 = vrot.slane %v1042_v38, %v6821_v5  ;;  %v6236_v26 = vpack.i.b16 %v6907_v44, %v1343_v55 }
  0xc0   : > { %v1616_v15 = vcombine.low %v1608_v13, %v1615_v50  ;;  %v6992_v56 = vrot.slane %v1050_v1, %v6821_v5  ;;  %v6238_v51 = vpack.i.b16 %v6905_v43, %v1347_v60  ;;  %v1627_v58 = vrot.slane %v1617_v54, %v6821_v5 }
  0xc1   : > { %v1051_v19 = vcombine.high %v1049_v53, %v1049_v53  ;;  %v1667_v21 = vcombine.low %v6927_v63, %v6936_v7  ;;  %v7006_v62 = vrot.slane %v1049_v53, %v6821_v5  ;;  %v1668_v0 = vcombine.low %v6236_v26, %v6237_v42 }
  0xc2   : > { %v572_v49 = vpop.permute.xlu1 %571  ;;  %6421 = vmatmul.mubr.msk.bf16.vlgmr.msra.gmra.mxu0 %vm2005_vm4, %v1616_v15  ;;  %v1669_v44 = vcombine.low %v6238_v51, %v6239_v47  ;;  %v1634_v31 = vrot.slane %v1618_v10, %v6821_v5  ;;  %v1650_v55 = vcombine.low %v1641_v11, %v1648_v8  ;;  %v1676_v27 = vrot.slane %v1666_v48, %v6821_v5 }
  0xc3   : > { %v480_v12 = vpop.permute.xlu0 %479  ;;  %v683_v2 = vsel %vm665_vm3, %v646_v6, %v572_v49  ;;  %v1080_v63 = vcombine.high %v6989_v16, %v6989_v16  ;;  %v1082_v7 = vcombine.high %v6992_v56, %v6992_v56  ;;  %v7017_v40 = vrot.slane %v1051_v19, %v6821_v5 }
  0xc4   : > { %v972_v23 = vcombine.high %v683_v2, %v683_v2  ;;  %v979_v32 = vrot.slane %v683_v2, %v6821_v5  ;;  %v1373_v52 = vunpack.i.h.s16 %v6989_v16  ;;  %v1375_v18 = vunpack.i.h.s16 %v6992_v56 }
  0xc5   : > { %v1649_v29 = vcombine.low %v1627_v58, %v1634_v31  ;;  %v7023_v14 = vcombine.high %v7006_v62, %v7006_v62  ;;  %v607_v33 = vsel %vm591_vm1, %v6666_v24, %v476_v17  ;;  %v1664_v41 = vrot.slane %v1650_v55, %v6821_v5 }
  0xc6   : > { %v520_v60 = vpop.permute.xlu1 %519  ;;  %v986_v39 = vrot.slane %v972_v23, %v6821_v5  ;;  %v987_v37 = vcombine.high %v979_v32, %v979_v32  ;;  %v1683_v42 = vrot.slane %v1667_v21, %v6821_v5  ;;  %v1690_v47 = vrot.slane %v1668_v0, %v6821_v5 }
  0xc7   : > { %v524_v28 = vpop.permute.xlu0 %523  ;;  %v1657_v38 = vrot.slane %v1649_v29, %v6821_v5  ;;  %v1377_v54 = vunpack.i.h.s16 %v1080_v63  ;;  %v1379_v35 = vunpack.i.h.s16 %v1082_v7  ;;  %v1381_v53 = vunpack.i.h.s16 %v7006_v62 }
  0xc8   : > { %v988_v46 = vcombine.high %v986_v39, %v986_v39  ;;  %v1697_v1 = vrot.slane %v1669_v44, %v6821_v5  ;;  %v7033_v10 = vpack.i.b16 %v1080_v63, %v1375_v18  ;;  %v1698_v13 = vcombine.low %v1676_v27, %v1683_v42 }
  0xc9   : > { %v1665_v17 = vcombine.low %v1657_v38, %v1664_v41  ;;  %v1002_v50 = vrot.slane %v986_v39, %v6821_v5  ;;  %v1009_v9 = vrot.slane %v987_v37, %v6821_v5  ;;  %v611_v11 = vsel %vm591_vm1, %v6679_v36, %v480_v12 }
  0xca   : > { %v570_v3 = vpop.permute.xlu1 %569  ;;  %v7036_v24 = vrot.slane %v988_v46, %v6821_v5  ;;  %v644_v8 = vsel %vm628_vm2, %v607_v33, %v520_v60  ;;  %v1699_v48 = vcombine.low %v1690_v47, %v1697_v1  ;;  %v1706_v6 = vrot.slane %v1698_v13, %v6821_v5 }
  0xcb   : > { %v574_v34 = vpop.permute.xlu0 %573  ;;  %6424 = vmatprep.mubr.msk.bf16.mxu0 %vm2005_vm4, %v1665_v17  ;;  %v648_v49 = vsel %vm628_vm2, %v611_v11, %v524_v28  ;;  %v957_v15 = vcombine.high %v6905_v43, %v6905_v43  ;;  %v6245_v51 = vpack.i.b16 %v1082_v7, %v1377_v54  ;;  %v995_v58 = vrot.slane %v979_v32, %v6821_v5 }
  0xcc   : > { %v681_v19 = vsel %vm665_vm3, %v644_v8, %v570_v3  ;;  %v685_v36 = vsel %vm665_vm3, %v648_v49, %v574_v34  ;;  %v6246_v12 = vpack.i.b16 %v7006_v62, %v1379_v35  ;;  %v1718_v21 = vcombine.low %v1002_v50, %v7036_v24 }
  0xcd   : > { %v1713_v23 = vrot.slane %v1699_v48, %v6821_v5  ;;  %v964_v0 = vrot.slane %v681_v19, %v6821_v5  ;;  %v6262_v44 = vcombine.high %v995_v58, %v1009_v9  ;;  %v1351_v43 = vunpack.i.h.s16 %v6918_v45 }
  0xce   : > { %v490_v2 = vpop.permute.xlu1 %489  ;;  %v1027_v31 = vrot.slane %v685_v36, %v6821_v5  ;;  %v1353_v60 = vunpack.i.h.s16 %v957_v15  ;;  %v6247_v7 = vpack.i.b16 %v7017_v40, %v1381_v53  ;;  %v1766_v39 = vcombine.low %v7033_v10, %v6245_v51 }
  0xcf   : > { %v534_v26 = vpop.permute.xlu0 %533  ;;  %v621_v32 = vsel %vm591_vm1, %v6749_v20, %v490_v2  ;;  %v1714_v55 = vcombine.low %v1706_v6, %v1713_v23  ;;  %v971_v28 = vrot.slane %v964_v0, %v6821_v5  ;;  %v1746_v29 = vrot.slane %v1718_v21, %v6821_v5 }
  0xd0   : > { %v658_v62 = vsel %vm628_vm2, %v621_v32, %v534_v26  ;;  %v1034_v18 = vrot.slane %v1027_v31, %v6821_v5  ;;  %v1767_v46 = vcombine.low %v6246_v12, %v6247_v7  ;;  %v1716_v38 = vcombine.low %v995_v58, %v1009_v9 }
  0xd1   : > { %6425 = vmatmul.mubr.msk.bf16.gmra.mxu0 %vm2005_vm4, %v1714_v55  ;;  %v6241_v20 = vpack.i.b16 %v971_v28, %v1353_v60  ;;  %v1739_v41 = vrot.slane %v6262_v44, %v6821_v5  ;;  %v6263_v47 = vcombine.high %v1002_v50, %v7036_v24  ;;  %v6240_v3 = vpack.i.b16 %v957_v15, %v1351_v43 }
  0xd2   : > { %v486_v27 = vpop.permute.xlu1 %485  ;;  %v6242_v42 = vpack.i.b16 %v6989_v16, %v1034_v18  ;;  %v6243_v1 = vpack.i.b16 %v6992_v56, %v1373_v52  ;;  %v1383_v24 = vunpack.i.h.s16 %v7017_v40  ;;  %v1385_v11 = vunpack.i.h.s16 %v7023_v14 }
  0xd3   : > { %v584_v63 = vpop.permute.xlu0 %583  ;;  %v617_v34 = vsel %vm591_vm1, %v6716_v59, %v486_v27  ;;  %v1748_v50 = vcombine.low %v1739_v41, %v1746_v29  ;;  %v1715_v9 = vcombine.low %v6240_v3, %v6241_v20  ;;  %v1732_v8 = vrot.slane %v1716_v38, %v6821_v5 }
  0xd4   : > { %v695_v45 = vsel %vm665_vm3, %v658_v62, %v584_v63  ;;  %v1765_v16 = vcombine.low %v6242_v42, %v6243_v1  ;;  %v1774_v52 = vrot.slane %v6263_v47, %v6821_v5  ;;  %v1795_v15 = vrot.slane %v1767_v46, %v6821_v5 }
  0xd5   : > { %v1161_v33 = vcombine.high %v695_v45, %v695_v45  ;;  %v1168_v37 = vrot.slane %v695_v45, %v6821_v5  ;;  %v7090_v2 = vcombine.high %v7017_v40, %v7017_v40  ;;  %v1788_v19 = vrot.slane %v1766_v39, %v6821_v5 }
  0xd6   : > { %v530_v35 = vpop.permute.xlu1 %529  ;;  %v1725_v36 = vrot.slane %v1715_v9, %v6821_v5  ;;  %v1762_v23 = vrot.slane %v1748_v50, %v6821_v5  ;;  %v1781_v0 = vrot.slane %v1765_v16, %v6821_v5  ;;  %v7102_v43 = vpack.i.b16 %v7023_v14, %v1383_v24 }
  0xd7   : > { %v1176_v54 = vcombine.high %v1168_v37, %v1168_v37  ;;  %v580_v53 = vpop.permute.xlu0 %579  ;;  %v1175_v10 = vrot.slane %v1161_v33, %v6821_v5  ;;  %v7078_v17 = vrot.slane %v1168_v37, %v6821_v5  ;;  %v654_v13 = vsel %vm628_vm2, %v617_v34, %v530_v35 }
  0xd8   : > { %v691_v56 = vsel %vm665_vm3, %v654_v13, %v580_v53  ;;  %v1797_v55 = vcombine.low %v1788_v19, %v1795_v15  ;;  %v1387_v62 = vunpack.i.h.s16 %v7090_v2  ;;  %v1747_v20 = vcombine.low %v1725_v36, %v1732_v8 }
  0xd9   : > { %v1198_v59 = vrot.slane %v1176_v54, %v6821_v5  ;;  %v1177_v26 = vcombine.high %v1175_v10, %v1175_v10  ;;  %v1206_v51 = vcombine.high %v7078_v17, %v7078_v17  ;;  %v1098_v58 = vcombine.high %v691_v56, %v691_v56 }
  0xda   : > { %v484_v6 = vpop.permute.xlu1 %483  ;;  %v1407_v12 = vunpack.i.h.s16 %v7078_v17  ;;  %v1105_v21 = vrot.slane %v691_v56, %v6821_v5  ;;  %v7105_v31 = vrot.slane %v1175_v10, %v6821_v5  ;;  %v1796_v38 = vcombine.low %v1774_v52, %v1781_v0 }
  0xdb   : > { %v1208_v48 = vcombine.high %v1198_v59, %v1198_v59  ;;  %v488_v49 = vpop.permute.xlu0 %487  ;;  %v1112_v40 = vrot.slane %v1098_v58, %v6821_v5  ;;  %v7109_v27 = vrot.slane %v1177_v26, %v6821_v5  ;;  %v1409_v63 = vunpack.i.h.s16 %v1198_v59 }
  0xdc   : > { %v1113_v32 = vcombine.high %v1105_v21, %v1105_v21  ;;  %v1411_v7 = vunpack.i.h.s16 %v1206_v51  ;;  %v7112_v39 = vrot.slane %v1105_v21, %v6821_v5  ;;  %v7114_v18 = vpack.i.b16 %v1198_v59, %v1407_v12 }
  0xdd   : > { %v1413_v44 = vunpack.i.h.s16 %v1208_v48  ;;  %v615_v29 = vsel %vm591_vm1, %v6712_v57, %v484_v6  ;;  %v1114_v37 = vcombine.high %v1112_v40, %v1112_v40  ;;  %v1128_v46 = vrot.slane %v1112_v40, %v6821_v5 }
  0xde   : > { %v528_v60 = vpop.permute.xlu1 %527  ;;  %v1135_v45 = vrot.slane %v1113_v32, %v6821_v5  ;;  %v1143_v41 = vcombine.high %v7112_v39, %v7112_v39  ;;  %v619_v47 = vsel %vm591_vm1, %v6726_v4, %v488_v49  ;;  %v1755_v3 = vrot.slane %v1747_v20, %v6821_v5 }
  0xdf   : > { %v532_v28 = vpop.permute.xlu0 %531  ;;  %v6255_v33 = vpack.i.b16 %v7105_v31, %v1413_v44  ;;  %v1804_v57 = vrot.slane %v1796_v38, %v6821_v5  ;;  %v1811_v35 = vrot.slane %v1797_v55, %v6821_v5  ;;  %v652_v53 = vsel %vm628_vm2, %v615_v29, %v528_v60 }
  0xe0   : > { %v1145_v42 = vcombine.high %v1135_v45, %v1135_v45  ;;  %v656_v1 = vsel %vm628_vm2, %v619_v47, %v532_v28  ;;  %v6253_v10 = vpack.i.b16 %v1206_v51, %v1409_v63  ;;  %v1763_v13 = vcombine.low %v1755_v3, %v1762_v23 }
  0xe1   : > { %v6254_v9 = vpack.i.b16 %v1208_v48, %v1411_v7  ;;  %v1812_v59 = vcombine.low %v1804_v57, %v1811_v35  ;;  %v1142_v16 = vrot.slane %v1114_v37, %v6821_v5  ;;  %v1144_v56 = vcombine.high %v1128_v46, %v1128_v46 }
  0xe2   : > { %v578_v34 = vpop.permute.xlu1 %577  ;;  %v1816_v4 = vcombine.low %v1145_v42, %v1128_v46  ;;  %6428 = vmatprep.mubr.msk.bf16.mxu0 %vm2005_vm4, %v1763_v13  ;;  %v6249_v15 = vpack.i.b16 %v7090_v2, %v1385_v11  ;;  %v1207_v48 = vcombine.high %v7105_v31, %v7105_v31  ;;  %v1815_v51 = vcombine.low %v1135_v45, %v1143_v41 }
  0xe3   : > { %v582_v54 = vpop.permute.xlu0 %581  ;;  %v689_v24 = vsel %vm665_vm3, %v652_v53, %v578_v34  ;;  %v1865_v26 = vcombine.low %v6254_v9, %v6255_v33  ;;  %6429 = vmatmul.mubr.msk.bf16.gmra.mxu0 %vm2005_vm4, %v1812_v59  ;;  %v1415_v19 = vunpack.i.h.s16 %v7105_v31  ;;  %v1864_v36 = vcombine.low %v7114_v18, %v6253_v10 }
  0xe4   : > { %v693_v50 = vsel %vm665_vm3, %v656_v1, %v582_v54  ;;  %v1090_v8 = vrot.slane %v689_v24, %v6821_v5  ;;  %v1813_v2 = vcombine.low %v7102_v43, %v6249_v15  ;;  %v1844_v23 = vrot.slane %v1816_v4, %v6821_v5 }
  0xe5   : > { %v1153_v52 = vrot.slane %v693_v50, %v6821_v5  ;;  %v1417_v0 = vunpack.i.h.s16 %v7109_v27  ;;  %v1862_v44 = vcombine.low %v1142_v16, %v1144_v56  ;;  %v1146_v40 = vcombine.high %v1142_v16, %v1142_v16 }
  0xe6   : > { %v494_v6 = vpop.permute.xlu1 %493  ;;  %v1097_v58 = vrot.slane %v1090_v8, %v6821_v5  ;;  %v1837_v28 = vrot.slane %v1815_v51, %v6821_v5  ;;  %v1419_v7 = vunpack.i.h.s16 %v1207_v48  ;;  %v1823_v18 = vrot.slane %v1813_v2, %v6821_v5 }
  0xe7   : > { %v492_v49 = vpop.permute.xlu0 %491  ;;  %v1160_v12 = vrot.slane %v1153_v52, %v6821_v5  ;;  %v625_v14 = vsel %vm591_vm1, %v6760_v25, %v494_v6  ;;  %v1209_v25 = vcombine.high %v7109_v27, %v7109_v27  ;;  %v6256_v29 = vpack.i.b16 %v7109_v27, %v1415_v19 }
  0xe8   : > { %v6250_v21 = vpack.i.b16 %v1097_v58, %v1387_v62  ;;  %v623_v11 = vsel %vm591_vm1, %v6756_v22, %v492_v49  ;;  %v1893_v22 = vrot.slane %v1865_v26, %v6821_v5  ;;  %v1846_v45 = vcombine.low %v1837_v28, %v1844_v23 }
  0xe9   : > { %v6251_v31 = vpack.i.b16 %v7078_v17, %v1160_v12  ;;  %v6257_v20 = vpack.i.b16 %v1207_v48, %v1417_v0  ;;  %v1872_v33 = vrot.slane %v1862_v44, %v6821_v5  ;;  %v1421_v27 = vunpack.i.h.s16 %v1209_v25 }
  0xea   : > { %v538_v32 = vpop.permute.xlu1 %537  ;;  %v1814_v60 = vcombine.low %v6250_v21, %v7112_v39  ;;  %v1886_v39 = vrot.slane %v1864_v36, %v6821_v5  ;;  %v6258_v53 = vpack.i.b16 %v1209_v25, %v1419_v7  ;;  %v1860_v10 = vrot.slane %v1846_v45, %v6821_v5 }
  0xeb   : > { %v536_v55 = vpop.permute.xlu0 %535  ;;  %v1863_v43 = vcombine.low %v1146_v40, %v6251_v31  ;;  %v662_v62 = vsel %vm628_vm2, %v625_v14, %v538_v32  ;;  %v1911_v26 = vcombine.low %v6256_v29, %v6257_v20 }
  0xec   : > { %v660_v63 = vsel %vm628_vm2, %v623_v11, %v536_v55  ;;  %v1830_v17 = vrot.slane %v1814_v60, %v6821_v5  ;;  %v1895_v3 = vcombine.low %v1886_v39, %v1893_v22 }
  0xed   : > { %v1879_v37 = vrot.slane %v1863_v43, %v6821_v5  ;;  %v1921_v31 = vrot.slane %v1911_v26, %v6821_v5 }
  0xee   : > { %v588_v46 = vpop.permute.xlu1 %587  ;;  %v1845_v47 = vcombine.low %v1823_v18, %v1830_v17  ;;  %v1909_v52 = vrot.slane %v1895_v3, %v6821_v5 }
  0xef   : > { %v586_v38 = vpop.permute.xlu0 %585  ;;  %v699_v41 = vsel %vm665_vm3, %v662_v62, %v588_v46  ;;  %v1894_v35 = vcombine.low %v1872_v33, %v1879_v37 }
  0xf0   : > { %v697_v42 = vsel %vm665_vm3, %v660_v63, %v586_v38  ;;  %v1224_v34 = vcombine.high %v699_v41, %v699_v41  ;;  %v1231_v54 = vrot.slane %v699_v41, %v6821_v5  ;;  %v1853_v1 = vrot.slane %v1845_v47, %v6821_v5 }
  0xf1   : > { %v1216_v57 = vrot.slane %v697_v42, %v6821_v5  ;;  %v1902_v56 = vrot.slane %v1894_v35, %v6821_v5  ;;  %v7206_v47 = vsub.s32 0, %v6814_v61 }
  0xf2   : > { %v1238_v13 = vrot.slane %v1224_v34, %v6821_v5  ;;  %v1239_v24 = vcombine.high %v1231_v54, %v1231_v54  ;;  %v1247_v50 = vrot.slane %v1231_v54, %v6821_v5  ;;  %v496_v4 = vpop.permute.xlu1 %495  ;;  %v1861_v16 = vcombine.low %v1853_v1, %v1860_v10 }
  0xf3   : > { %v1223_v9 = vrot.slane %v1216_v57, %v6821_v5  ;;  %v540_v59 = vpop.permute.xlu0 %539  ;;  %v627_v8 = vsel %vm591_vm1, %v6767_v30, %v496_v4  ;;  %v1910_v58 = vcombine.low %v1902_v56, %v1909_v52 }
  0xf4   : > { %v1240_v6 = vcombine.high %v1238_v13, %v1238_v13  ;;  %v1254_v49 = vrot.slane %v1238_v13, %v6821_v5  ;;  %v1261_v15 = vrot.slane %v1239_v24, %v6821_v5  ;;  %6432 = vmatprep.mubr.msk.bf16.mxu1 %vm2005_vm4, %v1861_v16  ;;  %v664_v51 = vsel %vm628_vm2, %v627_v8, %v540_v59 }
  0xf5   : > { %v6259_v48 = vpack.i.b16 %v1223_v9, %v1421_v27  ;;  %6433 = vmatmul.mubr.msk.bf16.vlgmr.msra.gmra.mxu1 %vm2005_vm4, %v1910_v58 }
  0xf6   : > { %v1268_v19 = vrot.slane %v1240_v6, %v6821_v5  ;;  %v1913_v30 = vcombine.low %v1247_v50, %v1261_v15  ;;  %v6264_v36 = vcombine.high %v1247_v50, %v1261_v15  ;;  %v590_v14 = vpop.permute.xlu1 %589 }
  0xf7   : > { %v1912_v12 = vcombine.low %v6258_v53, %v6259_v48  ;;  %v701_v21 = vsel %vm665_vm3, %v664_v51, %v590_v14 }
  0xf8   : > { %v1935_v11 = vrot.slane %v1913_v30, %v6821_v5  ;;  %v1942_v2 = vrot.slane %v6264_v36, %v6821_v5  ;;  %v1960_v23 = vcombine.low %v1254_v49, %v1268_v19  ;;  %v6265_v0 = vcombine.high %v1254_v49, %v1268_v19 }
  0xf9   : > { %v1928_v44 = vrot.slane %v1912_v12, %v6821_v5  ;;  %v1279_v40 = vrot.slane %v701_v21, %v6821_v5  ;;  %v6557_v49 = vmov 1983009808  }
  0xfa   : > { %v1944_v32 = vcombine.low %v1935_v11, %v1942_v2  ;;  %v1968_v55 = vrot.slane %v1960_v23, %v6821_v5  ;;  %v1975_v60 = vrot.slane %v6265_v0, %v6821_v5  ;;  %v3718_v15 = vunpack.c.l.s4 %v6557_v49 }
  0xfb   : > { %v1286_v25 = vrot.slane %v1279_v40, %v6821_v5  ;;  %v1943_v28 = vcombine.low %v1921_v31, %v1928_v44 }
  0xfc   : > { %v1958_v22 = vrot.slane %v1944_v32, %v6821_v5  ;;  %v1983_v43 = vcombine.low %v1968_v55, %v1975_v60  ;;  %v3719_v19 = vunpack.c.0.s8 %v3718_v15 }
  0xfd   : > { %v1439_v62 = vunpack.i.l.s16 %v1286_v25  ;;  %v1951_v63 = vrot.slane %v1943_v28, %v6821_v5 }
  0xfe   : > { %v1990_v17 = vrot.slane %v1983_v43, %v6821_v5  ;;  %v7257_v0 = vsub.s32 %v3719_v19, %v6814_v61 }
  0xff   : > { %v1982_v7 = vrot.slane %v1439_v62, %v6821_v5  ;;  %v1959_v18 = vcombine.low %v1951_v63, %v1958_v22 }
 0x101   : > { %v1997_v45 = vrot.slane %v1982_v7, %v6821_v5  ;;  %6436 = vmatprep.mubr.msk.bf16.mxu1 %vm2005_vm4, %v1959_v18 }
 0x103   : > { %v1998_v39 = vcombine.low %v1990_v17, %v1997_v45 }
 0x105   : > { %6437 = vmatmul.mubr.msk.bf16.gmra.mxu1 %vm2005_vm4, %v1998_v39 }
 0x182   : > { %v6422_v29 = vpop.f32.mrf.mxu0 }
 0x183   : > { %v2274_v34 = vrot.slane %v6422_v29, %v6821_v5  ;;  %v2267_v27 = vcombine.high %v6422_v29, %v6422_v29 }
 0x184   : > { %v2070_v20 = vpop.f32.mrf.mxu0 }
 0x185   : > { %v2169_v33 = vcombine.high %v2070_v20, %v2070_v20  ;;  %v2176_v37 = vrot.slane %v2070_v20, %v6821_v5  ;;  %v2282_v50 = vcombine.high %v2274_v34, %v2274_v34  ;;  %v2281_v16 = vrot.slane %v2267_v27, %v6821_v5 }
 0x186   : > { %v7241_v56 = vrot.slane %v2274_v34, %v6821_v5  ;;  %v6423_v58 = vpop.f32.mrf.mxu0 }
 0x187   : > { %v2183_v46 = vrot.slane %v2169_v33, %v6821_v5  ;;  %v2184_v38 = vcombine.high %v2176_v37, %v2176_v37  ;;  %v2192_v41 = vrot.slane %v2176_v37, %v6821_v5  ;;  %v2304_v6 = vrot.slane %v2282_v50, %v6821_v5 }
 0x188   : > { %v2283_v48 = vcombine.high %v2281_v16, %v2281_v16  ;;  %v2312_v26 = vcombine.high %v7241_v56, %v7241_v56  ;;  %v2297_v30 = vrot.slane %v2281_v16, %v6821_v5  ;;  %v2323_v21 = vrot.slane %v6423_v58, %v6821_v5  ;;  %v7270_v39 = vpop.f32.mrf.mxu0 }
 0x189   : > { %v2185_v42 = vcombine.high %v2183_v46, %v2183_v46  ;;  %v7209_v3 = vrot.slane %v2183_v46, %v6821_v5  ;;  %v2206_v54 = vrot.slane %v2184_v38, %v6821_v5  ;;  %v2214_v35 = vcombine.high %v2192_v41, %v2192_v41 }
 0x18a   : > { %v3174_v1 = vrot.slane %v2192_v41, %v7206_v47  ;;  %v2314_v51 = vcombine.high %v2304_v6, %v2304_v6  ;;  %v2311_v36 = vrot.slane %v2283_v48, %v6821_v5  ;;  %v3238_v12 = vrot.slane %v2304_v6, %v7206_v47 }
 0x18b   : > { %v7214_v57 = vrot.slane %v2185_v42, %v6821_v5  ;;  %v2216_v53 = vcombine.high %v2206_v54, %v2206_v54  ;;  %v7218_v10 = vrot.slane %v2206_v54, %v7206_v47  ;;  %v7222_v13 = vrot.slane %v7209_v3, %v7206_v47 }
 0x18c   : > { %v7229_v9 = vrot.slane %v2214_v35, %v7206_v47  ;;  %v3242_v14 = vrot.slane %v2312_v26, %v7206_v47  ;;  %v3246_v11 = vrot.slane %v2314_v51, %v7206_v47  ;;  %v3250_v2 = vrot.slane %v2297_v30, %v7206_v47 }
 0x18d   : > { %9446 = vst [vmem:[#allocation2_spill] sm:$0xff] %v7222_v13  ;;  %v7226_v24 = vrot.slane %v7214_v57, %v7206_v47  ;;  %v7232_v4 = vrot.slane %v2216_v53, %v7206_v47  ;;  %v7235_v59 = vcombine.low %v3174_v1, %v7218_v10  ;;  %v3254_v23 = vrot.slane %v2311_v36, %v7206_v47 }
 0x18e   : > { %v3783_v44 = vcombine.low %v3238_v12, %v3242_v14  ;;  %v2331_v40 = vcombine.high %v2323_v21, %v2323_v21  ;;  %v3784_v31 = vcombine.low %v3246_v11, %v3250_v2  ;;  %v4359_v60 = vcombine.low %v3242_v14, %v3246_v11 }
 0x18f   : > { %9447 = vst [vmem:[#allocation3_spill] sm:$0xff] %v7226_v24  ;;  %v4360_v25 = vcombine.low %v3250_v2, %v3254_v23  ;;  %v2316_v63 = vcombine.high %v6423_v58, %v6423_v58  ;;  %v2339_v7 = vrot.slane %v2323_v21, %v6821_v5  ;;  %v2315_v17 = vcombine.high %v2311_v36, %v2311_v36 }
 0x190   : > { %v3791_v32 = vrot.slane %v3783_v44, %v7257_v0  ;;  %v3798_v55 = vrot.slane %v3784_v31, %v7257_v0  ;;  %v2353_v28 = vrot.slane %v2331_v40, %v6821_v5  ;;  %v4367_v43 = vrot.slane %v4359_v60, %v7257_v0 }
 0x191   : > { %v4374_v62 = vrot.slane %v4360_v25, %v7257_v0  ;;  %v2313_v29 = vcombine.high %v2297_v30, %v2297_v30  ;;  %v2330_v20 = vrot.slane %v2316_v63, %v6821_v5  ;;  %v3266_v33 = vrot.slane %v2339_v7, %v7206_v47 }
 0x192   : > { %v7262_v22 = vcombine.low %v3791_v32, %v3798_v55  ;;  %v3270_v45 = vrot.slane %v2353_v28, %v7206_v47  ;;  %v7277_v37 = vrot.slane %v7270_v39, %v6821_v5  ;;  %v3262_v46 = vrot.slane %v2315_v17, %v7206_v47 }
 0x193   : > { %v4375_v18 = vcombine.low %v4367_v43, %v4374_v62  ;;  %v2217_v41 = vcombine.high %v7214_v57, %v7214_v57  ;;  %v3258_v42 = vrot.slane %v2313_v29, %v7206_v47  ;;  %v2332_v34 = vcombine.high %v2330_v20, %v2330_v20 }
 0x194   : > { %5099 = vrot.lane.b32.xlu0 %v7262_v22, %s6558_s5  ;;  %v4377_v38 = vcombine.low %v3266_v33, %v3270_v45  ;;  %v7286_v54 = vrot.slane %v7277_v37, %v6821_v5  ;;  %v2215_v35 = vcombine.high %v7209_v3, %v7209_v3  ;;  %v2361_v27 = vcombine.high %v2339_v7, %v2339_v7 }
 0x195   : > { %5263 = vrot.lane.b32.xlu1 %v4375_v18, %s6559_s6  ;;  %v4376_v53 = vcombine.low %v3258_v42, %v3262_v46  ;;  %v3801_v50 = vcombine.low %v3262_v46, %v3266_v33  ;;  %v7292_v16 = vrot.slane %v2217_v41, %v7206_v47  ;;  %v4291_v57 = vcombine.low %v7218_v10, %v7229_v9 }
 0x196   : > { %v4391_v1 = vrot.slane %v4377_v38, %v7257_v0  ;;  %v4292_v6 = vcombine.low %v7232_v4, %v7222_v13  ;;  %v7299_v49 = vrot.slane %v2332_v34, %v6821_v5  ;;  %v2363_v15 = vcombine.high %v2353_v28, %v2353_v28  ;;  %v6426_v34 = vpop.f32.mrf.mxu0 }
 0x197   : > { %v4384_v3 = vrot.slane %v4376_v53, %v7257_v0  ;;  %v7304_v48 = vrot.slane %v7286_v54, %v7206_v47  ;;  %v4299_v26 = vrot.slane %v4291_v57, %v7257_v0  ;;  %v3800_v58 = vcombine.low %v3254_v23, %v3258_v42 }
 0x198   : > { %4843 = vrot.lane.b32.xlu0 %v4375_v18, %s6560_s7  ;;  %v4306_v51 = vrot.slane %v4292_v6, %v7257_v0  ;;  %v7309_v10 = vrot.slane %v2215_v35, %v7206_v47  ;;  %v7312_v19 = vrot.slane %v2330_v20, %v6821_v5  ;;  %v3274_v36 = vrot.slane %v2361_v27, %v7206_v47 }
 0x199   : > { %9448 = vst [vmem:[#allocation4_spill] sm:$0xff] %v7304_v48  ;;  %v4392_v30 = vcombine.low %v4384_v3, %v4391_v1  ;;  %v4309_v12 = vcombine.low %v7292_v16, %v7304_v48  ;;  %v3815_v21 = vrot.slane %v3801_v50, %v7257_v0  ;;  %v3278_v11 = vrot.slane %v2363_v15, %v7206_v47 }
 0x19a   : > { %v4307_v14 = vcombine.low %v4299_v26, %v4306_v51  ;;  %v7321_v2 = vrot.slane %v7299_v49, %v7206_v47  ;;  %v3808_v23 = vrot.slane %v3800_v58, %v7257_v0  ;;  %v3282_v44 = vrot.slane %v7312_v19, %v7206_v47  ;;  %v2086_v51 = vpop.f32.mrf.mxu0 }
 0x19b   : > { %5265 = vrot.lane.b32.xlu1 %v4392_v30, %s6559_s6  ;;  %v4308_v40 = vcombine.low %v7226_v24, %v7309_v10  ;;  %v4323_v32 = vrot.slane %v4309_v12, %v7257_v0  ;;  %v3817_v55 = vcombine.low %v3270_v45, %v3274_v36  ;;  %v4393_v28 = vcombine.low %v3274_v36, %v3278_v11 }
 0x19c   : > { %4835 = vrot.lane.b32.xlu0 %v4307_v14, %s6560_s7  ;;  %v7330_v31 = vcombine.low %v3808_v23, %v3815_v21  ;;  %v3818_v25 = vcombine.low %v3278_v11, %v3282_v44  ;;  %v4394_v43 = vcombine.low %v3282_v44, %v7321_v2  ;;  %v2218_v38 = vcombine.high %v7270_v39, %v7270_v39 }
 0x19d   : > { %v4316_v60 = vrot.slane %v4308_v40, %v7257_v0  ;;  %v3825_v62 = vrot.slane %v3817_v55, %v7257_v0  ;;  %v4401_v18 = vrot.slane %v4393_v28, %v7257_v0  ;;  %v2233_v42 = vcombine.high %v7277_v37, %v7277_v37 }
 0x19e   : > { %9449 = vst [vmem:[#allocation5_spill] sm:$0xff] %v7330_v31  ;;  %v3832_v7 = vrot.slane %v3818_v25, %v7257_v0  ;;  %v4408_v17 = vrot.slane %v4394_v43, %v7257_v0  ;;  %v2232_v27 = vrot.slane %v2218_v38, %v6821_v5  ;;  %v2463_v1 = vcombine.high %v6426_v34, %v6426_v34 }
 0x19f   : > { %4845 = vrot.lane.b32.xlu1 %v4392_v30, %s6560_s7  ;;  %v4324_v63 = vcombine.low %v4316_v60, %v4323_v32  ;;  %v2255_v50 = vrot.slane %v2233_v42, %v6821_v5  ;;  %v2470_v6 = vrot.slane %v6426_v34, %v6821_v5  ;;  %v2362_v58 = vcombine.high %v7312_v19, %v7312_v19  ;;  %v6427_v32 = vpop.f32.mrf.mxu0 }
 0x1a0   : > { %5101 = vrot.lane.b32.xlu0 %v7330_v31, %s6558_s5  ;;  %v7343_v45 = vcombine.low %v3825_v62, %v3832_v7  ;;  %v4409_v29 = vcombine.low %v4401_v18, %v4408_v17  ;;  %v2234_v37 = vcombine.high %v2232_v27, %v2232_v27  ;;  %v2248_v3 = vrot.slane %v2232_v27, %v6821_v5 }
 0x1a1   : > { %v2477_v26 = vrot.slane %v2463_v1, %v6821_v5  ;;  %v2265_v30 = vcombine.high %v2255_v50, %v2255_v50  ;;  %v2263_v12 = vcombine.high %v7286_v54, %v7286_v54  ;;  %v2478_v14 = vcombine.high %v2470_v6, %v2470_v6 }
 0x1a2   : > { %9450 = vst [vmem:[#allocation6_spill] sm:$0xff] %v7343_v45  ;;  %v7380_v36 = vrot.slane %v2234_v37, %v6821_v5  ;;  %v2364_v11 = vcombine.high %v7299_v49, %v7299_v49  ;;  %v2264_v23 = vcombine.high %v2248_v3, %v2248_v3  ;;  %v7389_v44 = vrot.slane %v2255_v50, %v7206_v47 }
 0x1a3   : > { %4837 = vrot.lane.b32.xlu1 %v4324_v63, %s6560_s7  ;;  %v2479_v40 = vcombine.high %v2477_v26, %v2477_v26  ;;  %v2365_v19 = vcombine.high %v2086_v51, %v2086_v51  ;;  %v7392_v55 = vrot.slane %v2362_v58, %v7206_v47  ;;  %v7395_v60 = vrot.slane %v2265_v30, %v7206_v47 }
 0x1a4   : > { %5103 = vrot.lane.b32.xlu0 %v7343_v45, %s6558_s5  ;;  %9453 = vst [vmem:[#allocation9_spill] sm:$0xff] %v7389_v44  ;;  %v2486_v54 = vrot.slane %v2470_v6, %v6821_v5  ;;  %v2372_v25 = vrot.slane %v2086_v51, %v6821_v5  ;;  %v7400_v28 = vrot.slane %v2263_v12, %v7206_v47 }
 0x1a5   : > { %v7404_v49 = vrot.slane %v7380_v36, %v7206_v47  ;;  %v2493_v43 = vrot.slane %v2477_v26, %v6821_v5  ;;  %v2500_v62 = vrot.slane %v2478_v14, %v6821_v5  ;;  %v7411_v7 = vrot.slane %v2248_v3, %v7206_v47 }
 0x1a6   : > { %v2512_v18 = vcombine.high %v6427_v32, %v6427_v32  ;;  %v2507_v38 = vrot.slane %v2479_v40, %v6821_v5  ;;  %v2508_v34 = vcombine.high %v2486_v54, %v2486_v54  ;;  %v2380_v27 = vcombine.high %v2372_v25, %v2372_v25 }
 0x1a7   : > { %5267 = vrot.lane.b32.xlu1 %v4409_v29, %s6559_s6  ;;  %9454 = vst [vmem:[#allocation10_spill] sm:$0xff] %v7404_v49  ;;  %9455 = vst [vmem:[#allocation11_spill] sm:$0xff] %v7411_v7  ;;  %v2519_v1 = vrot.slane %v6427_v32, %v6821_v5  ;;  %v2509_v50 = vcombine.high %v2493_v43, %v2493_v43  ;;  %v2510_v37 = vcombine.high %v2500_v62, %v2500_v62 }
 0x1a8   : > { %4847 = vrot.lane.b32.xlu0 %v4409_v29, %s6560_s7  ;;  %v7414_v29 = vrot.slane %v2264_v23, %v7206_v47  ;;  %v2388_v6 = vrot.slane %v2372_v25, %v6821_v5  ;;  %v7427_v3 = vrot.slane %v2486_v54, %v7206_v47  ;;  %v7430_v26 = vrot.slane %v2500_v62, %v7206_v47 }
 0x1a9   : > { %v2526_v51 = vrot.slane %v2512_v18, %v6821_v5  ;;  %v2511_v30 = vcombine.high %v2507_v38, %v2507_v38  ;;  %v7435_v12 = vrot.slane %v2493_v43, %v7206_v47  ;;  %v7439_v40 = vrot.slane %v2507_v38, %v7206_v47 }
 0x1aa   : > { %9456 = vst [vmem:[#allocation12_spill] sm:$0xff] %v7430_v26  ;;  %v2402_v32 = vrot.slane %v2380_v27, %v6821_v5  ;;  %v2527_v54 = vcombine.high %v2519_v1, %v2519_v1  ;;  %v7446_v25 = vrot.slane %v2510_v37, %v7206_v47  ;;  %v7449_v62 = vrot.slane %v2509_v50, %v7206_v47 }
 0x1ab   : > { %v2410_v43 = vcombine.high %v2388_v6, %v2388_v6  ;;  %v7456_v38 = vrot.slane %v2388_v6, %v7206_v47  ;;  %v2535_v50 = vrot.slane %v2519_v1, %v6821_v5  ;;  %v7505_v63 = vrot.slane %v2511_v30, %v7206_v47 }
 0x1ac   : > { %v2549_v42 = vrot.slane %v2527_v54, %v6821_v5  ;;  %v2089_v54 = vpop.f32.mrf.mxu0  ;;  %v4325_v31 = vcombine.low %v7389_v44, %v7400_v28  ;;  %v4326_v26 = vcombine.low %v7395_v60, %v7411_v7 }
 0x1ad   : > { %v7470_v15 = vrot.slane %v2410_v43, %v7206_v47  ;;  %v2414_v48 = vcombine.high %v2089_v54, %v2089_v54 }
 0x1af   : > { %v2428_v24 = vrot.slane %v2414_v48, %v6821_v5 }
 0x1b5   : > { %v7349_v20 = vpop.f32.mrf.mxu1 }
 0x1b7   : > { %v2118_v33 = vpop.f32.mrf.mxu1 }
 0x1b8   : > { %v2764_v46 = vrot.slane %v2118_v33, %v6821_v5  ;;  %v2757_v17 = vcombine.high %v2118_v33, %v2118_v33  ;;  %v7462_v33 = vrot.slane %v2364_v11, %v7206_v47 }
 0x1ba   : > { %v2772_v41 = vcombine.high %v2764_v46, %v2764_v46  ;;  %v7357_v35 = vrot.slane %v2764_v46, %v6821_v5  ;;  %v2771_v58 = vrot.slane %v2757_v17, %v6821_v5  ;;  %v2412_v46 = vcombine.high %v2402_v32, %v2402_v32 }
 0x1bb   : > { %v3690_v17 = vrot.slane %v2402_v32, %v7206_v47  ;;  %v3835_v1 = vcombine.low %v7462_v33, %v7456_v38 }
 0x1bc   : > { %v7361_v53 = vrot.slane %v2772_v41, %v6821_v5  ;;  %v7366_v57 = vrot.slane %v7357_v35, %v7206_v47  ;;  %v2379_v41 = vrot.slane %v2365_v19, %v6821_v5  ;;  %v7442_v19 = vrot.slane %v2508_v34, %v7206_v47 }
 0x1bd   : > { %v2802_v18 = vcombine.high %v7357_v35, %v7357_v35  ;;  %v2773_v34 = vcombine.high %v2771_v58, %v2771_v58  ;;  %v2542_v35 = vrot.slane %v2526_v51, %v6821_v5  ;;  %v7483_v8 = vrot.slane %v2771_v58, %v6821_v5 }
 0x1be   : > { %9451 = vst [vmem:[#allocation7_spill] sm:$0xff] %v7366_v57  ;;  %v7370_v39 = vrot.slane %v7361_v53, %v7206_v47  ;;  %v2381_v14 = vcombine.high %v2379_v41, %v2379_v41  ;;  %v2395_v23 = vrot.slane %v2379_v41, %v6821_v5  ;;  %9457 = vst [vmem:[#allocation13_spill] sm:$0xff] %v7442_v19 }
 0x1bf   : > { %v2528_v41 = vcombine.high %v2526_v51, %v2526_v51  ;;  %v2804_v6 = vcombine.high %v7361_v53, %v7361_v53  ;;  %v3546_v11 = vrot.slane %v2802_v18, %v7206_v47  ;;  %v7486_v53 = vrot.slane %v2773_v34, %v6821_v5 }
 0x1c0   : > { %9452 = vst [vmem:[#allocation8_spill] sm:$0xff] %v7370_v39  ;;  %v7459_v27 = vrot.slane %v2381_v14, %v6821_v5  ;;  %v2411_v37 = vcombine.high %v2395_v23, %v2395_v23  ;;  %v7473_v14 = vrot.slane %v2395_v23, %v7206_v47  ;;  %v2557_v18 = vcombine.high %v2535_v50, %v2535_v50 }
 0x1c1   : > { %v7480_v51 = vrot.slane %v2528_v41, %v6821_v5  ;;  %v7498_v41 = vrot.slane %v2412_v46, %v7206_v47  ;;  %v2558_v52 = vcombine.high %v2542_v35, %v2542_v35  ;;  %v2559_v58 = vcombine.high %v2549_v42, %v2549_v42 }
 0x1c2   : > { %v2413_v23 = vcombine.high %v7459_v27, %v7459_v27  ;;  %v7492_v32 = vrot.slane %v7459_v27, %v7206_v47  ;;  %v7495_v43 = vrot.slane %v2411_v37, %v7206_v47  ;;  %v3550_v21 = vrot.slane %v2804_v6, %v7206_v47 }
 0x1c3   : > { %v7502_v34 = vcombine.low %v7456_v38, %v3690_v17  ;;  %v4106_v27 = vcombine.low %v7370_v39, %v3546_v11  ;;  %v7511_v57 = vrot.slane %v2535_v50, %v7206_v47  ;;  %v3554_v46 = vrot.slane %v7483_v8, %v7206_v47 }
 0x1c4   : > { %v3706_v6 = vrot.slane %v7486_v53, %v7206_v47  ;;  %v7518_v17 = vrot.slane %v2549_v42, %v7206_v47  ;;  %v7521_v30 = vrot.slane %v2557_v18, %v7206_v47  ;;  %v7524_v38 = vrot.slane %v2542_v35, %v7206_v47 }
 0x1c5   : > { %v2421_v37 = vrot.slane %v2089_v54, %v6821_v5  ;;  %v7528_v50 = vrot.slane %v2559_v58, %v7206_v47  ;;  %v7532_v39 = vrot.slane %v7480_v51, %v7206_v47  ;;  %v7535_v45 = vrot.slane %v2558_v52, %v7206_v47 }
 0x1c6   : > { %v4107_v42 = vcombine.low %v3550_v21, %v3554_v46  ;;  %v4114_v35 = vrot.slane %v4106_v27, %v7257_v0  ;;  %v4682_v13 = vcombine.low %v3546_v11, %v3550_v21  ;;  %v4683_v58 = vcombine.low %v3554_v46, %v3706_v6 }
 0x1c7   : > { %v2429_v52 = vcombine.high %v2421_v37, %v2421_v37  ;;  %v9458_v18 = vcombine.high %v7380_v36, %v7380_v36  ;;  %v3834_v21 = vcombine.low %v7321_v2, %v7392_v55  ;;  %v4340_v46 = vrot.slane %v4326_v26, %v7257_v0 }
 0x1c8   : > { %v4121_v54 = vrot.slane %v4107_v42, %v7257_v0  ;;  %v4690_v19 = vrot.slane %v4682_v13, %v7257_v0  ;;  %v4697_v27 = vrot.slane %v4683_v58, %v7257_v0  ;;  %v4342_v6 = vcombine.low %v7404_v49, %v7414_v29 }
 0x1c9   : > { %v7551_v48 = vrot.slane %v9458_v18, %v7206_v47  ;;  %v2437_v13 = vrot.slane %v2421_v37, %v6821_v5  ;;  %v9460_v42 = vrot.slane %v7241_v56, %v7206_v47  ;;  %v3842_v18 = vrot.slane %v3834_v21, %v7257_v0 }
 0x1ca   : > { %v7555_v11 = vcombine.low %v4114_v35, %v4121_v54  ;;  %v3849_v2 = vrot.slane %v3835_v1, %v7257_v0  ;;  %v2430_v35 = vcombine.high %v2428_v24, %v2428_v24  ;;  %v6430_v54 = vpop.f32.mrf.mxu0  ;;  %v7570_v26 = vcombine.low %v4690_v19, %v4697_v27 }
 0x1cb   : > { %v4343_v36 = vcombine.low %v7551_v48, %v9460_v42  ;;  %v4333_v58 = vrot.slane %v4325_v31, %v7257_v0  ;;  %v4410_v37 = vcombine.low %v7392_v55, %v7462_v33  ;;  %v2444_v42 = vrot.slane %v2428_v24, %v6821_v5 }
 0x1cc   : > { %9459 = vst [vmem:[#allocation14_spill] sm:$0xff] %v7555_v11  ;;  %5137 = vrot.lane.b32.xlu0 %v7555_v11, %s6558_s5  ;;  %v7579_v1 = vcombine.low %v3842_v18, %v3849_v2  ;;  %5301 = vrot.lane.b32.xlu1 %v7570_v26, %s6559_s6  ;;  %v4350_v27 = vrot.slane %v4342_v6, %v7257_v0  ;;  %v2102_v6 = vpop.f32.mrf.mxu0 }
 0x1cd   : > { %v4357_v21 = vrot.slane %v4343_v36, %v7257_v0  ;;  %v4341_v19 = vcombine.low %v4333_v58, %v4340_v46  ;;  %v3919_v31 = vcombine.low %v7446_v25, %v7435_v12  ;;  %v3920_v55 = vcombine.low %v7439_v40, %v7449_v62 }
 0x1ce   : > { %9461 = vst [vmem:[#allocation15_spill] sm:$0xff] %v7579_v1  ;;  %v2451_v33 = vrot.slane %v2429_v52, %v6821_v5  ;;  %v2459_v24 = vcombine.high %v2437_v13, %v2437_v13  ;;  %v7590_v36 = vrot.slane %v2413_v23, %v7206_v47  ;;  %v7593_v18 = vrot.slane %v2437_v13, %v7206_v47 }
 0x1cf   : > { %v7596_v2 = vrot.slane %v2430_v35, %v6821_v5  ;;  %v2659_v46 = vcombine.high %v6430_v54, %v6430_v54  ;;  %v4358_v25 = vcombine.low %v4350_v27, %v4357_v21  ;;  %v4425_v58 = vrot.slane %v7502_v34, %v7257_v0 }
 0x1d0   : > { %4839 = vrot.lane.b32.xlu0 %v4341_v19, %s6560_s7  ;;  %v2460_v52 = vcombine.high %v2444_v42, %v2444_v42  ;;  %v7603_v23 = vrot.slane %v2444_v42, %v7206_v47  ;;  %v2666_v13 = vrot.slane %v6430_v54, %v6821_v5  ;;  %v4418_v56 = vrot.slane %v4410_v37, %v7257_v0 }
 0x1d1   : > { %4841 = vrot.lane.b32.xlu1 %v4358_v25, %s6560_s7  ;;  %v3927_v35 = vrot.slane %v3919_v31, %v7257_v0  ;;  %v3934_v19 = vrot.slane %v3920_v55, %v7257_v0  ;;  %v3851_v21 = vcombine.low %v7470_v15, %v7498_v41  ;;  %v3852_v34 = vcombine.low %v7473_v14, %v7492_v32 }
 0x1d2   : > { %v2461_v27 = vcombine.high %v2451_v33, %v2451_v33  ;;  %v7615_v42 = vrot.slane %v2451_v33, %v7206_v47  ;;  %v7618_v54 = vrot.slane %v2459_v24, %v7206_v47  ;;  %v2561_v37 = vcombine.high %v2102_v6, %v2102_v6 }
 0x1d3   : > { %v2673_v31 = vrot.slane %v2659_v46, %v6821_v5  ;;  %v4426_v15 = vcombine.low %v4418_v56, %v4425_v58  ;;  %v4427_v55 = vcombine.low %v7498_v41, %v7473_v14  ;;  %v4428_v33 = vcombine.low %v7492_v32, %v7495_v43 }
 0x1d4   : > { %5105 = vrot.lane.b32.xlu0 %v7579_v1, %s6558_s5  ;;  %v7637_v25 = vrot.slane %v7596_v2, %v7206_v47  ;;  %v4444_v46 = vcombine.low %v7590_v36, %v7593_v18  ;;  %v2674_v11 = vcombine.high %v2666_v13, %v2666_v13  ;;  %v2682_v56 = vrot.slane %v2666_v13, %v6821_v5 }
 0x1d5   : > { %5269 = vrot.lane.b32.xlu1 %v4426_v15, %s6559_s6  ;;  %v7643_v58 = vcombine.low %v3927_v35, %v3934_v19  ;;  %v3859_v14 = vrot.slane %v3851_v21, %v7257_v0  ;;  %v3866_v32 = vrot.slane %v3852_v34, %v7257_v0  ;;  %v7648_v41 = vrot.slane %v2461_v27, %v7206_v47 }
 0x1d6   : > { %v7651_v24 = vrot.slane %v2460_v52, %v7206_v47  ;;  %v2568_v1 = vrot.slane %v2102_v6, %v6821_v5  ;;  %v2575_v49 = vrot.slane %v2561_v37, %v6821_v5  ;;  %v2675_v13 = vcombine.high %v2673_v31, %v2673_v31 }
 0x1d7   : > { %9463 = vst [vmem:[#allocation16_spill] sm:$0xff] %v7643_v58  ;;  %v4435_v35 = vrot.slane %v4427_v55, %v7257_v0  ;;  %v4442_v19 = vrot.slane %v4428_v33, %v7257_v0  ;;  %v4496_v52 = vcombine.low %v7449_v62, %v7505_v63  ;;  %v7670_v21 = vrot.slane %v2673_v31, %v6821_v5 }
 0x1d8   : > { %5115 = vrot.lane.b32.xlu0 %v7643_v58, %s6558_s5  ;;  %v2696_v34 = vrot.slane %v2674_v11, %v6821_v5  ;;  %v4495_v27 = vcombine.low %v7435_v12, %v7439_v40  ;;  %v2704_v37 = vcombine.high %v2682_v56, %v2682_v56  ;;  %v9464_v55 = vcombine.high %v7480_v51, %v7480_v51 }
 0x1d9   : > { %4849 = vrot.lane.b32.xlu1 %v4426_v15, %s6560_s7  ;;  %v7682_v62 = vcombine.low %v3859_v14, %v3866_v32  ;;  %v3937_v31 = vcombine.low %v7518_v17, %v7521_v30  ;;  %v7687_v6 = vrot.slane %v2682_v56, %v7206_v47  ;;  %v2576_v11 = vcombine.high %v2568_v1, %v2568_v1 }
 0x1da   : > { %v7679_v33 = vrot.slane %v9464_v55, %v7206_v47  ;;  %v2577_v58 = vcombine.high %v2575_v49, %v2575_v49  ;;  %v2584_v12 = vrot.slane %v2568_v1, %v6821_v5  ;;  %v7693_v40 = vrot.slane %v2675_v13, %v6821_v5 }
 0x1db   : > { %9465 = vst [vmem:[#allocation17_spill] sm:$0xff] %v7682_v62  ;;  %v4443_v51 = vcombine.low %v4435_v35, %v4442_v19  ;;  %v4510_v15 = vrot.slane %v4496_v52, %v7257_v0  ;;  %v4445_v14 = vcombine.low %v7615_v42, %v7618_v54  ;;  %v2705_v56 = vcombine.high %v7670_v21, %v7670_v21 }
 0x1dc   : > { %5107 = vrot.lane.b32.xlu0 %v7682_v62, %s6558_s5  ;;  %v2706_v32 = vcombine.high %v2696_v34, %v2696_v34  ;;  %v4503_v1 = vrot.slane %v4495_v27, %v7257_v0  ;;  %v9466_v13 = vcombine.low %v7505_v63, %v7511_v57  ;;  %v3951_v35 = vrot.slane %v3937_v31, %v7257_v0 }
 0x1dd   : > { %5271 = vrot.lane.b32.xlu1 %v4443_v51, %s6559_s6  ;;  %v3123_v19 = vand.u32 1, %v6814_v61  ;;  %v3723_v52 = vrot.slane %v7235_v59, %v7257_v0  ;;  %v9467_v62 = vcombine.low %v7229_v9, %v7232_v4  ;;  %v7719_v63 = vrot.slane %v2696_v34, %v7206_v47 }
 0x1de   : > { %v3944_v55 = vrot.slane %v9466_v13, %v7257_v0  ;;  %v7722_v27 = vrot.slane %v2704_v37, %v7206_v47  ;;  %v7725_v31 = vrot.slane %v2575_v49, %v6821_v5  ;;  %v2598_v13 = vrot.slane %v2576_v11, %v6821_v5 }
 0x1df   : > { %v3730_v7 = vrot.slane %v9467_v62, %v7257_v0  ;;  %v4511_v59 = vcombine.low %v4503_v1, %v4510_v15  ;;  %v4452_v9 = vrot.slane %v4444_v46, %v7257_v0  ;;  %v4459_v4 = vrot.slane %v4445_v14, %v7257_v0 }
 0x1e0   : > { %4851 = vrot.lane.b32.xlu0 %v4443_v51, %s6560_s7  ;;  %v7736_v37 = vrot.slane %v2706_v32, %v7206_v47  ;;  %v7744_v51 = vrot.slane %v2705_v56, %v7206_v47  ;;  %v3868_v46 = vcombine.low %v7495_v43, %v7590_v36  ;;  %vm7751_vm5 = vcmp.eq.s32.totalorder %v3123_v19, 0 }
 0x1e1   : > { %v7731_v62 = vcombine.low %v3723_v52, %v3730_v7  ;;  %5279 = vrot.lane.b32.xlu1 %v4511_v59, %s6559_s6  ;;  %v7747_v7 = vcombine.low %v3944_v55, %v3951_v35  ;;  %v9469_v14 = vmov 0  ;;  %v7758_v1 = vrot.slane %v2577_v58, %v6821_v5 }
 0x1e2   : > { %v9470_v14 = vsel %vm7751_vm5, 4294967295, %v9469_v14  ;;  %v2606_v56 = vcombine.high %v2584_v12, %v2584_v12  ;;  %v2607_v52 = vcombine.high %v7725_v31, %v7725_v31  ;;  %v2608_v55 = vcombine.high %v2598_v13, %v2598_v13 }
 0x1e3   : > { %9468 = vst [vmem:[#allocation18_spill] sm:$0xff] %v7747_v7  ;;  %9471 = vst [vmem:[#allocation19_spill] sm:$0xff] %v9470_v14  ;;  %v7763_v35 = vrot.slane %v2584_v12, %v7206_v47  ;;  %v4460_v43 = vcombine.low %v4452_v9, %v4459_v4  ;;  %v4513_v36 = vcombine.low %v7521_v30, %v7528_v50  ;;  %v6431_v9 = vpop.f32.mrf.mxu0 }
 0x1e4   : > { %5117 = vrot.lane.b32.xlu0 %v7747_v7, %s6558_s5  ;;  %v7775_v58 = vrot.slane %v2598_v13, %v7206_v47  ;;  %v3953_v12 = vcombine.low %v7528_v50, %v7524_v38  ;;  %v3876_v30 = vrot.slane %v3868_v46, %v7257_v0  ;;  %v9472_v4 = vcombine.low %v7593_v18, %v7615_v42 }
 0x1e5   : > { %5273 = vrot.lane.b32.xlu1 %v4460_v43, %s6559_s6  ;;  %v3954_v32 = vcombine.low %v7532_v39, %v7535_v45  ;;  %v3430_v46 = vrot.slane %v7725_v31, %v7206_v47  ;;  %v7807_v42 = vrot.slane %v7758_v1, %v7206_v47  ;;  %v2105_v34 = vpop.f32.mrf.mxu0  ;;  %v2708_v7 = vcombine.high %v6431_v9, %v6431_v9 }
 0x1e6   : > { %v3883_v13 = vrot.slane %v9472_v4, %v7257_v0  ;;  %v7810_v4 = vrot.slane %v2607_v52, %v7206_v47 }
 0x1e8   : > { %4859 = vrot.lane.b32.xlu0 %v4511_v59, %s6560_s7  ;;  %v3961_v59 = vrot.slane %v3953_v12, %v7257_v0  ;;  %v2803_v12 = vcombine.high %v7483_v8, %v7483_v8 }
 0x1e9   : > { %4853 = vrot.lane.b32.xlu1 %v4460_v43, %s6560_s7  ;;  %v3116_v43 = vadd.s32 8, %v6814_v61 }
 0x206   : > { %v5100_v15 = vpop.permute.xlu0 %5099 }
 0x207   : > { %v5264_v19 = vpop.permute.xlu1 %5263 }
 0x208   : > { %v7781_v49 = vsel %vm7751_vm5, %v5100_v15, %v5264_v19  ;;  %v2609_v15 = vcombine.high %v7758_v1, %v7758_v1  ;;  %v7796_v19 = vrot.slane %v2606_v56, %v7206_v47  ;;  %v4527_v56 = vrot.slane %v4513_v36, %v7257_v0 }
 0x209   : > { %v6347_v50 = vpack.c.bf16 %v7781_v49, %v7781_v49  ;;  %v9473_v1 = vcombine.low %v7511_v57, %v7518_v17  ;;  %v7829_v36 = vcombine.low %v3876_v30, %v3883_v13  ;;  %v4461_v57 = vcombine.low %v7648_v41, %v7603_v23 }
 0x20a   : > { %v4844_v11 = vpop.permute.xlu0 %4843  ;;  %v4462_v17 = vcombine.low %v7637_v25, %v7651_v24 }
 0x20b   : > { %v7803_v18 = vsel %vm7751_vm5, %v7262_v22, %v4844_v11  ;;  %5652 = vst.msk [vmem:[%s7772_s23 + $0x10] sm:$0xf] %vm5647_vm6, %v6347_v50  ;;  %v7819_v22 = vrot.slane %v2608_v55, %v7206_v47  ;;  %v2805_v11 = vcombine.high %v7486_v53, %v7486_v53  ;;  %v4520_v52 = vrot.slane %v9473_v1, %v7257_v0 }
 0x20c   : > { %v6351_v31 = vpack.c.bf16 %v7803_v18, %v7803_v18  ;;  %9474 = vst [vmem:[#allocation20_spill] sm:$0xff] %v7829_v36  ;;  %v3968_v50 = vrot.slane %v3954_v32, %v7257_v0  ;;  %v3885_v55 = vcombine.low %v7618_v54, %v7648_v41  ;;  %v3886_v53 = vcombine.low %v7603_v23, %v7637_v25 }
 0x20d   : > { %5109 = vrot.lane.b32.xlu0 %v7829_v36, %s6558_s5  ;;  %v4528_v30 = vcombine.low %v4520_v52, %v4527_v56  ;;  %v7852_v23 = vcombine.low %v3430_v46, %v7807_v42  ;;  %v7855_v25 = vrot.slane %v6431_v9, %v6821_v5  ;;  %v9475_v41 = vcombine.high %v7693_v40, %v7693_v40 }
 0x20e   : > { %5656 = vst.msk [vmem:[%s7772_s23 + $0x20] sm:$0xf] %vm5647_vm6, %v6351_v31  ;;  %v2610_v31 = vcombine.high %v2105_v34, %v2105_v34  ;;  %v7864_v1 = vrot.slane %v2805_v11, %v7206_v47  ;;  %v7867_v8 = vcombine.low %v3961_v59, %v3968_v50  ;;  %v3893_v46 = vrot.slane %v3885_v55, %v7257_v0 }
 0x20f   : > { %v7861_v13 = vrot.slane %v9475_v41, %v7206_v47  ;;  %5281 = vrot.lane.b32.xlu1 %v4528_v30, %s6559_s6  ;;  %v3900_v56 = vrot.slane %v3886_v53, %v7257_v0  ;;  %v7872_v9 = vrot.slane %v2708_v7, %v6821_v5  ;;  %v4469_v52 = vrot.slane %v4461_v57, %v7257_v0 }
 0x210   : > { %9476 = vst [vmem:[#allocation21_spill] sm:$0xff] %v7867_v8  ;;  %v4476_v41 = vrot.slane %v4462_v17, %v7257_v0  ;;  %v3130_v54 = vand.u32 1, %v3116_v43  ;;  %v7877_v32 = vrot.slane %v2803_v12, %v7206_v47  ;;  %v4530_v11 = vcombine.low %v7535_v45, %v7679_v33  ;;  %v5266_v17 = vpop.permute.xlu1 %5265 }
 0x211   : > { %5119 = vrot.lane.b32.xlu0 %v7867_v8, %s6558_s5  ;;  %v9477_v59 = vcombine.high %v7596_v2, %v7596_v2  ;;  %v3733_v50 = vcombine.low %v7309_v10, %v7292_v16  ;;  %v2723_v55 = vcombine.high %v7855_v25, %v7855_v25  ;;  %v7892_v53 = vrot.slane %v2105_v34, %v6821_v5  ;;  %v4836_v10 = vpop.permute.xlu0 %4835  ;;  %v9485_v8 = vld [vmem:[#allocation2_spill] sm:$0xff] }
 0x212   : > { %v7895_v57 = vrot.slane %v2609_v15, %v7206_v47  ;;  %v7900_v2 = vcombine.low %v3893_v46, %v3900_v56  ;;  %v4529_v16 = vcombine.low %v7524_v38, %v7532_v39  ;;  %v3117_v43 = vadd.s32 16, %v6814_v61 }
 0x213   : > { %v3354_v7 = vrot.slane %v9477_v59, %v7206_v47  ;;  %4861 = vrot.lane.b32.xlu1 %v4528_v30, %s6560_s7  ;;  %v7909_v15 = vrot.slane %v7855_v25, %v6821_v5  ;;  %v4477_v12 = vcombine.low %v4469_v52, %v4476_v41  ;;  %v4931_v30 = vsel %vm7751_vm5, %v7731_v62, %v4836_v10  ;;  %v9483_v41 = vld [vmem:[#allocation12_spill] sm:$0xff] }
 0x214   : > { %9478 = vst [vmem:[#allocation22_spill] sm:$0xff] %v7900_v2  ;;  %vm7914_vm7 = vcmp.eq.s32.totalorder %v3130_v54, 0  ;;  %v9479_v46 = vmov 0  ;;  %v4544_v39 = vrot.slane %v4530_v11, %v7257_v0  ;;  %v6343_v56 = vpack.c.bf16 %v4931_v30, %v4931_v30  ;;  %v9482_v54 = vld [vmem:[#allocation13_spill] sm:$0xff]  ;;  %v4846_v34 = vpop.permute.xlu1 %4845 }
 0x215   : > { %v9480_v46 = vsel %vm7914_vm7, 4294967295, %v9479_v46  ;;  %5111 = vrot.lane.b32.xlu0 %v7900_v2, %s6558_s5  ;;  %v4478_v38 = vcombine.low %v3354_v7, %v7427_v3  ;;  %v3747_v25 = vrot.slane %v3733_v50, %v7257_v0  ;;  %v7924_v52 = vrot.slane %v2610_v31, %v6821_v5  ;;  %v9484_v50 = vld [vmem:[#allocation5_spill] sm:$0xff]  ;;  %v5102_v45 = vpop.permute.xlu0 %5101  ;;  %v9486_v2 = vld [vmem:[#allocation3_spill] sm:$0xff] }
 0x216   : > { %9481 = vst [vmem:[#allocation23_spill] sm:$0xff] %v9480_v46  ;;  %v7928_v62 = vrot.slane %v7349_v20, %v6821_v5  ;;  %v4479_v59 = vcombine.low %v9483_v41, %v9482_v54  ;;  %v3902_v10 = vcombine.low %v7651_v24, %v3354_v7  ;;  %v4537_v11 = vrot.slane %v4529_v16, %v7257_v0 }
 0x217   : > { %5275 = vrot.lane.b32.xlu1 %v4477_v12, %s6559_s6  ;;  %5648 = vst.msk [vmem:[%s7772_s23] sm:$0xf] %vm5647_vm6, %v6343_v56  ;;  %v7940_v31 = vsel %vm7914_vm7, %v9484_v50, %v4846_v34  ;;  %v9487_v36 = vcombine.low %v9485_v8, %v9486_v2  ;;  %v3137_v24 = vand.u32 1, %v3117_v43  ;;  %v2724_v7 = vcombine.high %v7872_v9, %v7872_v9 }
 0x218   : > { %v7950_v16 = vrot.slane %v7872_v9, %v6821_v5  ;;  %v6352_v56 = vpack.c.bf16 %v7940_v31, %v7940_v31  ;;  %v7956_v34 = vsel %vm7914_vm7, %v5102_v45, %v5266_v17  ;;  %v4545_v8 = vcombine.low %v4537_v11, %v4544_v39  ;;  %v4838_v45 = vpop.permute.xlu1 %4837 }
 0x219   : > { %v3740_v54 = vrot.slane %v9487_v36, %v7257_v0  ;;  %4855 = vrot.lane.b32.xlu0 %v4477_v12, %s6560_s7  ;;  %v4486_v36 = vrot.slane %v4478_v38, %v7257_v0  ;;  %v6348_v2 = vpack.c.bf16 %v7956_v34, %v7956_v34  ;;  %v2625_v9 = vcombine.high %v7892_v53, %v7892_v53 }
 0x21a   : > { %v4493_v50 = vrot.slane %v4479_v59, %v7257_v0  ;;  %v3910_v14 = vrot.slane %v3902_v10, %v7257_v0  ;;  %v5845_v44 = vmul.f32 %v4931_v30, %v4931_v30  ;;  %5657 = vst.msk [vmem:[%s7772_s23 + $0x24] sm:$0xf] %vm5647_vm6, %v6352_v56  ;;  %v9488_v17 = vcombine.low %v7427_v3, %v9483_v41  ;;  %v5104_v41 = vpop.permute.xlu0 %5103 }
 0x21b   : > { %v3748_v43 = vcombine.low %v3740_v54, %v3747_v25  ;;  %5283 = vrot.lane.b32.xlu1 %v4545_v8, %s6559_s6  ;;  %v3971_v39 = vcombine.low %v7775_v58, %v7796_v19  ;;  %5653 = vst.msk [vmem:[%s7772_s23 + $0x14] sm:$0xf] %vm5647_vm6, %v6348_v2  ;;  %vm7979_vm8 = vcmp.eq.s32.totalorder %v3137_v24, 0  ;;  %v5712_v59 = vsel %vm628_vm2, %v4931_v30, 0.0 }
 0x21c   : > { %v3917_v12 = vrot.slane %v9488_v17, %v7257_v0  ;;  %v2745_v54 = vrot.slane %v2723_v55, %v6821_v5  ;;  %v4494_v56 = vcombine.low %v4486_v36, %v4493_v50  ;;  %v9491_v2 = vrot.slane %v7670_v21, %v7206_v47 }
 0x21d   : > { %v4932_v38 = vsel %vm7914_vm7, %v3748_v43, %v4838_v45  ;;  %4863 = vrot.lane.b32.xlu0 %v4545_v8, %s6560_s7  ;;  %v5909_v30 = vsel %vm628_vm2, %v5845_v44, 0.0  ;;  %v4614_v17 = vcombine.low %v7719_v63, %v7722_v27  ;;  %v5268_v8 = vpop.permute.xlu1 %5267  ;;  %v3985_v21 = vrot.slane %v3971_v39, %v7257_v0 }
 0x21e   : > { %v6344_v10 = vpack.c.bf16 %v4932_v38, %v4932_v38  ;;  %v5713_v11 = vsel %vm628_vm2, %v4932_v38, 0.0  ;;  %v5846_v3 = vmul.f32 %v4932_v38, %v4932_v38  ;;  %v4615_v24 = vcombine.low %v7736_v37, %v9491_v2 }
 0x21f   : > { %v7991_v43 = vadd.f32 %v5713_v11, %v5712_v59  ;;  %v7993_v45 = vcombine.low %v3910_v14, %v3917_v12  ;;  %5277 = vrot.lane.b32.xlu1 %v4494_v56, %s6559_s6  ;;  %v4039_v36 = vcombine.low %v7722_v27, %v7736_v37  ;;  %v8009_v44 = vsel %vm7979_vm8, %v5104_v41, %v5268_v8  ;;  %v4848_v27 = vpop.permute.xlu0 %4847  ;;  %v9495_v11 = vld [vmem:[#allocation6_spill] sm:$0xff] }
 0x220   : > { %5649 = vst.msk [vmem:[%s7772_s23 + $0x4] sm:$0xf] %vm5647_vm6, %v6344_v10  ;;  %v5910_v55 = vsel %vm628_vm2, %v5846_v3, 0.0  ;;  %v8012_v50 = vrot.slane %v2724_v7, %v6821_v5  ;;  %v2753_v12 = vcombine.high %v7909_v15, %v7909_v15  ;;  %v2633_v38 = vrot.slane %v7892_v53, %v6821_v5 }
 0x221   : > { %9492 = vst [vmem:[#allocation13_spill] sm:$0xff] %v7993_v45  ;;  %v8005_v14 = vadd.f32 %v5910_v55, %v5909_v30  ;;  %v6349_v39 = vpack.c.bf16 %v8009_v44, %v8009_v44  ;;  %v3506_v37 = vrot.slane %v7909_v15, %v7206_v47  ;;  %5113 = vrot.lane.b32.xlu0 %v7993_v45, %s6558_s5 }
 0x222   : > { %v9494_v7 = vcombine.low %v7679_v33, %v7763_v35  ;;  %v4629_v10 = vrot.slane %v4615_v24, %v7257_v0  ;;  %v8032_v53 = vsel %vm7979_vm8, %v9495_v11, %v4848_v27  ;;  %v2754_v3 = vcombine.high %v7950_v16, %v7950_v16 }
 0x223   : > { %9493 = vst [vmem:[#allocation12_spill] sm:$0xff] %v8005_v14  ;;  %9496 = vst [vmem:[#allocation5_spill] sm:$0xff] %v8032_v53  ;;  %v8037_v15 = vrot.slane %v2745_v54, %v7206_v47  ;;  %v2626_v41 = vcombine.high %v7924_v52, %v7924_v52  ;;  %v6353_v33 = vpack.c.bf16 %v8032_v53, %v8032_v53  ;;  %4857 = vrot.lane.b32.xlu1 %v4494_v56, %s6560_s7 }
 0x224   : > { %v3978_v59 = vrot.slane %v9494_v7, %v7257_v0  ;;  %5654 = vst.msk [vmem:[%s7772_s23 + $0x18] sm:$0xf] %vm5647_vm6, %v6349_v39  ;;  %v4056_v2 = vcombine.low %v7861_v13, %v3506_v37  ;;  %v4622_v30 = vrot.slane %v4614_v17, %v7257_v0  ;;  %v4053_v55 = vrot.slane %v4039_v36, %v7257_v0 }
 0x225   : > { %v2755_v8 = vcombine.high %v2745_v54, %v2745_v54  ;;  %v8052_v27 = vrot.slane %v2753_v12, %v7206_v47  ;;  %v8056_v39 = vrot.slane %v8012_v50, %v7206_v47  ;;  %v2647_v7 = vrot.slane %v2625_v9, %v6821_v5  ;;  %5658 = vst.msk [vmem:[%s7772_s23 + $0x28] sm:$0xf] %vm5647_vm6, %v6353_v33 }
 0x226   : > { %v8047_v24 = vcombine.low %v3978_v59, %v3985_v21  ;;  %v4630_v56 = vcombine.low %v4622_v30, %v4629_v10  ;;  %v9498_v17 = vcombine.low %v7687_v6, %v7719_v63  ;;  %v9499_v21 = vrot.slane %v7693_v40, %v7206_v47 }
 0x227   : > { %v4547_v12 = vcombine.low %v7796_v19, %v7819_v22  ;;  %v8077_v59 = vrot.slane %v7950_v16, %v7206_v47  ;;  %v2640_v10 = vrot.slane %v7924_v52, %v6821_v5  ;;  %v2654_v63 = vrot.slane %v2626_v41, %v6821_v5 }
 0x228   : > { %9497 = vst [vmem:[#allocation2_spill] sm:$0xff] %v8047_v24  ;;  %5121 = vrot.lane.b32.xlu0 %v8047_v24, %s6558_s5  ;;  %v4046_v54 = vrot.slane %v9498_v17, %v7257_v0  ;;  %v4055_v36 = vcombine.low %v9499_v21, %v7744_v51  ;;  %v4632_v11 = vcombine.low %v3506_v37, %v8037_v15 }
 0x229   : > { %5293 = vrot.lane.b32.xlu1 %v4630_v56, %s6559_s6  ;;  %v4070_v19 = vrot.slane %v4056_v2, %v7257_v0  ;;  %v4631_v22 = vcombine.low %v7744_v51, %v7861_v13  ;;  %v8090_v33 = vrot.slane %v2755_v8, %v7206_v47  ;;  %v8093_v16 = vrot.slane %v2754_v3, %v7206_v47 }
 0x22a   : > { %v8084_v40 = vcombine.low %v4046_v54, %v4053_v55  ;;  %v2655_v41 = vcombine.high %v2633_v38, %v2633_v38  ;;  %v2657_v30 = vcombine.high %v2647_v7, %v2647_v7  ;;  %v4063_v2 = vrot.slane %v4055_v36, %v7257_v0 }
 0x22b   : > { %v4561_v51 = vrot.slane %v4547_v12, %v7257_v0  ;;  %v2656_v13 = vcombine.high %v2640_v10, %v2640_v10  ;;  %v2658_v55 = vcombine.high %v2654_v63, %v2654_v63  ;;  %v3988_v3 = vcombine.low %v7810_v4, %v7895_v57 }
 0x22c   : > { %9500 = vst [vmem:[#allocation3_spill] sm:$0xff] %v8084_v40  ;;  %5129 = vrot.lane.b32.xlu0 %v8084_v40, %s6558_s5  ;;  %v2870_v8 = vcombine.high %v7928_v62, %v7928_v62  ;;  %v8108_v17 = vcombine.low %v4063_v2, %v4070_v19  ;;  %v9502_v54 = vcombine.low %v7763_v35, %v7775_v58  ;;  %v6435_v2 = vpop.f32.mrf.mxu1 }
 0x22d   : > { %4873 = vrot.lane.b32.xlu1 %v4630_v56, %s6560_s7  ;;  %v4639_v36 = vrot.slane %v4631_v22, %v7257_v0  ;;  %v4646_v12 = vrot.slane %v4632_v11, %v7257_v0  ;;  %v4073_v37 = vcombine.low %v8090_v33, %v8077_v59  ;;  %v4648_v52 = vcombine.low %v8052_v27, %v8090_v33 }
 0x22e   : > { %9501 = vst [vmem:[#allocation6_spill] sm:$0xff] %v8108_v17  ;;  %v4554_v21 = vrot.slane %v9502_v54, %v7257_v0  ;;  %v8121_v9 = vrot.slane %v2647_v7, %v7206_v47  ;;  %v9503_v56 = vcombine.high %v7349_v20, %v7349_v20  ;;  %v3446_v35 = vrot.slane %v2633_v38, %v7206_v47 }
 0x22f   : > { %v8129_v58 = vrot.slane %v2655_v41, %v7206_v47  ;;  %v8132_v11 = vrot.slane %v2657_v30, %v7206_v47  ;;  %v8137_v7 = vrot.slane %v2640_v10, %v7206_v47  ;;  %v8140_v33 = vrot.slane %v2654_v63, %v7206_v47 }
 0x230   : > { %v2869_v19 = vrot.slane %v9503_v56, %v6821_v5  ;;  %5131 = vrot.lane.b32.xlu0 %v8108_v17, %s6558_s5  ;;  %v4562_v22 = vcombine.low %v4554_v21, %v4561_v51  ;;  %v2878_v20 = vrot.slane %v7928_v62, %v6821_v5  ;;  %v2892_v38 = vrot.slane %v2870_v8, %v6821_v5  ;;  %v2121_v17 = vpop.f32.mrf.mxu1 }
 0x231   : > { %v8146_v41 = vrot.slane %v2658_v55, %v7206_v47  ;;  %v4564_v30 = vcombine.low %v7895_v57, %v3446_v35  ;;  %v4647_v51 = vcombine.low %v4639_v36, %v4646_v12  ;;  %v4002_v10 = vrot.slane %v3988_v3, %v7257_v0 }
 0x232   : > { %5285 = vrot.lane.b32.xlu1 %v4562_v22, %s6559_s6  ;;  %v8152_v54 = vrot.slane %v2656_v13, %v7206_v47  ;;  %v4004_v63 = vcombine.low %v3446_v35, %v8121_v9  ;;  %v2871_v21 = vcombine.high %v2869_v19, %v2869_v19  ;;  %v2885_v62 = vrot.slane %v2869_v19, %v6821_v5 }
 0x233   : > { %v4005_v55 = vcombine.low %v8129_v58, %v8132_v11  ;;  %v3995_v8 = vrot.slane %v7852_v23, %v7257_v0  ;;  %v4563_v13 = vcombine.low %v7807_v42, %v7810_v4  ;;  %v2900_v36 = vcombine.high %v2878_v20, %v2878_v20 }
 0x234   : > { %4875 = vrot.lane.b32.xlu0 %v4647_v51, %s6560_s7  ;;  %v2902_v12 = vcombine.high %v2892_v38, %v2892_v38  ;;  %v2904_v56 = vcombine.high %v6435_v2, %v6435_v2  ;;  %v4578_v35 = vrot.slane %v4564_v30, %v7257_v0  ;;  %v2899_v4 = vrot.slane %v2871_v21, %v6821_v5 }
 0x235   : > { %v8173_v23 = vcombine.low %v3995_v8, %v4002_v10  ;;  %v2901_v3 = vcombine.high %v2885_v62, %v2885_v62  ;;  %v8179_v24 = vrot.slane %v2892_v38, %v7206_v47  ;;  %v4012_v19 = vrot.slane %v4004_v63, %v7257_v0 }
 0x236   : > { %4865 = vrot.lane.b32.xlu1 %v4562_v22, %s6560_s7  ;;  %v8183_v30 = vrot.slane %v2878_v20, %v7206_v47  ;;  %v9505_v22 = vcombine.high %v8012_v50, %v8012_v50  ;;  %v4571_v21 = vrot.slane %v4563_v13, %v7257_v0  ;;  %v8195_v38 = vrot.slane %v2900_v36, %v7206_v47 }
 0x237   : > { %9504 = vst [vmem:[#allocation24_spill] sm:$0xff] %v8173_v23  ;;  %v8198_v8 = vrot.slane %v2902_v12, %v7206_v47  ;;  %v2911_v20 = vrot.slane %v6435_v2, %v6821_v5  ;;  %v2918_v63 = vrot.slane %v2904_v56, %v6821_v5  ;;  %v8203_v42 = vrot.slane %v2885_v62, %v7206_v47 }
 0x238   : > { %v8189_v10 = vrot.slane %v9505_v22, %v7206_v47  ;;  %5123 = vrot.lane.b32.xlu0 %v8173_v23, %s6558_s5  ;;  %v2813_v50 = vrot.slane %v2121_v17, %v6821_v5  ;;  %v4579_v22 = vcombine.low %v4571_v21, %v4578_v35  ;;  %v4087_v13 = vrot.slane %v4073_v37, %v7257_v0  ;;  %v9508_v23 = vld [vmem:[#allocation7_spill] sm:$0xff] }
 0x239   : > { %v2903_v57 = vcombine.high %v2899_v4, %v2899_v4  ;;  %v8209_v36 = vrot.slane %v2899_v4, %v7206_v47  ;;  %v8212_v12 = vrot.slane %v2901_v3, %v7206_v47  ;;  %v2806_v56 = vcombine.high %v2121_v17, %v2121_v17 }
 0x23a   : > { %5295 = vrot.lane.b32.xlu1 %v4647_v51, %s6559_s6  ;;  %v9506_v51 = vcombine.low %v8037_v15, %v8052_v27  ;;  %v4656_v37 = vrot.slane %v4648_v52, %v7257_v0  ;;  %v9507_v35 = vcombine.low %v8077_v59, %v8056_v39  ;;  %v2919_v21 = vcombine.high %v2911_v20, %v2911_v20 }
 0x23b   : > { %v2920_v2 = vcombine.high %v2918_v63, %v2918_v63  ;;  %v4090_v40 = vcombine.low %v8189_v10, %v9508_v23  ;;  %v2821_v15 = vcombine.high %v2813_v50, %v2813_v50  ;;  %v4019_v52 = vrot.slane %v4005_v55, %v7257_v0 }
 0x23c   : > { %4867 = vrot.lane.b32.xlu0 %v4579_v22, %s6560_s7  ;;  %v4080_v62 = vrot.slane %v9506_v51, %v7257_v0  ;;  %v4663_v4 = vrot.slane %v9507_v35, %v7257_v0  ;;  %v2927_v35 = vrot.slane %v2911_v20, %v6821_v5  ;;  %v2934_v17 = vrot.slane %v2918_v63, %v6821_v5 }
 0x23d   : > { %v8243_v3 = vrot.slane %v2903_v57, %v7206_v47  ;;  %v2820_v45 = vrot.slane %v2806_v56, %v6821_v5  ;;  %v8254_v20 = vrot.slane %v2920_v2, %v6821_v5  ;;  %v8257_v63 = vrot.slane %v2813_v50, %v6821_v5 }
 0x23e   : > { %5287 = vrot.lane.b32.xlu1 %v4579_v22, %s6559_s6  ;;  %v8233_v27 = vcombine.low %v4080_v62, %v4087_v13  ;;  %v8246_v22 = vpop.f32.mrf.mxu1  ;;  %v4664_v55 = vcombine.low %v4656_v37, %v4663_v4  ;;  %v4089_v13 = vcombine.low %v8056_v39, %v8093_v16  ;;  %v2941_v62 = vrot.slane %v2919_v21, %v6821_v5 }
 0x23f   : > { %v2843_v56 = vrot.slane %v2821_v15, %v6821_v5  ;;  %v8264_v51 = vrot.slane %v8246_v22, %v6821_v5  ;;  %v8267_v39 = vcombine.low %v4012_v19, %v4019_v52  ;;  %v4104_v37 = vrot.slane %v4090_v40, %v7257_v0 }
 0x240   : > { %9509 = vst [vmem:[#allocation7_spill] sm:$0xff] %v8233_v27  ;;  %5133 = vrot.lane.b32.xlu0 %v8233_v27, %s6558_s5  ;;  %v2949_v2 = vcombine.high %v2927_v35, %v2927_v35  ;;  %v2950_v4 = vcombine.high %v2934_v17, %v2934_v17  ;;  %v8271_v50 = vrot.slane %v2927_v35, %v7206_v47  ;;  %v2134_v15 = vpop.f32.mrf.mxu1 }
 0x241   : > { %9510 = vst [vmem:[#allocation25_spill] sm:$0xff] %v8267_v39  ;;  %v8274_v21 = vrot.slane %v2934_v17, %v7206_v47  ;;  %v2822_v59 = vcombine.high %v2820_v45, %v2820_v45  ;;  %v4097_v57 = vrot.slane %v4089_v13, %v7257_v0  ;;  %v9511_v19 = vcombine.low %v8132_v11, %v8137_v7 }
 0x242   : > { %5297 = vrot.lane.b32.xlu1 %v4664_v55, %s6559_s6  ;;  %v4665_v52 = vcombine.low %v8093_v16, %v8189_v10  ;;  %v2951_v35 = vcombine.high %v2941_v62, %v2941_v62  ;;  %v2836_v27 = vrot.slane %v2820_v45, %v6821_v5  ;;  %v2953_v46 = vcombine.high %v2134_v15, %v2134_v15  ;;  %v9514_v16 = vld [vmem:[#allocation8_spill] sm:$0xff] }
 0x243   : > { %v4595_v40 = vrot.slane %v9511_v19, %v7257_v0  ;;  %v8289_v53 = vrot.slane %v2843_v56, %v7206_v47  ;;  %v8292_v13 = vcombine.low %v4097_v57, %v4104_v37  ;;  %v9513_v11 = vcombine.low %v8121_v9, %v8129_v58 }
 0x244   : > { %5125 = vrot.lane.b32.xlu0 %v8267_v39, %s6558_s5  ;;  %v9515_v10 = vcombine.low %v9508_v23, %v9514_v16  ;;  %v8303_v45 = vrot.slane %v2941_v62, %v7206_v47  ;;  %v8306_v39 = vrot.slane %v2949_v2, %v7206_v47  ;;  %v8313_v57 = vrot.slane %v2950_v4, %v7206_v47 }
 0x245   : > { %9512 = vst [vmem:[#allocation26_spill] sm:$0xff] %v8292_v13  ;;  %v4588_v19 = vrot.slane %v9513_v11, %v7257_v0  ;;  %v2850_v9 = vrot.slane %v2822_v59, %v6821_v5  ;;  %v8318_v58 = vrot.slane %v8257_v63, %v7206_v47  ;;  %v4673_v62 = vrot.slane %v4665_v52, %v7257_v0 }
 0x246   : > { %4877 = vrot.lane.b32.xlu1 %v4664_v55, %s6560_s7  ;;  %v4680_v17 = vrot.slane %v9515_v10, %v7257_v0  ;;  %v8310_v55 = vrot.slane %v8254_v20, %v7206_v47  ;;  %v2853_v2 = vcombine.high %v2843_v56, %v2843_v56  ;;  %v2960_v11 = vrot.slane %v2134_v15, %v6821_v5 }
 0x247   : > { %v4596_v23 = vcombine.low %v4588_v19, %v4595_v40  ;;  %v2967_v4 = vrot.slane %v2953_v46, %v6821_v5  ;;  %v8328_v59 = vrot.slane %v2951_v35, %v7206_v47  ;;  %v4124_v16 = vcombine.low %v8318_v58, %v8289_v53 }
 0x248   : > { %5135 = vrot.lane.b32.xlu0 %v8292_v13, %s6558_s5  ;;  %v4681_v10 = vcombine.low %v4673_v62, %v4680_v17  ;;  %v9516_v40 = vcombine.low %v8152_v54, %v8146_v41  ;;  %v2851_v35 = vcombine.high %v8257_v63, %v8257_v63  ;;  %v2852_v19 = vcombine.high %v2836_v27, %v2836_v27 }
 0x249   : > { %v2854_v37 = vcombine.high %v2850_v9, %v2850_v9  ;;  %v9517_v17 = vcombine.low %v8137_v7, %v8140_v33  ;;  %v8353_v46 = vrot.slane %v2853_v2, %v7206_v47  ;;  %v2968_v56 = vcombine.high %v2960_v11, %v2960_v11 }
 0x24a   : > { %5289 = vrot.lane.b32.xlu1 %v4596_v23, %s6559_s6  ;;  %v4036_v52 = vrot.slane %v9516_v40, %v7257_v0  ;;  %v4598_v40 = vcombine.low %v8146_v41, %v7687_v6  ;;  %v2969_v15 = vcombine.high %v2967_v4, %v2967_v4  ;;  %v2976_v13 = vrot.slane %v2960_v11, %v6821_v5 }
 0x24b   : > { %v4029_v62 = vrot.slane %v9517_v17, %v7257_v0  ;;  %v8357_v63 = vrot.slane %v2850_v9, %v7206_v47  ;;  %v9518_v7 = vcombine.low %v7877_v32, %v7864_v1  ;;  %v4138_v6 = vrot.slane %v4124_v16, %v7257_v0 }
 0x24c   : > { %4879 = vrot.lane.b32.xlu0 %v4681_v10, %s6560_s7  ;;  %v3574_v9 = vrot.slane %v2851_v35, %v7206_v47  ;;  %v3582_v11 = vrot.slane %v2836_v27, %v7206_v47  ;;  %v2983_v32 = vrot.slane %v2967_v4, %v6821_v5  ;;  %v4612_v16 = vrot.slane %v4598_v40, %v7257_v0 }
 0x24d   : > { %v8360_v14 = vcombine.low %v4029_v62, %v4036_v52  ;;  %v4131_v17 = vrot.slane %v9518_v7, %v7257_v0  ;;  %v8375_v52 = vrot.slane %v2854_v37, %v7206_v47  ;;  %v4699_v62 = vcombine.low %v7864_v1, %v8318_v58 }
 0x24e   : > { %4869 = vrot.lane.b32.xlu1 %v4596_v23, %s6560_s7  ;;  %v3590_v23 = vrot.slane %v2852_v19, %v7206_v47  ;;  %v2990_v7 = vrot.slane %v2968_v56, %v6821_v5  ;;  %v2997_v35 = vrot.slane %v2969_v15, %v6821_v5  ;;  %v2998_v27 = vcombine.high %v2976_v13, %v2976_v13 }
 0x24f   : > { %v4140_v19 = vcombine.low %v3574_v9, %v8353_v46  ;;  %v4141_v37 = vcombine.low %v3582_v11, %v8357_v63  ;;  %v9519_v4 = vcombine.low %v8140_v33, %v8152_v54  ;;  %v8392_v40 = vcombine.low %v4131_v17, %v4138_v6 }
 0x250   : > { %5127 = vrot.lane.b32.xlu0 %v8360_v14, %s6558_s5  ;;  %v4700_v1 = vcombine.low %v8289_v53, %v3574_v9  ;;  %v4716_v58 = vcombine.low %v8353_v46, %v3582_v11  ;;  %v9521_v56 = vcombine.high %v8246_v22, %v8246_v22  ;;  %v8406_v41 = vrot.slane %v8264_v51, %v6821_v5 }
 0x251   : > { %v4605_v2 = vrot.slane %v9519_v4, %v7257_v0  ;;  %9520 = vst [vmem:[#allocation8_spill] sm:$0xff] %v8392_v40  ;;  %v2999_v33 = vcombine.high %v2983_v32, %v2983_v32  ;;  %v3000_v54 = vcombine.high %v2990_v7, %v2990_v7  ;;  %v3001_v53 = vcombine.high %v2997_v35, %v2997_v35 }
 0x252   : > { %5299 = vrot.lane.b32.xlu1 %v4681_v10, %s6559_s6  ;;  %v8400_v15 = vrot.slane %v9521_v56, %v6821_v5  ;;  %v3066_v10 = vcombine.high %v8264_v51, %v8264_v51  ;;  %v8411_v46 = vrot.slane %v2976_v13, %v7206_v47  ;;  %v8414_v22 = vrot.slane %v2990_v7, %v7206_v47 }
 0x253   : > { %v4613_v17 = vcombine.low %v4605_v2, %v4612_v16  ;;  %v8417_v6 = vrot.slane %v2998_v27, %v7206_v47  ;;  %v9522_v51 = vcombine.high %v8254_v20, %v8254_v20  ;;  %v8426_v2 = vpop.f32.mrf.mxu1  ;;  %v4148_v11 = vrot.slane %v4140_v19, %v7257_v0 }
 0x254   : > { %5139 = vrot.lane.b32.xlu0 %v8392_v40, %s6558_s5  ;;  %v4155_v13 = vrot.slane %v4141_v37, %v7257_v0  ;;  %v4157_v16 = vcombine.low %v3590_v23, %v8375_v52  ;;  %v8434_v27 = vrot.slane %v3066_v10, %v6821_v5  ;;  %v8437_v20 = vrot.slane %v2983_v32, %v7206_v47  ;;  %v5302_v40 = vpop.permute.xlu1 %5301 }
 0x255   : > { %v8423_v9 = vrot.slane %v9522_v51, %v7206_v47  ;;  %v8440_v4 = vrot.slane %v2997_v35, %v7206_v47  ;;  %v8443_v56 = vrot.slane %v3000_v54, %v7206_v47  ;;  %v4707_v19 = vrot.slane %v4699_v62, %v7257_v0  ;;  %v2137_v62 = vpop.f32.mrf.mxu1 }
 0x256   : > { %5291 = vrot.lane.b32.xlu1 %v4613_v17, %s6559_s6  ;;  %v4714_v37 = vrot.slane %v4700_v1, %v7257_v0  ;;  %v4717_v51 = vcombine.low %v8357_v63, %v3590_v23  ;;  %v8450_v10 = vrot.slane %v2999_v33, %v7206_v47  ;;  %v8453_v32 = vrot.slane %v3001_v53, %v7206_v47 }
 0x257   : > { %v8463_v63 = vcombine.low %v4148_v11, %v4155_v13  ;;  %v4165_v23 = vrot.slane %v4157_v16, %v7257_v0  ;;  %v3118_v1 = vadd.s32 24, %v6814_v61  ;;  %v5849_v7 = vmul.f32 %v7781_v49, %v7781_v49 }
 0x258   : > { %4871 = vrot.lane.b32.xlu0 %v4613_v17, %s6560_s7  ;;  %v4724_v17 = vrot.slane %v4716_v58, %v7257_v0  ;;  %v8474_v35 = vcombine.low %v4707_v19, %v4714_v37  ;;  %v9524_v61 = vcombine.low %v8183_v30, %v8179_v24  ;;  %v4733_v13 = vcombine.low %v8375_v52, %v8183_v30 }
 0x259   : > { %9523 = vst [vmem:[#allocation27_spill] sm:$0xff] %v8463_v63  ;;  %v8489_v58 = vsel %vm628_vm2, %v7781_v49, 0.0  ;;  %v5853_v19 = vmul.f32 %v7803_v18, %v7803_v18  ;;  %v3002_v37 = vcombine.high %v2137_v62, %v2137_v62  ;;  %v9526_v30 = vcombine.low %v8195_v38, %v8198_v8 }
 0x25a   : > { %4881 = vrot.lane.b32.xlu1 %v7570_v26, %s6560_s7  ;;  %v4731_v26 = vrot.slane %v4717_v51, %v7257_v0  ;;  %v4172_v11 = vrot.slane %v9524_v61, %v7257_v0  ;;  %v3144_v61 = vand.u32 1, %v3118_v1  ;;  %v9527_v49 = vcombine.low %v8203_v42, %v8209_v36 }
 0x25b   : > { %v4182_v52 = vrot.slane %v9526_v30, %v7257_v0  ;;  %v8506_v16 = vsel %vm628_vm2, %v5849_v7, 0.0  ;;  %v8510_v33 = vsel %vm628_vm2, %v7803_v18, 0.0  ;;  %v3767_v1 = vcombine.low %v7414_v29, %v7551_v48 }
 0x25c   : > { %5141 = vrot.lane.b32.xlu0 %v8463_v63, %s6558_s5  ;;  %v8495_v51 = vcombine.low %v4165_v23, %v4172_v11  ;;  %v4189_v53 = vrot.slane %v9527_v49, %v7257_v0  ;;  %v3009_v23 = vrot.slane %v2137_v62, %v6821_v5  ;;  %v5854_v11 = vmul.f32 %v7940_v31, %v7940_v31 }
 0x25d   : > { %v8517_v30 = vcombine.low %v4724_v17, %v4731_v26  ;;  %v4741_v7 = vrot.slane %v4733_v13, %v7257_v0  ;;  %v4751_v49 = vcombine.low %v8209_v36, %v8212_v12  ;;  %v8525_v18 = vsel %vm628_vm2, %v5853_v19, 0.0  ;;  %v5138_v36 = vpop.permute.xlu0 %5137 }
 0x25e   : > { %5303 = vrot.lane.b32.xlu1 %v8474_v35, %s6559_s6  ;;  %9525 = vst [vmem:[#allocation28_spill] sm:$0xff] %v8495_v51  ;;  %v8529_v62 = vsel %vm628_vm2, %v7940_v31, 0.0  ;;  %v5850_v29 = vmul.f32 %v7956_v34, %v7956_v34  ;;  %v9528_v48 = vcombine.low %v7400_v28, %v7395_v60  ;;  %v3016_v26 = vrot.slane %v3002_v37, %v6821_v5  ;;  %v9532_v37 = vld [vmem:[#allocation4_spill] sm:$0xff] }
 0x25f   : > { %vm8540_vm9 = vcmp.eq.s32.totalorder %v3144_v61, 0  ;;  %v9531_v31 = vcombine.low %v8179_v24, %v8195_v38  ;;  %v8548_v19 = vcombine.low %v4182_v52, %v4189_v53  ;;  %v8552_v60 = vsel %vm628_vm2, %v7956_v34, 0.0 }
 0x260   : > { %5143 = vrot.lane.b32.xlu0 %v8495_v51, %s6558_s5  ;;  %v3764_v17 = vrot.slane %v9528_v48, %v7257_v0  ;;  %v3017_v28 = vcombine.high %v3009_v23, %v3009_v23  ;;  %v9533_v48 = vld [vmem:[#allocation9_spill] sm:$0xff]  ;;  %v3781_v63 = vrot.slane %v3767_v1, %v7257_v0  ;;  %v8560_v51 = vsel %vm628_vm2, %v5854_v11, 0.0  ;;  %v9536_v11 = vld [vmem:[#allocation11_spill] sm:$0xff] }
 0x261   : > { %v4748_v13 = vrot.slane %v9531_v31, %v7257_v0  ;;  %v9534_v54 = vcombine.low %v9532_v37, %v9533_v48  ;;  %v9535_v34 = vcombine.low %v8198_v8, %v8203_v42  ;;  %v4765_v53 = vrot.slane %v4751_v49, %v7257_v0 }
 0x262   : > { %5305 = vrot.lane.b32.xlu1 %v8517_v30, %s6559_s6  ;;  %v8574_v52 = vsel %vm8540_vm9, %v5138_v36, %v5302_v40  ;;  %v3018_v37 = vcombine.high %v3016_v26, %v3016_v26  ;;  %v8581_v42 = vrot.slane %v3009_v23, %v6821_v5  ;;  %v8584_v8 = vrot.slane %v3016_v26, %v6821_v5  ;;  %v4840_v40 = vpop.permute.xlu0 %4839 }
 0x263   : > { %v3757_v61 = vrot.slane %v9534_v54, %v7257_v0  ;;  %v4749_v24 = vcombine.low %v4741_v7, %v4748_v13  ;;  %v4758_v38 = vrot.slane %v9535_v34, %v7257_v0  ;;  %v8570_v54 = vsel %vm628_vm2, %v5850_v29, 0.0  ;;  %v9537_v7 = vld [vmem:[#allocation10_spill] sm:$0xff] }
 0x264   : > { %5145 = vrot.lane.b32.xlu0 %v8548_v19, %s6558_s5  ;;  %v9538_v31 = vcombine.low %v9536_v11, %v9537_v7  ;;  %v6382_v49 = vpack.c.bf16 %v8574_v52, %v8574_v52  ;;  %v8590_v29 = vrot.slane %v3017_v28, %v6821_v5  ;;  %v9539_v23 = vcombine.low %v8243_v3, %v8271_v50  ;;  %v4842_v11 = vpop.permute.xlu1 %4841 }
 0x265   : > { %v3765_v1 = vcombine.low %v3757_v61, %v3764_v17  ;;  %v4766_v7 = vcombine.low %v4758_v38, %v4765_v53  ;;  %v9540_v3 = vcombine.low %v8303_v45, %v8306_v39 }
 0x266   : > { %v3774_v13 = vrot.slane %v9538_v31, %v7257_v0  ;;  %5307 = vrot.lane.b32.xlu1 %v4749_v24, %s6559_s6  ;;  %v4199_v26 = vrot.slane %v9539_v23, %v7257_v0  ;;  %5687 = vst.msk [vmem:[%s7772_s23 + $0x9c] sm:$0xf] %vm5647_vm6, %v6382_v49  ;;  %v4209_v31 = vcombine.low %v8310_v55, %v8313_v57 }
 0x267   : > { %v4933_v17 = vsel %vm7979_vm8, %v3765_v1, %v4840_v40  ;;  %v4206_v1 = vrot.slane %v9540_v3, %v7257_v0  ;;  %v5851_v49 = vmul.f32 %v8009_v44, %v8009_v44  ;;  %v3047_v40 = vcombine.high %v8581_v42, %v8581_v42 }
 0x268   : > { %v3782_v36 = vcombine.low %v3774_v13, %v3781_v63  ;;  %v6345_v48 = vpack.c.bf16 %v4933_v17, %v4933_v17  ;;  %v5715_v61 = vsel %vm628_vm2, %v4933_v17, 0.0  ;;  %v5847_v34 = vmul.f32 %v4933_v17, %v4933_v17  ;;  %4883 = vrot.lane.b32.xlu0 %v8474_v35, %s6560_s7  ;;  %v5106_v13 = vpop.permute.xlu0 %5105  ;;  %v9541_v17 = vld [vmem:[#allocation12_spill] sm:$0xff] }
 0x269   : > { %v5716_v28 = vadd.f32 %v5715_v61, %v7991_v43  ;;  %v8625_v61 = vrot.slane %v3018_v37, %v6821_v5 }
 0x26a   : > { %v4934_v63 = vsel %vm8540_vm9, %v3782_v36, %v4842_v11  ;;  %5650 = vst.msk [vmem:[%s7772_s23 + $0x8] sm:$0xf] %vm5647_vm6, %v6345_v48  ;;  %v5912_v38 = vsel %vm628_vm2, %v5847_v34, 0.0  ;;  %5309 = vrot.lane.b32.xlu1 %v4766_v7, %s6559_s6  ;;  %v5723_v48 = vsel %vm628_vm2, %v8009_v44, 0.0  ;;  %v4966_v34 = vrot.slane %v8581_v42, %v7206_v47  ;;  %v9557_v42 = vld [vmem:[#allocation16_spill] sm:$0xff] }
 0x26b   : > { %v6346_v53 = vpack.c.bf16 %v4934_v63, %v4934_v63  ;;  %v5717_v35 = vsel %vm628_vm2, %v4934_v63, 0.0  ;;  %v5848_v43 = vmul.f32 %v4934_v63, %v4934_v63  ;;  %v5913_v36 = vadd.f32 %v5912_v38, %v9541_v17  ;;  %v5270_v63 = vpop.permute.xlu1 %5269 }
 0x26c   : > { %v5718_v23 = vadd.f32 %v5717_v35, %v5716_v28  ;;  %4887 = vrot.lane.b32.xlu0 %v4749_v24, %s6560_s7  ;;  %v3049_v28 = vcombine.high %v8590_v29, %v8590_v29  ;;  %v5362_v37 = vsel %vm8540_vm9, %v5106_v13, %v5270_v63  ;;  %v8640_v35 = vcombine.low %v4199_v26, %v4206_v1 }
 0x26d   : > { %5651 = vst.msk [vmem:[%s7772_s23 + $0xc] sm:$0xf] %vm5647_vm6, %v6346_v53  ;;  %v5914_v11 = vsel %vm628_vm2, %v5848_v43, 0.0  ;;  %v6350_v38 = vpack.c.bf16 %v5362_v37, %v5362_v37  ;;  %v5116_v53 = vpop.permute.xlu0 %5115  ;;  %v9542_v24 = vcombine.low %v8328_v59, %v8274_v21  ;;  %v4223_v17 = vrot.slane %v4209_v31, %v7257_v0 }
 0x26e   : > { %v5720_v3 = vadd.f32 %v8489_v58, %v5718_v23  ;;  %v5915_v44 = vadd.f32 %v5914_v11, %v5913_v36  ;;  %4885 = vrot.lane.b32.xlu1 %v8517_v30, %s6560_s7  ;;  %v5920_v58 = vsel %vm628_vm2, %v5851_v49, 0.0  ;;  %v8650_v36 = vrot.slane %v8590_v29, %v7206_v47 }
 0x26f   : > { %v4216_v43 = vrot.slane %v9542_v24, %v7257_v0  ;;  %5655 = vst.msk [vmem:[%s7772_s23 + $0x1c] sm:$0xf] %vm5647_vm6, %v6350_v38  ;;  %v5852_v26 = vmul.f32 %v5362_v37, %v5362_v37  ;;  %v4850_v1 = vpop.permute.xlu1 %4849  ;;  %v9543_v31 = vcombine.low %v8271_v50, %v8303_v45  ;;  %v9544_v23 = vcombine.low %v8306_v39, %v8328_v59  ;;  %v9547_v38 = vld [vmem:[#allocation5_spill] sm:$0xff] }
 0x270   : > { %v5917_v13 = vadd.f32 %v8506_v16, %v5915_v44  ;;  %v5722_v30 = vadd.f32 %v8552_v60, %v5720_v3  ;;  %5147 = vrot.lane.b32.xlu0 %v8640_v35, %s6558_s5  ;;  %v4785_v16 = vcombine.low %v8313_v57, %v8423_v9  ;;  %v9545_v3 = vld [vmem:[#allocation15_spill] sm:$0xff]  ;;  %v9546_v50 = vcombine.low %v8414_v22, %v8417_v6 }
 0x271   : > { %v4775_v49 = vrot.slane %v9543_v31, %v7257_v0  ;;  %v4782_v11 = vrot.slane %v9544_v23, %v7257_v0  ;;  %v8672_v44 = vsel %vm8540_vm9, %v9545_v3, %v4850_v1  ;;  %v5725_v39 = vsel %vm628_vm2, %v5362_v37, 0.0  ;;  %v5108_v57 = vpop.permute.xlu0 %5107 }
 0x272   : > { %v5724_v60 = vadd.f32 %v5723_v48, %v5722_v30  ;;  %v5919_v63 = vadd.f32 %v8570_v54, %v5917_v13  ;;  %v4240_v45 = vrot.slane %v9546_v50, %v7257_v0  ;;  %v6354_v59 = vpack.c.bf16 %v8672_v44, %v8672_v44  ;;  %4889 = vrot.lane.b32.xlu1 %v4766_v7, %s6560_s7 }
 0x273   : > { %v8682_v48 = vcombine.low %v4216_v43, %v4223_v17  ;;  %v4243_v54 = vcombine.low %v8440_v4, %v8450_v10  ;;  %v5731_v24 = vsel %vm628_vm2, %v9547_v38, 0.0  ;;  %v5855_v13 = vmul.f32 %v9547_v38, %v9547_v38  ;;  %v5272_v31 = vpop.permute.xlu1 %5271 }
 0x274   : > { %v5921_v30 = vadd.f32 %v5920_v58, %v5919_v63  ;;  %v5726_v1 = vadd.f32 %v5725_v39, %v5724_v60  ;;  %v5922_v37 = vsel %vm628_vm2, %v5852_v26, 0.0  ;;  %5659 = vst.msk [vmem:[%s7772_s23 + $0x2c] sm:$0xf] %vm5647_vm6, %v6354_v59  ;;  %v4783_v7 = vcombine.low %v4775_v49, %v4782_v11 }
 0x275   : > { %5149 = vrot.lane.b32.xlu0 %v8682_v48, %s6558_s5  ;;  %v4799_v43 = vrot.slane %v4785_v16, %v7257_v0  ;;  %v9548_v17 = vcombine.low %v8423_v9, %v8411_v46  ;;  %v8703_v26 = vsel %vm7751_vm5, %v5108_v57, %v5272_v31  ;;  %v9550_v49 = vcombine.low %v8274_v21, %v8310_v55  ;;  %v4852_v9 = vpop.permute.xlu0 %4851  ;;  %v9552_v55 = vld [vmem:[#allocation17_spill] sm:$0xff] }
 0x276   : > { %v5728_v58 = vadd.f32 %v8510_v33, %v5726_v1  ;;  %v5923_v60 = vadd.f32 %v5922_v37, %v5921_v30  ;;  %v6355_v16 = vpack.c.bf16 %v8703_v26, %v8703_v26  ;;  %5311 = vrot.lane.b32.xlu1 %v4783_v7, %s6559_s6  ;;  %v9551_v33 = vcombine.low %v8443_v56, %v8437_v20 }
 0x277   : > { %v4233_v23 = vrot.slane %v9548_v17, %v7257_v0  ;;  %v4792_v11 = vrot.slane %v9550_v49, %v7257_v0  ;;  %v4257_v39 = vrot.slane %v4243_v54, %v7257_v0  ;;  %v8724_v57 = vsel %vm7751_vm5, %v9552_v55, %v4852_v9  ;;  %v5280_v30 = vpop.permute.xlu1 %5279 }
 0x278   : > { %v4250_v50 = vrot.slane %v9551_v33, %v7257_v0  ;;  %v5925_v59 = vadd.f32 %v8525_v18, %v5923_v60  ;;  %v5730_v21 = vadd.f32 %v8529_v62, %v5728_v58  ;;  %5660 = vst.msk [vmem:[%s7772_s23 + $0x30] sm:$0xf] %vm5647_vm6, %v6355_v16  ;;  %v6359_v54 = vpack.c.bf16 %v8724_v57, %v8724_v57 }
 0x279   : > { %v8712_v3 = vcombine.low %v4233_v23, %v4240_v45  ;;  %v9553_v45 = vcombine.low %v8411_v46, %v8414_v22  ;;  %v8734_v18 = vcombine.low %v4792_v11, %v4799_v43  ;;  %v9554_v62 = vcombine.low %v8417_v6, %v8443_v56 }
 0x27a   : > { %v4819_v46 = vcombine.low %v8450_v10, %v8453_v32  ;;  %v8748_v22 = vrot.slane %v3047_v40, %v7206_v47  ;;  %v8750_v37 = vadd.f32 %v5731_v24, %v5730_v21  ;;  %v5927_v31 = vadd.f32 %v8560_v51, %v5925_v59  ;;  %5664 = vst.msk [vmem:[%s7772_s23 + $0x40] sm:$0xf] %vm5647_vm6, %v6359_v54  ;;  %v5118_v32 = vpop.permute.xlu0 %5117 }
 0x27b   : > { %v4809_v38 = vrot.slane %v9553_v45, %v7257_v0  ;;  %5151 = vrot.lane.b32.xlu0 %v8712_v3, %s6558_s5  ;;  %v4816_v1 = vrot.slane %v9554_v62, %v7257_v0  ;;  %v8755_v43 = vsel %vm7751_vm5, %v5116_v53, %v5280_v30  ;;  %v5928_v6 = vsel %vm628_vm2, %v5855_v13, 0.0  ;;  %5313 = vrot.lane.b32.xlu1 %v8734_v18, %s6559_s6 }
 0x27c   : > { %v8762_v56 = vrot.slane %v3049_v28, %v7206_v47  ;;  %v6363_v10 = vpack.c.bf16 %v8755_v43, %v8755_v43  ;;  %v8770_v51 = vcombine.low %v4250_v50, %v4257_v39  ;;  %v3048_v40 = vcombine.high %v8584_v8, %v8584_v8  ;;  %v5274_v28 = vpop.permute.xlu1 %5273 }
 0x27d   : > { %v8774_v53 = vadd.f32 %v5928_v6, %v5927_v31  ;;  %v3050_v29 = vcombine.high %v8625_v61, %v8625_v61  ;;  %v4817_v24 = vcombine.low %v4809_v38, %v4816_v1  ;;  %v9555_v13 = vcombine.low %v8437_v20, %v8440_v4  ;;  %v9558_v38 = vld [vmem:[#allocation20_spill] sm:$0xff] }
 0x27e   : > { %5668 = vst.msk [vmem:[%s7772_s23 + $0x50] sm:$0xf] %vm5647_vm6, %v6363_v10  ;;  %v4833_v23 = vrot.slane %v4819_v46, %v7257_v0  ;;  %v3081_v58 = vrot.slane %v8400_v15, %v6821_v5  ;;  %v3096_v60 = vcombine.high %v8406_v41, %v8406_v41  ;;  %v3098_v49 = vcombine.high %v8434_v27, %v8434_v27 }
 0x27f   : > { %5153 = vrot.lane.b32.xlu0 %v8770_v51, %s6558_s5  ;;  %v4826_v17 = vrot.slane %v9555_v13, %v7257_v0  ;;  %v4982_v11 = vrot.slane %v8584_v8, %v7206_v47  ;;  %v9556_v16 = vcombine.high %v8400_v15, %v8400_v15  ;;  %v8801_v4 = vrot.slane %v8406_v41, %v7206_v47  ;;  %v4860_v8 = vpop.permute.xlu0 %4859 }
 0x280   : > { %v5031_v9 = vcombine.low %v4966_v34, %v8650_v36  ;;  %v5032_v33 = vcombine.low %v8748_v22, %v8762_v56  ;;  %5315 = vrot.lane.b32.xlu1 %v4817_v24, %s6559_s6  ;;  %v8812_v50 = vrot.slane %v8434_v27, %v7206_v47  ;;  %v3106_v41 = vrot.slane %v8426_v2, %v6821_v5  ;;  %v4854_v21 = vpop.permute.xlu1 %4853 }
 0x281   : > { %v3095_v20 = vrot.slane %v9556_v16, %v6821_v5  ;;  %v8818_v15 = vrot.slane %v8625_v61, %v7206_v47  ;;  %v8823_v34 = vsel %vm7751_vm5, %v9557_v42, %v4860_v8  ;;  %v4990_v39 = vrot.slane %v3048_v40, %v7206_v47 }
 0x282   : > { %v4994_v59 = vrot.slane %v3050_v29, %v7206_v47  ;;  %v6367_v27 = vpack.c.bf16 %v8823_v34, %v8823_v34  ;;  %v4834_v2 = vcombine.low %v4826_v17, %v4833_v23  ;;  %v8831_v55 = vrot.slane %v3096_v60, %v7206_v47 }
 0x283   : > { %4891 = vrot.lane.b32.xlu0 %v4783_v7, %s6560_s7  ;;  %v8834_v61 = vrot.slane %v3098_v49, %v7206_v47  ;;  %v5048_v45 = vcombine.low %v4982_v11, %v8818_v15  ;;  %v8840_v30 = vsel %vm7914_vm7, %v9558_v38, %v4854_v21  ;;  %v5039_v62 = vrot.slane %v5031_v9, %v7257_v0  ;;  %v5110_v46 = vpop.permute.xlu0 %5109 }
 0x284   : > { %v5049_v1 = vcombine.low %v4990_v39, %v4994_v59  ;;  %5672 = vst.msk [vmem:[%s7772_s23 + $0x60] sm:$0xf] %vm5647_vm6, %v6367_v27  ;;  %v6360_v7 = vpack.c.bf16 %v8840_v30, %v8840_v30  ;;  %5317 = vrot.lane.b32.xlu1 %v4834_v2, %s6559_s6  ;;  %v5046_v31 = vrot.slane %v5032_v33, %v7257_v0  ;;  %v5282_v49 = vpop.permute.xlu1 %5281 }
 0x285   : > { %v3097_v6 = vcombine.high %v3081_v58, %v3081_v58  ;;  %v3099_v10 = vcombine.high %v3095_v20, %v3095_v20  ;;  %v5014_v40 = vrot.slane %v3081_v58, %v7206_v47  ;;  %v8852_v29 = vsel %vm7914_vm7, %v5110_v46, %v5274_v28 }
 0x286   : > { %v3113_v13 = vrot.slane %v3106_v41, %v6821_v5  ;;  %v5195_v17 = vcombine.low %v8650_v36, %v8748_v22  ;;  %v5196_v23 = vcombine.low %v8762_v56, %v4982_v11  ;;  %5665 = vst.msk [vmem:[%s7772_s23 + $0x44] sm:$0xf] %vm5647_vm6, %v6360_v7  ;;  %v6356_v60 = vpack.c.bf16 %v8852_v29, %v8852_v29 }
 0x287   : > { %4895 = vrot.lane.b32.xlu0 %v4817_v24, %s6560_s7  ;;  %v8864_v58 = vrot.slane %v3095_v20, %v7206_v47  ;;  %v5065_v28 = vcombine.low %v8801_v4, %v8812_v50  ;;  %v5066_v5 = vcombine.low %v8831_v55, %v8834_v61  ;;  %v8872_v36 = vsel %vm7914_vm7, %v5118_v32, %v5282_v49  ;;  %v5120_v56 = vpop.permute.xlu0 %5119 }
 0x288   : > { %5661 = vst.msk [vmem:[%s7772_s23 + $0x34] sm:$0xf] %vm5647_vm6, %v6356_v60  ;;  %v6364_v22 = vpack.c.bf16 %v8872_v36, %v8872_v36  ;;  %4893 = vrot.lane.b32.xlu1 %v8734_v18, %s6560_s7  ;;  %v5047_v24 = vcombine.low %v5039_v62, %v5046_v31  ;;  %v5056_v11 = vrot.slane %v5048_v45, %v7257_v0  ;;  %v4862_v41 = vpop.permute.xlu1 %4861 }
 0x289   : > { %v5063_v16 = vrot.slane %v5049_v1, %v7257_v0  ;;  %v8883_v20 = vrot.slane %v3097_v6, %v7206_v47  ;;  %v5026_v32 = vrot.slane %v3099_v10, %v7206_v47  ;;  %v5212_v9 = vcombine.low %v8818_v15, %v4990_v39  ;;  %v9560_v39 = vld [vmem:[#allocation18_spill] sm:$0xff] }
 0x28a   : > { %v5213_v33 = vcombine.low %v4994_v59, %v8801_v4  ;;  %v5229_v8 = vcombine.low %v8812_v50, %v8831_v55  ;;  %v5030_v18 = vrot.slane %v3113_v13, %v7206_v47  ;;  %5669 = vst.msk [vmem:[%s7772_s23 + $0x54] sm:$0xf] %vm5647_vm6, %v6364_v22  ;;  %v5203_v42 = vrot.slane %v5195_v17, %v7257_v0 }
 0x28b   : > { %5155 = vrot.lane.b32.xlu0 %v5047_v24, %s6558_s5  ;;  %v5210_v27 = vrot.slane %v5196_v23, %v7257_v0  ;;  %v5082_v21 = vcombine.low %v5014_v40, %v8864_v58  ;;  %v5230_v15 = vcombine.low %v8834_v61, %v5014_v40  ;;  %v5083_v4 = vcombine.low %v8883_v20, %v5026_v32  ;;  %v5112_v59 = vpop.permute.xlu0 %5111 }
 0x28c   : > { %v8902_v47 = vsel %vm7914_vm7, %v9560_v39, %v4862_v41  ;;  %4897 = vrot.lane.b32.xlu1 %v4834_v2, %s6560_s7  ;;  %v5064_v55 = vcombine.low %v5056_v11, %v5063_v16  ;;  %v5073_v45 = vrot.slane %v5065_v28, %v7257_v0  ;;  %v5080_v38 = vrot.slane %v5066_v5, %v7257_v0  ;;  %v5276_v46 = vpop.permute.xlu1 %5275  ;;  %v9561_v5 = vld [vmem:[#allocation22_spill] sm:$0xff] }
 0x28d   : > { %v6368_v50 = vpack.c.bf16 %v8902_v47, %v8902_v47  ;;  %v5220_v61 = vrot.slane %v5212_v9, %v7257_v0  ;;  %v5227_v62 = vrot.slane %v5213_v33, %v7257_v0  ;;  %v5247_v1 = vcombine.low %v5026_v32, %v5030_v18 }
 0x28e   : > { %v5856_v7 = vmul.f32 %v8672_v44, %v8672_v44  ;;  %v5211_v31 = vcombine.low %v5203_v42, %v5210_v27  ;;  %v5365_v2 = vsel %vm7979_vm8, %v5112_v59, %v5276_v46  ;;  %v5237_v6 = vrot.slane %v5229_v8, %v7257_v0 }
 0x28f   : > { %5673 = vst.msk [vmem:[%s7772_s23 + $0x64] sm:$0xf] %vm5647_vm6, %v6368_v50  ;;  %5157 = vrot.lane.b32.xlu0 %v5064_v55, %s6558_s5  ;;  %v5090_v10 = vrot.slane %v5082_v21, %v7257_v0  ;;  %v5097_v40 = vrot.slane %v5083_v4, %v7257_v0  ;;  %v5733_v13 = vsel %vm628_vm2, %v8672_v44, 0.0  ;;  %v6357_v17 = vpack.c.bf16 %v5365_v2, %v5365_v2  ;;  %v4856_v23 = vpop.permute.xlu0 %4855  ;;  %v9562_v21 = vld [vmem:[#allocation21_spill] sm:$0xff] }
 0x290   : > { %5319 = vrot.lane.b32.xlu1 %v5211_v31, %s6559_s6  ;;  %v5081_v60 = vcombine.low %v5073_v45, %v5080_v38  ;;  %v5244_v49 = vrot.slane %v5230_v15, %v7257_v0  ;;  %v5734_v28 = vadd.f32 %v5733_v13, %v8750_v37  ;;  %v8929_v22 = vsel %vm7979_vm8, %v9561_v5, %v4856_v23  ;;  %v5284_v9 = vpop.permute.xlu1 %5283  ;;  %v9563_v23 = vld [vmem:[#allocation13_spill] sm:$0xff] }
 0x291   : > { %v5228_v24 = vcombine.low %v5220_v61, %v5227_v62  ;;  %v5246_v11 = vcombine.low %v8864_v58, %v8883_v20  ;;  %v5930_v44 = vsel %vm628_vm2, %v5856_v7, 0.0  ;;  %v5857_v16 = vmul.f32 %v8703_v26, %v8703_v26  ;;  %5662 = vst.msk [vmem:[%s7772_s23 + $0x38] sm:$0xf] %vm5647_vm6, %v6357_v17 }
 0x292   : > { %v5858_v32 = vmul.f32 %v8852_v29, %v8852_v29  ;;  %v6361_v37 = vpack.c.bf16 %v8929_v22, %v8929_v22  ;;  %v5261_v33 = vrot.slane %v5247_v1, %v7257_v0  ;;  %v5931_v58 = vadd.f32 %v5930_v44, %v8774_v53 }
 0x293   : > { %5159 = vrot.lane.b32.xlu0 %v5081_v60, %s6558_s5  ;;  %v8947_v20 = vsel %vm7979_vm8, %v5120_v56, %v5284_v9  ;;  %v5098_v8 = vcombine.low %v5090_v10, %v5097_v40  ;;  %v5735_v18 = vsel %vm628_vm2, %v8703_v26, 0.0  ;;  %v5737_v41 = vsel %vm628_vm2, %v8852_v29, 0.0  ;;  %v4864_v53 = vpop.permute.xlu0 %4863 }
 0x294   : > { %v5859_v42 = vmul.f32 %v5365_v2, %v5365_v2  ;;  %5666 = vst.msk [vmem:[%s7772_s23 + $0x48] sm:$0xf] %vm5647_vm6, %v6361_v37  ;;  %v6365_v27 = vpack.c.bf16 %v8947_v20, %v8947_v20  ;;  %5321 = vrot.lane.b32.xlu1 %v5228_v24, %s6559_s6  ;;  %v5736_v56 = vadd.f32 %v5735_v18, %v5734_v28  ;;  %v5932_v29 = vsel %vm628_vm2, %v5857_v16, 0.0  ;;  %v5278_v55 = vpop.permute.xlu1 %5277 }
 0x295   : > { %v8961_v15 = vsel %vm7979_vm8, %v9562_v21, %v4864_v53  ;;  %v5245_v26 = vcombine.low %v5237_v6, %v5244_v49  ;;  %v5254_v4 = vrot.slane %v5246_v11, %v7257_v0  ;;  %v5934_v39 = vsel %vm628_vm2, %v5858_v32, 0.0 }
 0x296   : > { %v5739_v50 = vsel %vm628_vm2, %v5365_v2, 0.0  ;;  %5670 = vst.msk [vmem:[%s7772_s23 + $0x58] sm:$0xf] %vm5647_vm6, %v6365_v27  ;;  %v6369_v59 = vpack.c.bf16 %v8961_v15, %v8961_v15  ;;  %v5933_v45 = vadd.f32 %v5932_v29, %v5931_v58  ;;  %v5738_v38 = vadd.f32 %v5737_v41, %v5736_v56 }
 0x297   : > { %5161 = vrot.lane.b32.xlu0 %v5098_v8, %s6558_s5  ;;  %v5936_v61 = vsel %vm628_vm2, %v5859_v42, 0.0  ;;  %v5114_v0 = vpop.permute.xlu0 %5113  ;;  %v5262_v46 = vcombine.low %v5254_v4, %v5261_v33  ;;  %v5861_v31 = vmul.f32 %v8724_v57, %v8724_v57  ;;  %v5743_v49 = vsel %vm628_vm2, %v8724_v57, 0.0 }
 0x298   : > { %5674 = vst.msk [vmem:[%s7772_s23 + $0x68] sm:$0xf] %vm5647_vm6, %v6369_v59  ;;  %5323 = vrot.lane.b32.xlu1 %v5245_v26, %s6559_s6  ;;  %v5935_v62 = vadd.f32 %v5934_v39, %v5933_v45  ;;  %v5740_v1 = vadd.f32 %v5739_v50, %v5738_v38  ;;  %v5366_v7 = vsel %vm8540_vm9, %v5114_v0, %v5278_v55  ;;  %v4858_v40 = vpop.permute.xlu1 %4857  ;;  %v5745_v37 = vsel %vm628_vm2, %v8840_v30, 0.0  ;;  %v9564_v50 = vld [vmem:[#allocation3_spill] sm:$0xff] }
 0x299   : > { %v6358_v2 = vpack.c.bf16 %v5366_v7, %v5366_v7  ;;  %v5741_v6 = vsel %vm628_vm2, %v5366_v7, 0.0  ;;  %v5860_v10 = vmul.f32 %v5366_v7, %v5366_v7  ;;  %v4942_v60 = vsel %vm8540_vm9, %v9563_v23, %v4858_v40 }
 0x29a   : > { %v5937_v13 = vadd.f32 %v5936_v61, %v5935_v62  ;;  %v5742_v17 = vadd.f32 %v5741_v6, %v5740_v1  ;;  %v5862_v28 = vmul.f32 %v8840_v30, %v8840_v30  ;;  %v6362_v24 = vpack.c.bf16 %v4942_v60, %v4942_v60 }
 0x29b   : > { %5663 = vst.msk [vmem:[%s7772_s23 + $0x3c] sm:$0xf] %vm5647_vm6, %v6358_v2  ;;  %v5938_v5 = vsel %vm628_vm2, %v5860_v10, 0.0  ;;  %v5122_v11 = vpop.permute.xlu0 %5121  ;;  %v5940_v32 = vsel %vm628_vm2, %v5861_v31, 0.0  ;;  %v5863_v57 = vmul.f32 %v8929_v22, %v8929_v22  ;;  %v5747_v18 = vsel %vm628_vm2, %v8929_v22, 0.0 }
 0x29c   : > { %5325 = vrot.lane.b32.xlu1 %v5262_v46, %s6559_s6  ;;  %v5744_v44 = vadd.f32 %v5743_v49, %v5742_v17  ;;  %v5939_v16 = vadd.f32 %v5938_v5, %v5937_v13  ;;  %5667 = vst.msk [vmem:[%s7772_s23 + $0x4c] sm:$0xf] %vm5647_vm6, %v6362_v24  ;;  %v5294_v9 = vpop.permute.xlu1 %5293  ;;  %v5942_v8 = vsel %vm628_vm2, %v5862_v28, 0.0  ;;  %v5864_v41 = vmul.f32 %v4942_v60, %v4942_v60  ;;  %v9565_v28 = vld [vmem:[#allocation6_spill] sm:$0xff] }
 0x29d   : > { %v5865_v56 = vmul.f32 %v8755_v43, %v8755_v43  ;;  %v5944_v21 = vsel %vm628_vm2, %v5863_v57, 0.0  ;;  %v5749_v26 = vsel %vm628_vm2, %v4942_v60, 0.0  ;;  %v5751_v55 = vsel %vm628_vm2, %v8755_v43, 0.0  ;;  %v9566_v57 = vld [vmem:[#allocation2_spill] sm:$0xff] }
 0x29e   : > { %v5941_v33 = vadd.f32 %v5940_v32, %v5939_v16  ;;  %v5746_v58 = vadd.f32 %v5745_v37, %v5744_v44  ;;  %v5866_v45 = vmul.f32 %v8872_v36, %v8872_v36  ;;  %v5946_v38 = vsel %vm628_vm2, %v5864_v41, 0.0 }
 0x29f   : > { %v5130_v42 = vpop.permute.xlu0 %5129  ;;  %v5948_v7 = vsel %vm628_vm2, %v5865_v56, 0.0  ;;  %v5753_v46 = vsel %vm628_vm2, %v8872_v36, 0.0  ;;  %v5867_v43 = vmul.f32 %v8947_v20, %v8947_v20  ;;  %v5755_v13 = vsel %vm628_vm2, %v8947_v20, 0.0 }
 0x2a0   : > { %v5748_v27 = vadd.f32 %v5747_v18, %v5746_v58  ;;  %v5943_v53 = vadd.f32 %v5942_v8, %v5941_v33  ;;  %v9004_v30 = vsel %vm8540_vm9, %v5130_v42, %v5294_v9  ;;  %v4874_v22 = vpop.permute.xlu1 %4873  ;;  %v5950_v40 = vsel %vm628_vm2, %v5866_v45, 0.0 }
 0x2a1   : > { %v6374_v4 = vpack.c.bf16 %v9004_v30, %v9004_v30  ;;  %v9015_v59 = vsel %vm8540_vm9, %v9564_v50, %v4874_v22  ;;  %v5869_v24 = vmul.f32 %v8823_v34, %v8823_v34  ;;  %v5759_v33 = vsel %vm628_vm2, %v8823_v34, 0.0 }
 0x2a2   : > { %v5945_v29 = vadd.f32 %v5944_v21, %v5943_v53  ;;  %v5750_v39 = vadd.f32 %v5749_v26, %v5748_v27  ;;  %v6378_v61 = vpack.c.bf16 %v9015_v59, %v9015_v59 }
 0x2a3   : > { %5679 = vst.msk [vmem:[%s7772_s23 + $0x7c] sm:$0xf] %vm5647_vm6, %v6374_v4  ;;  %v5132_v0 = vpop.permute.xlu0 %5131  ;;  %v5956_v27 = vsel %vm628_vm2, %v5869_v24, 0.0  ;;  %v9567_v4 = vld [vmem:[#allocation24_spill] sm:$0xff]  ;;  %v9569_v24 = vld [vmem:[#allocation26_spill] sm:$0xff] }
 0x2a4   : > { %v5752_v62 = vadd.f32 %v5751_v55, %v5750_v39  ;;  %v5947_v1 = vadd.f32 %v5946_v38, %v5945_v29  ;;  %5683 = vst.msk [vmem:[%s7772_s23 + $0x8c] sm:$0xf] %vm5647_vm6, %v6378_v61  ;;  %v5286_v31 = vpop.permute.xlu1 %5285 }
 0x2a5   : > { %v5370_v10 = vsel %vm8540_vm9, %v5122_v11, %v5286_v31  ;;  %v5952_v11 = vsel %vm628_vm2, %v5867_v43, 0.0  ;;  %v5761_v31 = vsel %vm628_vm2, %v8902_v47, 0.0 }
 0x2a6   : > { %v5949_v2 = vadd.f32 %v5948_v7, %v5947_v1  ;;  %v5754_v6 = vadd.f32 %v5753_v46, %v5752_v62  ;;  %v6366_v17 = vpack.c.bf16 %v5370_v10, %v5370_v10  ;;  %v5868_v23 = vmul.f32 %v5370_v10, %v5370_v10  ;;  %v9568_v46 = vld [vmem:[#allocation7_spill] sm:$0xff] }
 0x2a7   : > { %v4876_v36 = vpop.permute.xlu0 %4875  ;;  %v5757_v20 = vsel %vm628_vm2, %v5370_v10, 0.0  ;;  %v5870_v1 = vmul.f32 %v8902_v47, %v8902_v47  ;;  %v5763_v47 = vsel %vm628_vm2, %v8961_v15, 0.0 }
 0x2a8   : > { %v5756_v60 = vadd.f32 %v5755_v13, %v5754_v6  ;;  %v5951_v49 = vadd.f32 %v5950_v40, %v5949_v2  ;;  %v9041_v5 = vsel %vm7751_vm5, %v9565_v28, %v4876_v36  ;;  %5671 = vst.msk [vmem:[%s7772_s23 + $0x5c] sm:$0xf] %vm5647_vm6, %v6366_v17  ;;  %v4866_v16 = vpop.permute.xlu1 %4865  ;;  %v5954_v58 = vsel %vm628_vm2, %v5868_v23, 0.0 }
 0x2a9   : > { %v6383_v44 = vpack.c.bf16 %v9041_v5, %v9041_v5  ;;  %v4946_v9 = vsel %vm8540_vm9, %v9566_v57, %v4866_v16  ;;  %v5958_v40 = vsel %vm628_vm2, %v5870_v1, 0.0  ;;  %v5871_v13 = vmul.f32 %v8961_v15, %v8961_v15  ;;  %v9570_v15 = vld [vmem:[#allocation25_spill] sm:$0xff] }
 0x2aa   : > { %v5953_v32 = vadd.f32 %v5952_v11, %v5951_v49  ;;  %v5758_v37 = vadd.f32 %v5757_v20, %v5756_v60  ;;  %v6370_v8 = vpack.c.bf16 %v4946_v9, %v4946_v9  ;;  %v5876_v1 = vmul.f32 %v9004_v30, %v9004_v30 }
 0x2ab   : > { %5688 = vst.msk [vmem:[%s7772_s23 + $0xa0] sm:$0xf] %vm5647_vm6, %v6383_v44  ;;  %v5124_v18 = vpop.permute.xlu0 %5123  ;;  %v5960_v20 = vsel %vm628_vm2, %v5871_v13, 0.0  ;;  %v5872_v44 = vmul.f32 %v4946_v9, %v4946_v9  ;;  %v5773_v13 = vsel %vm628_vm2, %v9004_v30, 0.0 }
 0x2ac   : > { %v5760_v41 = vadd.f32 %v5759_v33, %v5758_v37  ;;  %v5955_v42 = vadd.f32 %v5954_v58, %v5953_v32  ;;  %5675 = vst.msk [vmem:[%s7772_s23 + $0x6c] sm:$0xf] %vm5647_vm6, %v6370_v8  ;;  %v5296_v53 = vpop.permute.xlu1 %5295  ;;  %v5765_v33 = vsel %vm628_vm2, %v4946_v9, 0.0 }
 0x2ad   : > { %v9064_v21 = vsel %vm7751_vm5, %v5132_v0, %v5296_v53 }
 0x2ae   : > { %v5957_v56 = vadd.f32 %v5956_v27, %v5955_v42  ;;  %v6379_v34 = vpack.c.bf16 %v9064_v21, %v9064_v21  ;;  %v5762_v10 = vadd.f32 %v5761_v31, %v5760_v41  ;;  %v5962_v41 = vsel %vm628_vm2, %v5872_v44, 0.0 }
 0x2af   : > { %v4868_v26 = vpop.permute.xlu0 %4867 }
 0x2b0   : > { %v9071_v22 = vsel %vm7751_vm5, %v9567_v4, %v4868_v26  ;;  %5684 = vst.msk [vmem:[%s7772_s23 + $0x90] sm:$0xf] %vm5647_vm6, %v6379_v34  ;;  %v5288_v39 = vpop.permute.xlu1 %5287  ;;  %v5959_v23 = vadd.f32 %v5958_v40, %v5957_v56  ;;  %v5764_v28 = vadd.f32 %v5763_v47, %v5762_v10 }
 0x2b1   : > { %v6375_v29 = vpack.c.bf16 %v9071_v22, %v9071_v22  ;;  %v5371_v50 = vsel %vm7751_vm5, %v5124_v18, %v5288_v39  ;;  %v5775_v30 = vsel %vm628_vm2, %v9071_v22, 0.0 }
 0x2b2   : > { %v6371_v55 = vpack.c.bf16 %v5371_v50, %v5371_v50  ;;  %v5961_v37 = vadd.f32 %v5960_v20, %v5959_v23  ;;  %v5766_v18 = vadd.f32 %v5765_v33, %v5764_v28  ;;  %v5873_v42 = vmul.f32 %v5371_v50, %v5371_v50  ;;  %v9571_v28 = vld [vmem:[#allocation14_spill] sm:$0xff] }
 0x2b3   : > { %5680 = vst.msk [vmem:[%s7772_s23 + $0x80] sm:$0xf] %vm5647_vm6, %v6375_v29  ;;  %v5134_v45 = vpop.permute.xlu0 %5133  ;;  %v5767_v9 = vsel %vm628_vm2, %v5371_v50, 0.0 }
 0x2b4   : > { %5676 = vst.msk [vmem:[%s7772_s23 + $0x70] sm:$0xf] %vm5647_vm6, %v6371_v55  ;;  %v5298_v38 = vpop.permute.xlu1 %5297  ;;  %v5963_v56 = vadd.f32 %v5962_v41, %v5961_v37  ;;  %v5768_v39 = vadd.f32 %v5767_v9, %v5766_v18  ;;  %v5964_v55 = vsel %vm628_vm2, %v5873_v42, 0.0  ;;  %v5880_v42 = vmul.f32 %v9015_v59, %v9015_v59 }
 0x2b5   : > { %v9085_v61 = vsel %vm7914_vm7, %v5134_v45, %v5298_v38 }
 0x2b6   : > { %v6380_v0 = vpack.c.bf16 %v9085_v61, %v9085_v61 }
 0x2b7   : > { %v5126_v62 = vpop.permute.xlu0 %5125 }
 0x2b8   : > { %5685 = vst.msk [vmem:[%s7772_s23 + $0x94] sm:$0xf] %vm5647_vm6, %v6380_v0  ;;  %v4878_v7 = vpop.permute.xlu1 %4877  ;;  %v5965_v0 = vadd.f32 %v5964_v55, %v5963_v56 }
 0x2b9   : > { %v9096_v43 = vsel %vm7914_vm7, %v9568_v46, %v4878_v7 }
 0x2ba   : > { %v6384_v2 = vpack.c.bf16 %v9096_v43, %v9096_v43 }
 0x2bb   : > { %v5136_v6 = vpop.permute.xlu0 %5135 }
 0x2bc   : > { %5689 = vst.msk [vmem:[%s7772_s23 + $0xa4] sm:$0xf] %vm5647_vm6, %v6384_v2  ;;  %v5290_v17 = vpop.permute.xlu1 %5289 }
 0x2bd   : > { %v5372_v36 = vsel %vm7914_vm7, %v5126_v62, %v5290_v17  ;;  %v5877_v17 = vmul.f32 %v9071_v22, %v9071_v22 }
 0x2be   : > { %v6372_v60 = vpack.c.bf16 %v5372_v36, %v5372_v36  ;;  %v5874_v27 = vmul.f32 %v5372_v36, %v5372_v36  ;;  %v5769_v26 = vsel %vm628_vm2, %v5372_v36, 0.0 }
 0x2bf   : > { %v4880_v49 = vpop.permute.xlu0 %4879  ;;  %v5770_v62 = vadd.f32 %v5769_v26, %v5768_v39 }
 0x2c0   : > { %v9114_v11 = vsel %vm7979_vm8, %v9569_v24, %v4880_v49  ;;  %5677 = vst.msk [vmem:[%s7772_s23 + $0x74] sm:$0xf] %vm5647_vm6, %v6372_v60  ;;  %v4870_v32 = vpop.permute.xlu1 %4869  ;;  %v5966_v45 = vsel %vm628_vm2, %v5874_v27, 0.0 }
 0x2c1   : > { %v6385_v16 = vpack.c.bf16 %v9114_v11, %v9114_v11  ;;  %v4948_v57 = vsel %vm7914_vm7, %v9570_v15, %v4870_v32  ;;  %v5972_v15 = vsel %vm628_vm2, %v5877_v17, 0.0 }
 0x2c2   : > { %v6376_v58 = vpack.c.bf16 %v4948_v57, %v4948_v57  ;;  %v5878_v20 = vmul.f32 %v4948_v57, %v4948_v57  ;;  %v5777_v33 = vsel %vm628_vm2, %v4948_v57, 0.0 }
 0x2c3   : > { %5690 = vst.msk [vmem:[%s7772_s23 + $0xa8] sm:$0xf] %vm5647_vm6, %v6385_v16  ;;  %v5128_v8 = vpop.permute.xlu0 %5127 }
 0x2c4   : > { %5681 = vst.msk [vmem:[%s7772_s23 + $0x84] sm:$0xf] %vm5647_vm6, %v6376_v58  ;;  %v5300_v53 = vpop.permute.xlu1 %5299  ;;  %v5974_v27 = vsel %vm628_vm2, %v5878_v20, 0.0  ;;  %v5789_v20 = vsel %vm628_vm2, %v8574_v52, 0.0 }
 0x2c5   : > { %v9132_v34 = vsel %vm7979_vm8, %v5136_v6, %v5300_v53  ;;  %v5967_v6 = vadd.f32 %v5966_v45, %v5965_v0 }
 0x2c6   : > { %v6381_v4 = vpack.c.bf16 %v9132_v34, %v9132_v34 }
 0x2c7   : > { %v5140_v29 = vpop.permute.xlu0 %5139 }
 0x2c8   : > { %5686 = vst.msk [vmem:[%s7772_s23 + $0x98] sm:$0xf] %vm5647_vm6, %v6381_v4  ;;  %v5292_v38 = vpop.permute.xlu1 %5291  ;;  %v5781_v4 = vsel %vm628_vm2, %v9015_v59, 0.0  ;;  %v5783_v59 = vsel %vm628_vm2, %v9064_v21, 0.0 }
 0x2c9   : > { %v5373_v50 = vsel %vm7979_vm8, %v5128_v8, %v5292_v38 }
 0x2ca   : > { %v6373_v7 = vpack.c.bf16 %v5373_v50, %v5373_v50  ;;  %v5771_v46 = vsel %vm628_vm2, %v5373_v50, 0.0  ;;  %v5875_v31 = vmul.f32 %v5373_v50, %v5373_v50  ;;  %v5882_v50 = vmul.f32 %v9085_v61, %v9085_v61 }
 0x2cb   : > { %v4872_v2 = vpop.permute.xlu0 %4871  ;;  %v5772_v10 = vadd.f32 %v5771_v46, %v5770_v62  ;;  %v5978_v62 = vsel %vm628_vm2, %v5880_v42, 0.0 }
 0x2cc   : > { %v4949_v40 = vsel %vm7979_vm8, %v8360_v14, %v4872_v2  ;;  %5678 = vst.msk [vmem:[%s7772_s23 + $0x78] sm:$0xf] %vm5647_vm6, %v6373_v7  ;;  %v5968_v23 = vsel %vm628_vm2, %v5875_v31, 0.0  ;;  %v4882_v47 = vpop.permute.xlu1 %4881  ;;  %v5970_v14 = vsel %vm628_vm2, %v5876_v1, 0.0 }
 0x2cd   : > { %v6377_v36 = vpack.c.bf16 %v4949_v40, %v4949_v40  ;;  %v5774_v60 = vadd.f32 %v5773_v13, %v5772_v10  ;;  %v5969_v49 = vadd.f32 %v5968_v23, %v5967_v6  ;;  %v9160_v24 = vsel %vm8540_vm9, %v9571_v28, %v4882_v47 }
 0x2ce   : > { %v6386_v44 = vpack.c.bf16 %v9160_v24, %v9160_v24  ;;  %v5879_v58 = vmul.f32 %v4949_v40, %v4949_v40  ;;  %v5779_v53 = vsel %vm628_vm2, %v4949_v40, 0.0  ;;  %v5785_v6 = vsel %vm628_vm2, %v9085_v61, 0.0 }
 0x2cf   : > { %5682 = vst.msk [vmem:[%s7772_s23 + $0x88] sm:$0xf] %vm5647_vm6, %v6377_v36  ;;  %v5142_v16 = vpop.permute.xlu0 %5141  ;;  %v5971_v32 = vadd.f32 %v5970_v14, %v5969_v49  ;;  %v5776_v37 = vadd.f32 %v5775_v30, %v5774_v60  ;;  %v5883_v10 = vmul.f32 %v9132_v34, %v9132_v34  ;;  %v5884_v23 = vmul.f32 %v8574_v52, %v8574_v52  ;;  %v9572_v14 = vld [vmem:[#allocation8_spill] sm:$0xff] }
 0x2d0   : > { %5691 = vst.msk [vmem:[%s7772_s23 + $0xac] sm:$0xf] %vm5647_vm6, %v6386_v44  ;;  %v5304_v8 = vpop.permute.xlu1 %5303  ;;  %v5976_v39 = vsel %vm628_vm2, %v5879_v58, 0.0  ;;  %v5982_v36 = vsel %vm628_vm2, %v5882_v50, 0.0  ;;  %v5787_v61 = vsel %vm628_vm2, %v9132_v34, 0.0  ;;  %v5885_v44 = vmul.f32 %v9041_v5, %v9041_v5 }
 0x2d1   : > { %v5778_v18 = vadd.f32 %v5777_v33, %v5776_v37  ;;  %v5973_v22 = vadd.f32 %v5972_v15, %v5971_v32  ;;  %v9175_v41 = vsel %vm7751_vm5, %v5140_v29, %v5304_v8  ;;  %v5881_v29 = vmul.f32 %v9064_v21, %v9064_v21 }
 0x2d2   : > { %v6387_v57 = vpack.c.bf16 %v9175_v41, %v9175_v41  ;;  %v5984_v34 = vsel %vm628_vm2, %v5883_v10, 0.0  ;;  %v5986_v58 = vsel %vm628_vm2, %v5884_v23, 0.0  ;;  %v5791_v52 = vsel %vm628_vm2, %v9041_v5, 0.0 }
 0x2d3   : > { %v5144_v56 = vpop.permute.xlu0 %5143  ;;  %v5780_v9 = vadd.f32 %v5779_v53, %v5778_v18  ;;  %v5975_v26 = vadd.f32 %v5974_v27, %v5973_v22  ;;  %v5980_v2 = vsel %vm628_vm2, %v5881_v29, 0.0  ;;  %v5886_v8 = vmul.f32 %v9096_v43, %v9096_v43  ;;  %v9573_v53 = vld [vmem:[#allocation28_spill] sm:$0xff] }
 0x2d4   : > { %5692 = vst.msk [vmem:[%s7772_s23 + $0xb0] sm:$0xf] %vm5647_vm6, %v6387_v57  ;;  %v5306_v55 = vpop.permute.xlu1 %5305  ;;  %v5793_v5 = vsel %vm628_vm2, %v9096_v43, 0.0  ;;  %v5795_v43 = vsel %vm628_vm2, %v9114_v11, 0.0 }
 0x2d5   : > { %v5782_v45 = vadd.f32 %v5781_v4, %v5780_v9  ;;  %v5977_v38 = vadd.f32 %v5976_v39, %v5975_v26  ;;  %v9192_v0 = vsel %vm7914_vm7, %v5142_v16, %v5306_v55  ;;  %v5887_v9 = vmul.f32 %v9114_v11, %v9114_v11  ;;  %v9574_v55 = vld [vmem:[#allocation27_spill] sm:$0xff] }
 0x2d6   : > { %v6388_v1 = vpack.c.bf16 %v9192_v0, %v9192_v0 }
 0x2d7   : > { %v5146_v7 = vpop.permute.xlu0 %5145  ;;  %v5784_v46 = vadd.f32 %v5783_v59, %v5782_v45  ;;  %v5979_v31 = vadd.f32 %v5978_v62, %v5977_v38  ;;  %v5990_v38 = vsel %vm628_vm2, %v5886_v8, 0.0  ;;  %v5888_v62 = vmul.f32 %v9160_v24, %v9160_v24 }
 0x2d8   : > { %5693 = vst.msk [vmem:[%s7772_s23 + $0xb4] sm:$0xf] %vm5647_vm6, %v6388_v1  ;;  %v5308_v21 = vpop.permute.xlu1 %5307 }
 0x2d9   : > { %v5786_v40 = vadd.f32 %v5785_v6, %v5784_v46  ;;  %v5981_v13 = vadd.f32 %v5980_v2, %v5979_v31  ;;  %v9210_v17 = vsel %vm7979_vm8, %v5144_v56, %v5308_v21  ;;  %v5988_v56 = vsel %vm628_vm2, %v5885_v44, 0.0 }
 0x2da   : > { %v6389_v47 = vpack.c.bf16 %v9210_v17, %v9210_v17  ;;  %v5992_v46 = vsel %vm628_vm2, %v5887_v9, 0.0  ;;  %v5797_v31 = vsel %vm628_vm2, %v9160_v24, 0.0  ;;  %v5889_v2 = vmul.f32 %v9175_v41, %v9175_v41 }
 0x2db   : > { %v4884_v60 = vpop.permute.xlu0 %4883  ;;  %v5788_v49 = vadd.f32 %v5787_v61, %v5786_v40  ;;  %v5983_v28 = vadd.f32 %v5982_v36, %v5981_v13  ;;  %v5994_v40 = vsel %vm628_vm2, %v5888_v62, 0.0  ;;  %v5799_v13 = vsel %vm628_vm2, %v9175_v41, 0.0 }
 0x2dc   : > { %v9222_v30 = vsel %vm7751_vm5, %v9572_v14, %v4884_v60  ;;  %5694 = vst.msk [vmem:[%s7772_s23 + $0xb8] sm:$0xf] %vm5647_vm6, %v6389_v47  ;;  %v5310_v32 = vpop.permute.xlu1 %5309  ;;  %v5890_v24 = vmul.f32 %v9192_v0, %v9192_v0  ;;  %v5996_v60 = vsel %vm628_vm2, %v5889_v2, 0.0 }
 0x2dd   : > { %v6391_v16 = vpack.c.bf16 %v9222_v30, %v9222_v30  ;;  %v5985_v37 = vadd.f32 %v5984_v34, %v5983_v28  ;;  %v5790_v15 = vadd.f32 %v5789_v20, %v5788_v49  ;;  %v5382_v33 = vsel %vm8540_vm9, %v5146_v7, %v5310_v32 }
 0x2de   : > { %v6390_v18 = vpack.c.bf16 %v5382_v33, %v5382_v33  ;;  %v5801_v49 = vsel %vm628_vm2, %v9192_v0, 0.0  ;;  %v5998_v44 = vsel %vm628_vm2, %v5890_v24, 0.0  ;;  %v5803_v34 = vsel %vm628_vm2, %v9210_v17, 0.0 }
 0x2df   : > { %5696 = vst.msk [vmem:[%s7772_s23 + $0xc0] sm:$0xf] %vm5647_vm6, %v6391_v16  ;;  %v4888_v22 = vpop.permute.xlu0 %4887  ;;  %v5792_v42 = vadd.f32 %v5791_v52, %v5790_v15  ;;  %v5987_v27 = vadd.f32 %v5986_v58, %v5985_v37  ;;  %v5892_v16 = vmul.f32 %v5382_v33, %v5382_v33  ;;  %v5893_v52 = vmul.f32 %v9222_v30, %v9222_v30 }
 0x2e0   : > { %v9245_v57 = vsel %vm7979_vm8, %v9573_v53, %v4888_v22  ;;  %5695 = vst.msk [vmem:[%s7772_s23 + $0xbc] sm:$0xf] %vm5647_vm6, %v6390_v18  ;;  %v4886_v4 = vpop.permute.xlu1 %4885  ;;  %v5805_v8 = vsel %vm628_vm2, %v5382_v33, 0.0 }
 0x2e1   : > { %v6393_v26 = vpack.c.bf16 %v9245_v57, %v9245_v57  ;;  %v5794_v29 = vadd.f32 %v5793_v5, %v5792_v42  ;;  %v5989_v39 = vadd.f32 %v5988_v56, %v5987_v27  ;;  %v4956_v45 = vsel %vm7914_vm7, %v9574_v55, %v4886_v4 }
 0x2e2   : > { %v6392_v59 = vpack.c.bf16 %v4956_v45, %v4956_v45  ;;  %v5807_v27 = vsel %vm628_vm2, %v9222_v30, 0.0  ;;  %v6002_v53 = vsel %vm628_vm2, %v5892_v16, 0.0  ;;  %v5894_v56 = vmul.f32 %v4956_v45, %v4956_v45 }
 0x2e3   : > { %5698 = vst.msk [vmem:[%s7772_s23 + $0xc8] sm:$0xf] %vm5647_vm6, %v6393_v26  ;;  %v5148_v50 = vpop.permute.xlu0 %5147  ;;  %v5796_v1 = vadd.f32 %v5795_v43, %v5794_v29  ;;  %v5991_v7 = vadd.f32 %v5990_v38, %v5989_v39  ;;  %v6004_v33 = vsel %vm628_vm2, %v5893_v52, 0.0  ;;  %v5895_v29 = vmul.f32 %v9245_v57, %v9245_v57 }
 0x2e4   : > { %5697 = vst.msk [vmem:[%s7772_s23 + $0xc4] sm:$0xf] %vm5647_vm6, %v6392_v59  ;;  %v4890_v11 = vpop.permute.xlu1 %4889  ;;  %v5809_v39 = vsel %vm628_vm2, %v4956_v45, 0.0  ;;  %v5811_v62 = vsel %vm628_vm2, %v9245_v57, 0.0  ;;  %v6006_v59 = vsel %vm628_vm2, %v5894_v56, 0.0 }
 0x2e5   : > { %v5993_v6 = vadd.f32 %v5992_v46, %v5991_v7  ;;  %v5798_v10 = vadd.f32 %v5797_v31, %v5796_v1  ;;  %v4958_v21 = vsel %vm8540_vm9, %v8548_v19, %v4890_v11  ;;  %v5891_v19 = vmul.f32 %v9210_v17, %v9210_v17 }
 0x2e6   : > { %v6394_v23 = vpack.c.bf16 %v4958_v21, %v4958_v21  ;;  %v6008_v2 = vsel %vm628_vm2, %v5895_v29, 0.0  ;;  %v5813_v11 = vsel %vm628_vm2, %v4958_v21, 0.0 }
 0x2e7   : > { %v5150_v36 = vpop.permute.xlu0 %5149  ;;  %v5995_v61 = vadd.f32 %v5994_v40, %v5993_v6  ;;  %v5800_v47 = vadd.f32 %v5799_v13, %v5798_v10  ;;  %v6000_v58 = vsel %vm628_vm2, %v5891_v19, 0.0 }
 0x2e8   : > { %5699 = vst.msk [vmem:[%s7772_s23 + $0xcc] sm:$0xf] %vm5647_vm6, %v6394_v23  ;;  %v5312_v28 = vpop.permute.xlu1 %5311 }
 0x2e9   : > { %v5997_v41 = vadd.f32 %v5996_v60, %v5995_v61  ;;  %v5802_v14 = vadd.f32 %v5801_v49, %v5800_v47  ;;  %v5383_v20 = vsel %vm7751_vm5, %v5148_v50, %v5312_v28  ;;  %v5896_v50 = vmul.f32 %v4958_v21, %v4958_v21 }
 0x2ea   : > { %v6395_v32 = vpack.c.bf16 %v5383_v20, %v5383_v20  ;;  %v5897_v6 = vmul.f32 %v5383_v20, %v5383_v20 }
 0x2eb   : > { %v5999_v37 = vadd.f32 %v5998_v44, %v5997_v41  ;;  %v5804_v15 = vadd.f32 %v5803_v34, %v5802_v14  ;;  %v6010_v23 = vsel %vm628_vm2, %v5896_v50, 0.0 }
 0x2ec   : > { %5700 = vst.msk [vmem:[%s7772_s23 + $0xd0] sm:$0xf] %vm5647_vm6, %v6395_v32  ;;  %v6012_v19 = vsel %vm628_vm2, %v5897_v6, 0.0 }
 0x2ed   : > { %v5152_v0 = vpop.permute.xlu0 %5151  ;;  %v5314_v18 = vpop.permute.xlu1 %5313  ;;  %v6001_v22 = vadd.f32 %v6000_v58, %v5999_v37  ;;  %v5806_v42 = vadd.f32 %v5805_v8, %v5804_v15 }
 0x2ee   : > { %v5384_v17 = vsel %vm7914_vm7, %v5150_v36, %v5314_v18  ;;  %v5815_v36 = vsel %vm628_vm2, %v5383_v20, 0.0 }
 0x2ef   : > { %v6396_v5 = vpack.c.bf16 %v5384_v17, %v5384_v17  ;;  %v6003_v26 = vadd.f32 %v6002_v53, %v6001_v22  ;;  %v5808_v4 = vadd.f32 %v5807_v27, %v5806_v42  ;;  %v5817_v28 = vsel %vm628_vm2, %v5384_v17, 0.0 }
 0x2f1   : > { %v5154_v9 = vpop.permute.xlu0 %5153  ;;  %5701 = vst.msk [vmem:[%s7772_s23 + $0xd4] sm:$0xf] %vm5647_vm6, %v6396_v5  ;;  %v6005_v38 = vadd.f32 %v6004_v33, %v6003_v26  ;;  %v5810_v30 = vadd.f32 %v5809_v39, %v5808_v4 }
 0x2f2   : > { %v5316_v55 = vpop.permute.xlu1 %5315 }
 0x2f3   : > { %v5385_v43 = vsel %vm7979_vm8, %v5152_v0, %v5316_v55  ;;  %v6007_v46 = vadd.f32 %v6006_v59, %v6005_v38  ;;  %v5812_v45 = vadd.f32 %v5811_v62, %v5810_v30 }
 0x2f4   : > { %v6397_v1 = vpack.c.bf16 %v5385_v43, %v5385_v43  ;;  %v5899_v41 = vmul.f32 %v5385_v43, %v5385_v43 }
 0x2f5   : > { %v4892_v7 = vpop.permute.xlu0 %4891  ;;  %v6009_v40 = vadd.f32 %v6008_v2, %v6007_v46  ;;  %v5814_v13 = vadd.f32 %v5813_v11, %v5812_v45 }
 0x2f6   : > { %v4959_v31 = vsel %vm7751_vm5, %v8640_v35, %v4892_v7  ;;  %5702 = vst.msk [vmem:[%s7772_s23 + $0xd8] sm:$0xf] %vm5647_vm6, %v6397_v1  ;;  %v5318_v10 = vpop.permute.xlu1 %5317  ;;  %v5898_v35 = vmul.f32 %v5384_v17, %v5384_v17  ;;  %v6016_v8 = vsel %vm628_vm2, %v5899_v41, 0.0 }
 0x2f7   : > { %v6399_v57 = vpack.c.bf16 %v4959_v31, %v4959_v31  ;;  %v5386_v24 = vsel %vm8540_vm9, %v5154_v9, %v5318_v10  ;;  %v6011_v47 = vadd.f32 %v6010_v23, %v6009_v40  ;;  %v5816_v60 = vadd.f32 %v5815_v36, %v5814_v13 }
 0x2f8   : > { %v6398_v61 = vpack.c.bf16 %v5386_v24, %v5386_v24  ;;  %v6014_v32 = vsel %vm628_vm2, %v5898_v35, 0.0  ;;  %v5900_v0 = vmul.f32 %v5386_v24, %v5386_v24  ;;  %v5901_v18 = vmul.f32 %v4959_v31, %v4959_v31 }
 0x2f9   : > { %5704 = vst.msk [vmem:[%s7772_s23 + $0xe0] sm:$0xf] %vm5647_vm6, %v6399_v57  ;;  %v4896_v21 = vpop.permute.xlu0 %4895  ;;  %v6013_v44 = vadd.f32 %v6012_v19, %v6011_v47  ;;  %v5818_v34 = vadd.f32 %v5817_v28, %v5816_v60  ;;  %v5821_v22 = vsel %vm628_vm2, %v5386_v24, 0.0  ;;  %v5823_v53 = vsel %vm628_vm2, %v4959_v31, 0.0 }
 0x2fa   : > { %v4961_v49 = vsel %vm7979_vm8, %v8712_v3, %v4896_v21  ;;  %5703 = vst.msk [vmem:[%s7772_s23 + $0xdc] sm:$0xf] %vm5647_vm6, %v6398_v61  ;;  %v4894_v20 = vpop.permute.xlu1 %4893  ;;  %v5819_v3 = vsel %vm628_vm2, %v5385_v43, 0.0  ;;  %v6018_v56 = vsel %vm628_vm2, %v5900_v0, 0.0  ;;  %v6020_v33 = vsel %vm628_vm2, %v5901_v18, 0.0 }
 0x2fb   : > { %v6401_v14 = vpack.c.bf16 %v4961_v49, %v4961_v49  ;;  %v4960_v16 = vsel %vm7914_vm7, %v8682_v48, %v4894_v20  ;;  %v6015_v58 = vadd.f32 %v6014_v32, %v6013_v44  ;;  %v5820_v52 = vadd.f32 %v5819_v3, %v5818_v34 }
 0x2fc   : > { %v6400_v37 = vpack.c.bf16 %v4960_v16, %v4960_v16  ;;  %v5902_v5 = vmul.f32 %v4960_v16, %v4960_v16  ;;  %v5903_v29 = vmul.f32 %v4961_v49, %v4961_v49  ;;  %v5825_v39 = vsel %vm628_vm2, %v4960_v16, 0.0 }
 0x2fd   : > { %5706 = vst.msk [vmem:[%s7772_s23 + $0xe8] sm:$0xf] %vm5647_vm6, %v6401_v14  ;;  %v5156_v15 = vpop.permute.xlu0 %5155  ;;  %v6017_v42 = vadd.f32 %v6016_v8, %v6015_v58  ;;  %v5822_v17 = vadd.f32 %v5821_v22, %v5820_v52  ;;  %v5827_v62 = vsel %vm628_vm2, %v4961_v49, 0.0 }
 0x2fe   : > { %5705 = vst.msk [vmem:[%s7772_s23 + $0xe4] sm:$0xf] %vm5647_vm6, %v6400_v37  ;;  %v4898_v48 = vpop.permute.xlu1 %4897  ;;  %v6022_v59 = vsel %vm628_vm2, %v5902_v5, 0.0  ;;  %v6024_v45 = vsel %vm628_vm2, %v5903_v29, 0.0 }
 0x2ff   : > { %v4962_v27 = vsel %vm8540_vm9, %v8770_v51, %v4898_v48  ;;  %v6019_v26 = vadd.f32 %v6018_v56, %v6017_v42  ;;  %v5824_v4 = vadd.f32 %v5823_v53, %v5822_v17 }
 0x300   : > { %v6402_v9 = vpack.c.bf16 %v4962_v27, %v4962_v27  ;;  %v5904_v50 = vmul.f32 %v4962_v27, %v4962_v27  ;;  %v5829_v31 = vsel %vm628_vm2, %v4962_v27, 0.0 }
 0x301   : > { %v5158_v55 = vpop.permute.xlu0 %5157  ;;  %v6021_v30 = vadd.f32 %v6020_v33, %v6019_v26  ;;  %v5826_v51 = vadd.f32 %v5825_v39, %v5824_v4 }
 0x302   : > { %5707 = vst.msk [vmem:[%s7772_s23 + $0xec] sm:$0xf] %vm5647_vm6, %v6402_v9  ;;  %v5320_v38 = vpop.permute.xlu1 %5319  ;;  %v6026_v10 = vsel %vm628_vm2, %v5904_v50, 0.0 }
 0x303   : > { %v5387_v43 = vsel %vm7751_vm5, %v5156_v15, %v5320_v38  ;;  %v6023_v7 = vadd.f32 %v6022_v59, %v6021_v30  ;;  %v5828_v46 = vadd.f32 %v5827_v62, %v5826_v51 }
 0x304   : > { %v6403_v1 = vpack.c.bf16 %v5387_v43, %v5387_v43  ;;  %v5905_v2 = vmul.f32 %v5387_v43, %v5387_v43  ;;  %v5831_v40 = vsel %vm628_vm2, %v5387_v43, 0.0 }
 0x305   : > { %v6025_v6 = vadd.f32 %v6024_v45, %v6023_v7  ;;  %v5830_v63 = vadd.f32 %v5829_v31, %v5828_v46  ;;  %v5160_v13 = vpop.permute.xlu0 %5159 }
 0x306   : > { %5708 = vst.msk [vmem:[%s7772_s23 + $0xf0] sm:$0xf] %vm5647_vm6, %v6403_v1  ;;  %v5322_v11 = vpop.permute.xlu1 %5321  ;;  %v6028_v61 = vsel %vm628_vm2, %v5905_v2, 0.0 }
 0x307   : > { %v5388_v57 = vsel %vm7914_vm7, %v5158_v55, %v5322_v11  ;;  %v6027_v36 = vadd.f32 %v6026_v10, %v6025_v6  ;;  %v5832_v35 = vadd.f32 %v5831_v40, %v5830_v63 }
 0x308   : > { %v6404_v24 = vpack.c.bf16 %v5388_v57, %v5388_v57  ;;  %v5906_v23 = vmul.f32 %v5388_v57, %v5388_v57  ;;  %v5833_v21 = vsel %vm628_vm2, %v5388_v57, 0.0 }
 0x309   : > { %v6029_v60 = vadd.f32 %v6028_v61, %v6027_v36  ;;  %v5834_v54 = vadd.f32 %v5833_v21, %v5832_v35  ;;  %v5162_v44 = vpop.permute.xlu0 %5161 }
 0x30a   : > { %5709 = vst.msk [vmem:[%s7772_s23 + $0xf4] sm:$0xf] %vm5647_vm6, %v6404_v24  ;;  %v5324_v47 = vpop.permute.xlu1 %5323  ;;  %v6030_v19 = vsel %vm628_vm2, %v5906_v23, 0.0 }
 0x30b   : > { %v5389_v49 = vsel %vm7979_vm8, %v5160_v13, %v5324_v47  ;;  %v6031_v20 = vadd.f32 %v6030_v19, %v6029_v60 }
 0x30c   : > { %v6405_v28 = vpack.c.bf16 %v5389_v49, %v5389_v49  ;;  %v5835_v41 = vsel %vm628_vm2, %v5389_v49, 0.0  ;;  %v5907_v14 = vmul.f32 %v5389_v49, %v5389_v49 }
 0x30d   : > { %v5836_v32 = vadd.f32 %v5835_v41, %v5834_v54 }
 0x30e   : > { %5710 = vst.msk [vmem:[%s7772_s23 + $0xf8] sm:$0xf] %vm5647_vm6, %v6405_v28  ;;  %v6032_v34 = vsel %vm628_vm2, %v5907_v14, 0.0  ;;  %v5326_v16 = vpop.permute.xlu1 %5325 }
 0x30f   : > { %v5390_v25 = vsel %vm8540_vm9, %v5162_v44, %v5326_v16  ;;  %v6033_v15 = vadd.f32 %v6032_v34, %v6031_v20 }
 0x310   : > { %v6406_v3 = vpack.c.bf16 %v5390_v25, %v5390_v25  ;;  %v5837_v0 = vsel %vm628_vm2, %v5390_v25, 0.0  ;;  %v5908_v37 = vmul.f32 %v5390_v25, %v5390_v25 }
 0x311   : > { %v5838_v58 = vadd.f32 %v5837_v0, %v5836_v32 }
 0x312   : > { %5711 = vst.msk [vmem:[%s7772_s23 + $0xfc] sm:$0xf] %vm5647_vm6, %v6406_v3  ;;  %v6034_v52 = vsel %vm628_vm2, %v5908_v37, 0.0 }
 0x313   : > { %v5839_v8 = vrot.slane %v5838_v58, 4  ;;  %v6035_v18 = vadd.f32 %v6034_v52, %v6033_v15 }
 0x315   : > { %v5840_v22 = vadd.f32 %v5839_v8, %v5838_v58  ;;  %v6036_v48 = vrot.slane %v6035_v18, 4 }
 0x317   : > { %v5841_v42 = vrot.slane %v5840_v22, 2  ;;  %v6037_v17 = vadd.f32 %v6036_v48, %v6035_v18 }
 0x319   : > { %v5842_v12 = vadd.f32 %v5841_v42, %v5840_v22  ;;  %v6038_v27 = vrot.slane %v6037_v17, 2 }
 0x31b   : > { %v5843_v53 = vrot.slane %v5842_v12, 1  ;;  %v6039_v56 = vadd.f32 %v6038_v27, %v6037_v17 }
 0x31d   : > { %v6040_v5 = vrot.slane %v6039_v56, 1  ;;  %v5844_v9 = vadd.f32 %v5843_v53, %v5842_v12 }
 0x31f   : > { %v6041_v26 = vadd.f32 %v6040_v5, %v6039_v56 }
 0x321   : > { %v6043_v4 = vsel %vm6042_vm10, %v5844_v9, %v6041_v26 }
 0x322   : > { %6045 = vst.msk [vmem:[%s230_s29] sm:$0x3] %vm6044_vm11, %v6043_v4 }
 0x323 PF: > { %s14_s16 = sadd.s32 1, %s6551_s16   ;;  %s9575_s12 = smov %s6543_s14 }
 0x324   : > { %p11_p8 = scmp.ge.s32.totalorder %s14_s16, 6   ;;  %s9576_s13 = smov %s6547_s15 }
 0x325   : > { %s9577_s14 = smov %s9580_s17  ;;  %s9578_s15 = smov %s9584_s18 }
 0x326   :  { %13 = sbr.rel (!%p11_p8) target bundleno = 3 (0x3), region = 70 }

</bundles_post_ra>
